<compile_context>
chip_gen: v7x
topology: tpu7x:2x2x1
jax: 0.10.0
libtpu: 0.0.40
codegen_flags: <defaults>
</compile_context>

<pallas_src>
import math
from functools import partial

import jax
import jax.numpy as jnp
from jax.experimental import pallas as pl
from jax.experimental.pallas import tpu as pltpu

HP = jax.lax.Precision.HIGHEST  # used only by the pure-JAX reference


# ----------------------- shared math helpers -----------------------
def _layernorm(v, w, b, eps=1e-5):
    mu = jnp.mean(v, axis=-1, keepdims=True)
    var = jnp.mean(jnp.square(v - mu), axis=-1, keepdims=True)
    return (v - mu) * jax.lax.rsqrt(var + eps) * w + b


def _mish(v):
    # numerically stable softplus (avoids exp overflow for large v)
    sp = jnp.maximum(v, 0.0) + jnp.log(1.0 + jnp.exp(-jnp.abs(v)))
    return v * jnp.tanh(sp)


def _gelu_tanh(v):
    c = math.sqrt(2.0 / math.pi)
    return 0.5 * v * (1.0 + jnp.tanh(c * (v + 0.044715 * v * v * v)))


def sinusoidal_pos_emb(times, dim):
    half = dim // 2
    scale = math.log(10000.0) / (half - 1)
    freqs = jnp.exp(-scale * jnp.arange(half, dtype=jnp.float32))
    arg = times.astype(jnp.float32)[:, None] * freqs[None, :]
    return jnp.concatenate([jnp.sin(arg), jnp.cos(arg)], axis=-1)


def rotary_cos_sin(seq_len, dim, theta=10000.0):
    inv_freq = 1.0 / (theta ** (jnp.arange(0, dim, 2, dtype=jnp.float32) / dim))
    t = jnp.arange(seq_len, dtype=jnp.float32)
    freqs = t[:, None] * inv_freq[None, :]            # (S, dim//2)
    freqs = jnp.repeat(freqs, 2, axis=-1)             # interleaved (S, dim)
    return jnp.cos(freqs), jnp.sin(freqs)


def rotate_half_matrix(dim):
    # rotate_half(x) == x @ R   (lucidrains interleaved convention)
    R = jnp.zeros((dim, dim), jnp.float32)
    i = jnp.arange(dim // 2)
    R = R.at[2 * i + 1, 2 * i].set(-1.0)
    R = R.at[2 * i, 2 * i + 1].set(1.0)
    return R


# ----------------------- fused Pallas kernel -----------------------
def _bcast_rows(v, s):
    """(B, C) -> (B*s, C): broadcast each batch row over its s sequence rows."""
    b, c = v.shape
    return jnp.broadcast_to(v[:, None, :], (b, s, c)).reshape(b * s, c)


def _motion_decoder_kernel(
        nhead,
        # inputs
        x_ref, emb_ref, cos_ref, sin_ref, rot_ref,
        inw_ref, inb_ref, tw1_ref, tb1_ref, tw2_ref, tb2_ref,
        finw_ref, finb_ref,
        ln1w_ref, ln1b_ref, wqkv_ref, bqkv_ref, wo_ref, bo_ref,
        f1w_ref, f1b_ref, ln3w_ref, ln3b_ref, w1_ref, b1_ref,
        w2_ref, b2_ref, f3w_ref, f3b_ref,
        # output
        o_ref):
    BS = x_ref.shape[0]
    B = emb_ref.shape[0]
    S = BS // B
    D = inw_ref.shape[1]
    nlayers = wqkv_ref.shape[0]
    hd = D // nhead
    scale = 1.0 / math.sqrt(hd)

    cos = cos_ref[...]            # (BS, D), batch-tiled outside
    sin = sin_ref[...]
    R = rot_ref[...]              # (D, D) signed pair-swap (rotate_half)

    # ---- input projection ----
    h = jnp.dot(x_ref[...], inw_ref[...],
                preferred_element_type=jnp.float32) + inb_ref[...]         # (BS, D)

    # ---- time-conditioning MLP + FiLM generator input (hoisted) ----
    th = _mish(jnp.dot(emb_ref[...], tw1_ref[...],
                       preferred_element_type=jnp.float32) + tb1_ref[...])
    t = jnp.dot(th, tw2_ref[...],
                preferred_element_type=jnp.float32) + tb2_ref[...]          # (B, D)
    tm = _mish(t)                                                           # (B, D)

    for li in range(nlayers):
        # FiLM scale/shift for this layer: t-only, computed once per layer.
        f1 = jnp.dot(tm, f1w_ref[li], preferred_element_type=jnp.float32) + f1b_ref[li]
        f3 = jnp.dot(tm, f3w_ref[li], preferred_element_type=jnp.float32) + f3b_ref[li]
        sc1 = _bcast_rows(f1[:, 0:D], S)
        sh1 = _bcast_rows(f1[:, D:2 * D], S)
        sc3 = _bcast_rows(f3[:, 0:D], S)
        sh3 = _bcast_rows(f3[:, D:2 * D], S)

        # ---- self-attention block (pre-norm, FiLM-modulated residual) ----
        xn = _layernorm(h, ln1w_ref[li], ln1b_ref[li])
        # rotary on the q/k input (interleaved rotate_half as x @ R)
        qkrot = xn * cos + jnp.dot(xn, R, preferred_element_type=jnp.float32) * sin

        # single QKV matmul: rows [0:BS) carry the rotated input (Q,K source),
        # rows [BS:2BS) the un-rotated normed input (V source).
        qkv_in = jnp.concatenate([qkrot, xn], axis=0)                      # (2BS, D)
        qkv = jnp.dot(qkv_in, wqkv_ref[li],
                      preferred_element_type=jnp.float32) + bqkv_ref[li]   # (2BS, 3D)
        q = qkv[0:BS, 0:D] * scale
        k = qkv[0:BS, D:2 * D]
        v = qkv[BS:2 * BS, 2 * D:3 * D]
        q3 = q.reshape(B, S, D)
        k3 = k.reshape(B, S, D)
        v3 = v.reshape(B, S, D)

        wo = wo_ref[li]                                                    # (D, D)
        sa = jnp.zeros((BS, D), jnp.float32)
        for hh in range(nhead):
            lo = hh * hd
            qh = q3[:, :, lo:lo + hd]
            kh = k3[:, :, lo:lo + hd]
            vh = v3[:, :, lo:lo + hd]
            s_hh = jnp.einsum('bqd,bkd->bqk', qh, kh,
                              preferred_element_type=jnp.float32)          # (B, S, S)
            s_hh = s_hh - jnp.max(s_hh, axis=-1, keepdims=True)
            e = jnp.exp(s_hh)
            p = e * pl.reciprocal(jnp.sum(e, axis=-1, keepdims=True), approx=True)
            oh = jnp.einsum('bqk,bkd->bqd', p, vh,
                            preferred_element_type=jnp.float32)            # (B, S, hd)
            # fold this head's slice of the output projection; avoids the
            # lane-shuffling concatenate over heads.
            sa = sa + jnp.dot(oh.reshape(BS, hd), wo[lo:lo + hd, :],
                              preferred_element_type=jnp.float32)
        sa = sa + bo_ref[li]

        h = h + (sc1 + 1.0) * sa + sh1

        # ---- feed-forward block (pre-norm, FiLM-modulated residual) ----
        xn3 = _layernorm(h, ln3w_ref[li], ln3b_ref[li])
        h1 = _gelu_tanh(jnp.dot(xn3, w1_ref[li],
                                preferred_element_type=jnp.float32) + b1_ref[li])
        ff = jnp.dot(h1, w2_ref[li],
                     preferred_element_type=jnp.float32) + b2_ref[li]
        h = h + (sc3 + 1.0) * ff + sh3

    # ---- final projection ----
    out = jnp.dot(h, finw_ref[...],
                  preferred_element_type=jnp.float32) + finb_ref[...]      # (BS, F)
    o_ref[...] = out.astype(o_ref.dtype)


def motion_decoder_forward(params, x, times):
    B, S, F = x.shape
    D = params['in_proj_w'].shape[1]
    nhead = params['nhead']
    BS = B * S

    # host-side constants (tiny, computed once per call)
    emb = sinusoidal_pos_emb(times, D)                     # (B, D)
    cos, sin = rotary_cos_sin(S, D)
    cos_bs = jnp.tile(cos, (B, 1))                         # (BS, D): row b*S+s -> cos[s]
    sin_bs = jnp.tile(sin, (B, 1))
    R = rotate_half_matrix(D)

    stk = lambda key: jnp.stack([lp[key] for lp in params['layers']])

    inputs = [
        x.reshape(BS, F), emb, cos_bs, sin_bs, R,
        params['in_proj_w'], params['in_proj_b'],
        params['time_w1'], params['time_b1'],
        params['time_w2'], params['time_b2'],
        params['final_w'], params['final_b'],
        stk('ln1w'), stk('ln1b'), stk('wqkv'), stk('bqkv'), stk('wo'), stk('bo'),
        stk('f1w'), stk('f1b'), stk('ln3w'), stk('ln3b'), stk('w1'), stk('b1'),
        stk('w2'), stk('b2'), stk('f3w'), stk('f3b'),
    ]

    def fs(shape):
        n = len(shape)
        return pl.BlockSpec(shape, lambda i, n=n: (0,) * n)

    out = pl.pallas_call(
        partial(_motion_decoder_kernel, nhead),
        out_shape=jax.ShapeDtypeStruct((BS, F), x.dtype),
        grid=(1,),
        in_specs=[fs(a.shape) for a in inputs],
        out_specs=fs((BS, F)),
        compiler_params=pltpu.CompilerParams(
            dimension_semantics=("arbitrary",)),
    )(*inputs)
    return out.reshape(B, S, F)


# ----------------------- pure-JAX reference (for validation) -----------------------
def _ref_layer(x, t, cos, sin, R, p, nhead):
    B, S, D = x.shape
    hd = D // nhead
    xn = _layernorm(x, p['ln1w'], p['ln1b'])
    qk = xn * cos + jnp.einsum('bsd,de->bse', xn, R, precision=HP) * sin
    q = jnp.einsum('bsd,de->bse', qk, p['wqkv'][:, :D], precision=HP) + p['bqkv'][:, :D]
    k = jnp.einsum('bsd,de->bse', qk, p['wqkv'][:, D:2 * D], precision=HP) + p['bqkv'][:, D:2 * D]
    v = jnp.einsum('bsd,de->bse', xn, p['wqkv'][:, 2 * D:], precision=HP) + p['bqkv'][:, 2 * D:]
    qh = q.reshape(B, S, nhead, hd).transpose(0, 2, 1, 3) / math.sqrt(hd)
    kh = k.reshape(B, S, nhead, hd).transpose(0, 2, 1, 3)
    vh = v.reshape(B, S, nhead, hd).transpose(0, 2, 1, 3)
    sc = jnp.einsum('bhqd,bhkd->bhqk', qh, kh, precision=HP)
    pr = jax.nn.softmax(sc, axis=-1)
    attn = jnp.einsum('bhqk,bhkd->bhqd', pr, vh, precision=HP)
    attn = attn.transpose(0, 2, 1, 3).reshape(B, S, D)
    sa = jnp.einsum('bsd,de->bse', attn, p['wo'], precision=HP) + p['bo']
    tm = _mish(t)
    f1 = jnp.dot(tm, p['f1w'], precision=HP) + p['f1b']
    x = x + (f1[:, None, :D] + 1.0) * sa + f1[:, None, D:]
    xn3 = _layernorm(x, p['ln3w'], p['ln3b'])
    h1 = _gelu_tanh(jnp.einsum('bsd,df->bsf', xn3, p['w1'], precision=HP) + p['b1'])
    ff = jnp.einsum('bsf,fd->bsd', h1, p['w2'], precision=HP) + p['b2']
    f3 = jnp.dot(tm, p['f3w'], precision=HP) + p['f3b']
    x = x + (f3[:, None, :D] + 1.0) * ff + f3[:, None, D:]
    return x


def reference_forward(params, x, times):
    B, S, F = x.shape
    D = params['in_proj_w'].shape[1]
    h = jnp.einsum('bsf,fd->bsd', x, params['in_proj_w'], precision=HP) + params['in_proj_b']
    emb = sinusoidal_pos_emb(times, D)
    th = _mish(jnp.dot(emb, params['time_w1'], precision=HP) + params['time_b1'])
    t = jnp.dot(th, params['time_w2'], precision=HP) + params['time_b2']
    cos, sin = rotary_cos_sin(S, D)
    R = rotate_half_matrix(D)
    for p in params['layers']:
        h = _ref_layer(h, t, cos, sin, R, p, params['nhead'])
    return jnp.einsum('bsd,df->bsf', h, params['final_w'], precision=HP) + params['final_b']


# ----------------------- deterministic parameter init -----------------------
def init_params(key, nfeats, d, ff, nlayers, nhead):
    keys = jax.random.split(key, 8 + nlayers)

    def w(k, shape):
        return (0.02 * jax.random.normal(k, shape)).astype(jnp.float32)

    params = {
        'nhead': nhead,
        'in_proj_w': w(keys[0], (nfeats, d)), 'in_proj_b': w(keys[4], (1, d)),
        'time_w1': w(keys[1], (d, 4 * d)),    'time_b1': w(keys[5], (1, 4 * d)),
        'time_w2': w(keys[2], (4 * d, d)),    'time_b2': w(keys[6], (1, d)),
        'final_w': w(keys[3], (d, nfeats)),   'final_b': w(keys[7], (1, nfeats)),
        'layers': [],
    }
    for li in range(nlayers):
        k = jax.random.split(keys[8 + li], 12)
        params['layers'].append({
            'ln1w': jnp.ones((1, d), jnp.float32), 'ln1b': jnp.zeros((1, d), jnp.float32),
            'wqkv': w(k[0], (d, 3 * d)), 'bqkv': w(k[1], (1, 3 * d)),
            'wo':   w(k[2], (d, d)),     'bo':   w(k[3], (1, d)),
            'f1w':  w(k[4], (d, 2 * d)), 'f1b':  w(k[5], (1, 2 * d)),
            'ln3w': jnp.ones((1, d), jnp.float32), 'ln3b': jnp.zeros((1, d), jnp.float32),
            'w1':   w(k[6], (d, ff)),    'b1':   w(k[7], (1, ff)),
            'w2':   w(k[8], (ff, d)),    'b2':   w(k[9], (1, d)),
            'f3w':  w(k[10], (d, 2 * d)), 'f3b': w(k[11], (1, 2 * d)),
        })
    return params


if __name__ == "__main__":
    B, S, NFEATS, D, FF, NLAYERS, NHEAD = 2, 8, 8, 32, 64, 2, 4
    key = jax.random.PRNGKey(0)
    kx, kt, kp = jax.random.split(key, 3)
    x = jax.random.normal(kx, (B, S, NFEATS), jnp.float32)
    times = jax.random.uniform(kt, (B,), jnp.float32, 0.0, 1000.0)
    params = init_params(kp, NFEATS, D, FF, NLAYERS, NHEAD)

    out = motion_decoder_forward(params, x, times)
    out = jax.block_until_ready(out)
    assert out.shape == (B, S, NFEATS)

    ref = jax.block_until_ready(reference_forward(params, x, times))
    max_err = float(jnp.max(jnp.abs(out - ref)))
    # tolerance covers default MXU precision (bf16 passes) + approx softmax reciprocal
    assert max_err < 5e-3, f"mismatch vs reference: max_err={max_err}"

    print("KERNEL_OK")
</pallas_src>

<mosaic_0001>
module attributes {stable_mosaic.version = 11 : i64} {
  func.func @_motion_decoder_kernel(%arg0: i32, %arg1: memref<16x8xf32, #tpu.memory_space<vmem>>, %arg2: memref<2x32xf32, #tpu.memory_space<vmem>>, %arg3: memref<16x32xf32, #tpu.memory_space<vmem>>, %arg4: memref<16x32xf32, #tpu.memory_space<vmem>>, %arg5: memref<32x32xf32, #tpu.memory_space<vmem>>, %arg6: memref<8x32xf32, #tpu.memory_space<vmem>>, %arg7: memref<1x32xf32, #tpu.memory_space<vmem>>, %arg8: memref<32x128xf32, #tpu.memory_space<vmem>>, %arg9: memref<1x128xf32, #tpu.memory_space<vmem>>, %arg10: memref<128x32xf32, #tpu.memory_space<vmem>>, %arg11: memref<1x32xf32, #tpu.memory_space<vmem>>, %arg12: memref<32x8xf32, #tpu.memory_space<vmem>>, %arg13: memref<1x8xf32, #tpu.memory_space<vmem>>, %arg14: memref<2x1x32xf32, #tpu.memory_space<vmem>>, %arg15: memref<2x1x32xf32, #tpu.memory_space<vmem>>, %arg16: memref<2x32x96xf32, #tpu.memory_space<vmem>>, %arg17: memref<2x1x96xf32, #tpu.memory_space<vmem>>, %arg18: memref<2x32x32xf32, #tpu.memory_space<vmem>>, %arg19: memref<2x1x32xf32, #tpu.memory_space<vmem>>, %arg20: memref<2x32x64xf32, #tpu.memory_space<vmem>>, %arg21: memref<2x1x64xf32, #tpu.memory_space<vmem>>, %arg22: memref<2x1x32xf32, #tpu.memory_space<vmem>>, %arg23: memref<2x1x32xf32, #tpu.memory_space<vmem>>, %arg24: memref<2x32x64xf32, #tpu.memory_space<vmem>>, %arg25: memref<2x1x64xf32, #tpu.memory_space<vmem>>, %arg26: memref<2x64x32xf32, #tpu.memory_space<vmem>>, %arg27: memref<2x1x32xf32, #tpu.memory_space<vmem>>, %arg28: memref<2x32x64xf32, #tpu.memory_space<vmem>>, %arg29: memref<2x1x64xf32, #tpu.memory_space<vmem>>, %arg30: memref<16x8xf32, #tpu.memory_space<vmem>>) attributes {dimension_semantics = [#tpu.dimension_semantics<arbitrary>], iteration_bounds = array<i64: 1>, scalar_prefetch = 0 : i64, scratch_operands = 0 : i64, tpu.core_type = #tpu.core_type<tc>, window_params = [{pipeline_mode = #tpu.pipeline_mode<synchronous>, transform_indices = @transform_0, window_bounds = array<i64: 16, 8>}, {pipeline_mode = #tpu.pipeline_mode<synchronous>, transform_indices = @transform_1, window_bounds = array<i64: 2, 32>}, {pipeline_mode = #tpu.pipeline_mode<synchronous>, transform_indices = @transform_2, window_bounds = array<i64: 16, 32>}, {pipeline_mode = #tpu.pipeline_mode<synchronous>, transform_indices = @transform_3, window_bounds = array<i64: 16, 32>}, {pipeline_mode = #tpu.pipeline_mode<synchronous>, transform_indices = @transform_4, window_bounds = array<i64: 32, 32>}, {pipeline_mode = #tpu.pipeline_mode<synchronous>, transform_indices = @transform_5, window_bounds = array<i64: 8, 32>}, {pipeline_mode = #tpu.pipeline_mode<synchronous>, transform_indices = @transform_6, window_bounds = array<i64: 1, 32>}, {pipeline_mode = #tpu.pipeline_mode<synchronous>, transform_indices = @transform_7, window_bounds = array<i64: 32, 128>}, {pipeline_mode = #tpu.pipeline_mode<synchronous>, transform_indices = @transform_8, window_bounds = array<i64: 1, 128>}, {pipeline_mode = #tpu.pipeline_mode<synchronous>, transform_indices = @transform_9, window_bounds = array<i64: 128, 32>}, {pipeline_mode = #tpu.pipeline_mode<synchronous>, transform_indices = @transform_10, window_bounds = array<i64: 1, 32>}, {pipeline_mode = #tpu.pipeline_mode<synchronous>, transform_indices = @transform_11, window_bounds = array<i64: 32, 8>}, {pipeline_mode = #tpu.pipeline_mode<synchronous>, transform_indices = @transform_12, window_bounds = array<i64: 1, 8>}, {pipeline_mode = #tpu.pipeline_mode<synchronous>, transform_indices = @transform_13, window_bounds = array<i64: 2, 1, 32>}, {pipeline_mode = #tpu.pipeline_mode<synchronous>, transform_indices = @transform_14, window_bounds = array<i64: 2, 1, 32>}, {pipeline_mode = #tpu.pipeline_mode<synchronous>, transform_indices = @transform_15, window_bounds = array<i64: 2, 32, 96>}, {pipeline_mode = #tpu.pipeline_mode<synchronous>, transform_indices = @transform_16, window_bounds = array<i64: 2, 1, 96>}, {pipeline_mode = #tpu.pipeline_mode<synchronous>, transform_indices = @transform_17, window_bounds = array<i64: 2, 32, 32>}, {pipeline_mode = #tpu.pipeline_mode<synchronous>, transform_indices = @transform_18, window_bounds = array<i64: 2, 1, 32>}, {pipeline_mode = #tpu.pipeline_mode<synchronous>, transform_indices = @transform_19, window_bounds = array<i64: 2, 32, 64>}, {pipeline_mode = #tpu.pipeline_mode<synchronous>, transform_indices = @transform_20, window_bounds = array<i64: 2, 1, 64>}, {pipeline_mode = #tpu.pipeline_mode<synchronous>, transform_indices = @transform_21, window_bounds = array<i64: 2, 1, 32>}, {pipeline_mode = #tpu.pipeline_mode<synchronous>, transform_indices = @transform_22, window_bounds = array<i64: 2, 1, 32>}, {pipeline_mode = #tpu.pipeline_mode<synchronous>, transform_indices = @transform_23, window_bounds = array<i64: 2, 32, 64>}, {pipeline_mode = #tpu.pipeline_mode<synchronous>, transform_indices = @transform_24, window_bounds = array<i64: 2, 1, 64>}, {pipeline_mode = #tpu.pipeline_mode<synchronous>, transform_indices = @transform_25, window_bounds = array<i64: 2, 64, 32>}, {pipeline_mode = #tpu.pipeline_mode<synchronous>, transform_indices = @transform_26, window_bounds = array<i64: 2, 1, 32>}, {pipeline_mode = #tpu.pipeline_mode<synchronous>, transform_indices = @transform_27, window_bounds = array<i64: 2, 32, 64>}, {pipeline_mode = #tpu.pipeline_mode<synchronous>, transform_indices = @transform_28, window_bounds = array<i64: 2, 1, 64>}, {pipeline_mode = #tpu.pipeline_mode<synchronous>, transform_indices = @transform_29, window_bounds = array<i64: 16, 8>}]} {
    %c0 = arith.constant 0 : index
    %c0_0 = arith.constant 0 : index
    %0 = vector.load %arg3[%c0, %c0_0] : memref<16x32xf32, #tpu.memory_space<vmem>>, vector<16x32xf32>
    %c0_1 = arith.constant 0 : index
    %c0_2 = arith.constant 0 : index
    %1 = vector.load %arg4[%c0_1, %c0_2] : memref<16x32xf32, #tpu.memory_space<vmem>>, vector<16x32xf32>
    %c0_3 = arith.constant 0 : index
    %c0_4 = arith.constant 0 : index
    %2 = vector.load %arg5[%c0_3, %c0_4] : memref<32x32xf32, #tpu.memory_space<vmem>>, vector<32x32xf32>
    %c0_5 = arith.constant 0 : index
    %c0_6 = arith.constant 0 : index
    %3 = vector.load %arg1[%c0_5, %c0_6] : memref<16x8xf32, #tpu.memory_space<vmem>>, vector<16x8xf32>
    %c0_7 = arith.constant 0 : index
    %c0_8 = arith.constant 0 : index
    %4 = vector.load %arg6[%c0_7, %c0_8] : memref<8x32xf32, #tpu.memory_space<vmem>>, vector<8x32xf32>
    %cst = arith.constant dense<0.000000e+00> : vector<16x32xf32>
    %5 = tpu.matmul %3, %4, %cst {dimension_numbers = #tpu.dot_dimension_numbers<[1], [0], [0], [1], [0, 0, 1, 1], [], []>} : vector<16x8xf32>, vector<8x32xf32>, vector<16x32xf32> -> vector<16x32xf32>
    %c0_9 = arith.constant 0 : index
    %c0_10 = arith.constant 0 : index
    %6 = vector.load %arg7[%c0_9, %c0_10] : memref<1x32xf32, #tpu.memory_space<vmem>>, vector<1x32xf32>
    %7 = vector.broadcast %6 : vector<1x32xf32> to vector<16x32xf32>
    %8 = arith.addf %5, %7 : vector<16x32xf32>
    %c0_11 = arith.constant 0 : index
    %c0_12 = arith.constant 0 : index
    %9 = vector.load %arg2[%c0_11, %c0_12] : memref<2x32xf32, #tpu.memory_space<vmem>>, vector<2x32xf32>
    %c0_13 = arith.constant 0 : index
    %c0_14 = arith.constant 0 : index
    %10 = vector.load %arg8[%c0_13, %c0_14] : memref<32x128xf32, #tpu.memory_space<vmem>>, vector<32x128xf32>
    %cst_15 = arith.constant dense<0.000000e+00> : vector<2x128xf32>
    %11 = tpu.matmul %9, %10, %cst_15 {dimension_numbers = #tpu.dot_dimension_numbers<[1], [0], [0], [1], [0, 0, 1, 1], [], []>} : vector<2x32xf32>, vector<32x128xf32>, vector<2x128xf32> -> vector<2x128xf32>
    %c0_16 = arith.constant 0 : index
    %c0_17 = arith.constant 0 : index
    %12 = vector.load %arg9[%c0_16, %c0_17] : memref<1x128xf32, #tpu.memory_space<vmem>>, vector<1x128xf32>
    %13 = vector.broadcast %12 : vector<1x128xf32> to vector<2x128xf32>
    %14 = arith.addf %11, %13 : vector<2x128xf32>
    %cst_18 = arith.constant 0.000000e+00 : f32
    %15 = vector.broadcast %cst_18 : f32 to vector<2x128xf32>
    %16 = arith.maximumf %14, %15 : vector<2x128xf32>
    %17 = math.absf %14 : vector<2x128xf32>
    %cst_19 = arith.constant 0.000000e+00 : f32
    %18 = vector.broadcast %cst_19 : f32 to vector<2x128xf32>
    %19 = arith.subf %18, %17 : vector<2x128xf32>
    %20 = math.exp %19 : vector<2x128xf32>
    %cst_20 = arith.constant 1.000000e+00 : f32
    %21 = vector.broadcast %cst_20 : f32 to vector<2x128xf32>
    %22 = arith.addf %21, %20 : vector<2x128xf32>
    %23 = math.log %22 : vector<2x128xf32>
    %24 = arith.addf %16, %23 : vector<2x128xf32>
    %25 = math.tanh %24 : vector<2x128xf32>
    %26 = arith.mulf %14, %25 : vector<2x128xf32>
    %c0_21 = arith.constant 0 : index
    %c0_22 = arith.constant 0 : index
    %27 = vector.load %arg10[%c0_21, %c0_22] : memref<128x32xf32, #tpu.memory_space<vmem>>, vector<128x32xf32>
    %cst_23 = arith.constant dense<0.000000e+00> : vector<2x32xf32>
    %28 = tpu.matmul %26, %27, %cst_23 {dimension_numbers = #tpu.dot_dimension_numbers<[1], [0], [0], [1], [0, 0, 1, 1], [], []>} : vector<2x128xf32>, vector<128x32xf32>, vector<2x32xf32> -> vector<2x32xf32>
    %c0_24 = arith.constant 0 : index
    %c0_25 = arith.constant 0 : index
    %29 = vector.load %arg11[%c0_24, %c0_25] : memref<1x32xf32, #tpu.memory_space<vmem>>, vector<1x32xf32>
    %30 = vector.broadcast %29 : vector<1x32xf32> to vector<2x32xf32>
    %31 = arith.addf %28, %30 : vector<2x32xf32>
    %cst_26 = arith.constant 0.000000e+00 : f32
    %32 = vector.broadcast %cst_26 : f32 to vector<2x32xf32>
    %33 = arith.maximumf %31, %32 : vector<2x32xf32>
    %34 = math.absf %31 : vector<2x32xf32>
    %cst_27 = arith.constant 0.000000e+00 : f32
    %35 = vector.broadcast %cst_27 : f32 to vector<2x32xf32>
    %36 = arith.subf %35, %34 : vector<2x32xf32>
    %37 = math.exp %36 : vector<2x32xf32>
    %cst_28 = arith.constant 1.000000e+00 : f32
    %38 = vector.broadcast %cst_28 : f32 to vector<2x32xf32>
    %39 = arith.addf %38, %37 : vector<2x32xf32>
    %40 = math.log %39 : vector<2x32xf32>
    %41 = arith.addf %33, %40 : vector<2x32xf32>
    %42 = math.tanh %41 : vector<2x32xf32>
    %43 = arith.mulf %31, %42 : vector<2x32xf32>
    %c0_29 = arith.constant 0 : index
    %c0_30 = arith.constant 0 : index
    %c0_31 = arith.constant 0 : index
    %44 = vector.load %arg20[%c0_29, %c0_30, %c0_31] : memref<2x32x64xf32, #tpu.memory_space<vmem>>, vector<1x32x64xf32>
    %45 = vector.shape_cast %44 : vector<1x32x64xf32> to vector<32x64xf32>
    %cst_32 = arith.constant dense<0.000000e+00> : vector<2x64xf32>
    %46 = tpu.matmul %43, %45, %cst_32 {dimension_numbers = #tpu.dot_dimension_numbers<[1], [0], [0], [1], [0, 0, 1, 1], [], []>} : vector<2x32xf32>, vector<32x64xf32>, vector<2x64xf32> -> vector<2x64xf32>
    %c0_33 = arith.constant 0 : index
    %c0_34 = arith.constant 0 : index
    %c0_35 = arith.constant 0 : index
    %47 = vector.load %arg21[%c0_33, %c0_34, %c0_35] : memref<2x1x64xf32, #tpu.memory_space<vmem>>, vector<1x1x64xf32>
    %48 = vector.shape_cast %47 : vector<1x1x64xf32> to vector<1x64xf32>
    %49 = vector.broadcast %48 : vector<1x64xf32> to vector<2x64xf32>
    %50 = arith.addf %46, %49 : vector<2x64xf32>
    %c0_36 = arith.constant 0 : index
    %c0_37 = arith.constant 0 : index
    %c0_38 = arith.constant 0 : index
    %51 = vector.load %arg28[%c0_36, %c0_37, %c0_38] : memref<2x32x64xf32, #tpu.memory_space<vmem>>, vector<1x32x64xf32>
    %52 = vector.shape_cast %51 : vector<1x32x64xf32> to vector<32x64xf32>
    %cst_39 = arith.constant dense<0.000000e+00> : vector<2x64xf32>
    %53 = tpu.matmul %43, %52, %cst_39 {dimension_numbers = #tpu.dot_dimension_numbers<[1], [0], [0], [1], [0, 0, 1, 1], [], []>} : vector<2x32xf32>, vector<32x64xf32>, vector<2x64xf32> -> vector<2x64xf32>
    %c0_40 = arith.constant 0 : index
    %c0_41 = arith.constant 0 : index
    %c0_42 = arith.constant 0 : index
    %54 = vector.load %arg29[%c0_40, %c0_41, %c0_42] : memref<2x1x64xf32, #tpu.memory_space<vmem>>, vector<1x1x64xf32>
    %55 = vector.shape_cast %54 : vector<1x1x64xf32> to vector<1x64xf32>
    %56 = vector.broadcast %55 : vector<1x64xf32> to vector<2x64xf32>
    %57 = arith.addf %53, %56 : vector<2x64xf32>
    %58 = vector.extract_strided_slice %50 {offsets = [0, 0], sizes = [2, 32], strides = [1, 1]} : vector<2x64xf32> to vector<2x32xf32>
    %59 = vector.shape_cast %58 : vector<2x32xf32> to vector<2x1x32xf32>
    %60 = vector.shape_cast %59 : vector<2x1x32xf32> to vector<2x1x32xf32>
    %61 = vector.broadcast %60 : vector<2x1x32xf32> to vector<2x8x32xf32>
    %62 = vector.shape_cast %61 : vector<2x8x32xf32> to vector<16x32xf32>
    %63 = vector.extract_strided_slice %50 {offsets = [0, 32], sizes = [2, 32], strides = [1, 1]} : vector<2x64xf32> to vector<2x32xf32>
    %64 = vector.shape_cast %63 : vector<2x32xf32> to vector<2x1x32xf32>
    %65 = vector.shape_cast %64 : vector<2x1x32xf32> to vector<2x1x32xf32>
    %66 = vector.broadcast %65 : vector<2x1x32xf32> to vector<2x8x32xf32>
    %67 = vector.shape_cast %66 : vector<2x8x32xf32> to vector<16x32xf32>
    %68 = vector.extract_strided_slice %57 {offsets = [0, 0], sizes = [2, 32], strides = [1, 1]} : vector<2x64xf32> to vector<2x32xf32>
    %69 = vector.shape_cast %68 : vector<2x32xf32> to vector<2x1x32xf32>
    %70 = vector.shape_cast %69 : vector<2x1x32xf32> to vector<2x1x32xf32>
    %71 = vector.broadcast %70 : vector<2x1x32xf32> to vector<2x8x32xf32>
    %72 = vector.shape_cast %71 : vector<2x8x32xf32> to vector<16x32xf32>
    %73 = vector.extract_strided_slice %57 {offsets = [0, 32], sizes = [2, 32], strides = [1, 1]} : vector<2x64xf32> to vector<2x32xf32>
    %74 = vector.shape_cast %73 : vector<2x32xf32> to vector<2x1x32xf32>
    %75 = vector.shape_cast %74 : vector<2x1x32xf32> to vector<2x1x32xf32>
    %76 = vector.broadcast %75 : vector<2x1x32xf32> to vector<2x8x32xf32>
    %77 = vector.shape_cast %76 : vector<2x8x32xf32> to vector<16x32xf32>
    %c0_43 = arith.constant 0 : index
    %c0_44 = arith.constant 0 : index
    %c0_45 = arith.constant 0 : index
    %78 = vector.load %arg14[%c0_43, %c0_44, %c0_45] : memref<2x1x32xf32, #tpu.memory_space<vmem>>, vector<1x1x32xf32>
    %79 = vector.shape_cast %78 : vector<1x1x32xf32> to vector<1x32xf32>
    %c0_46 = arith.constant 0 : index
    %c0_47 = arith.constant 0 : index
    %c0_48 = arith.constant 0 : index
    %80 = vector.load %arg15[%c0_46, %c0_47, %c0_48] : memref<2x1x32xf32, #tpu.memory_space<vmem>>, vector<1x1x32xf32>
    %81 = vector.shape_cast %80 : vector<1x1x32xf32> to vector<1x32xf32>
    %cst_49 = arith.constant dense<0.000000e+00> : vector<16xf32>
    %82 = vector.multi_reduction <add>, %8, %cst_49 [1] : vector<16x32xf32> to vector<16xf32>
    %83 = vector.shape_cast %82 : vector<16xf32> to vector<16x1xf32>
    %cst_50 = arith.constant 3.200000e+01 : f32
    %84 = vector.broadcast %cst_50 : f32 to vector<16x1xf32>
    %85 = arith.divf %83, %84 : vector<16x1xf32>
    %86 = vector.broadcast %85 : vector<16x1xf32> to vector<16x32xf32>
    %87 = arith.subf %8, %86 : vector<16x32xf32>
    %88 = arith.mulf %87, %87 : vector<16x32xf32>
    %cst_51 = arith.constant dense<0.000000e+00> : vector<16xf32>
    %89 = vector.multi_reduction <add>, %88, %cst_51 [1] : vector<16x32xf32> to vector<16xf32>
    %90 = vector.shape_cast %89 : vector<16xf32> to vector<16x1xf32>
    %cst_52 = arith.constant 3.200000e+01 : f32
    %91 = vector.broadcast %cst_52 : f32 to vector<16x1xf32>
    %92 = arith.divf %90, %91 : vector<16x1xf32>
    %93 = vector.broadcast %85 : vector<16x1xf32> to vector<16x32xf32>
    %94 = arith.subf %8, %93 : vector<16x32xf32>
    %cst_53 = arith.constant 9.99999974E-6 : f32
    %95 = vector.broadcast %cst_53 : f32 to vector<16x1xf32>
    %96 = arith.addf %92, %95 : vector<16x1xf32>
    %97 = math.rsqrt %96 : vector<16x1xf32>
    %98 = vector.broadcast %97 : vector<16x1xf32> to vector<16x32xf32>
    %99 = arith.mulf %94, %98 : vector<16x32xf32>
    %100 = vector.broadcast %79 : vector<1x32xf32> to vector<16x32xf32>
    %101 = arith.mulf %99, %100 : vector<16x32xf32>
    %102 = vector.broadcast %81 : vector<1x32xf32> to vector<16x32xf32>
    %103 = arith.addf %101, %102 : vector<16x32xf32>
    %104 = arith.mulf %103, %0 : vector<16x32xf32>
    %cst_54 = arith.constant dense<0.000000e+00> : vector<16x32xf32>
    %105 = tpu.matmul %103, %2, %cst_54 {dimension_numbers = #tpu.dot_dimension_numbers<[1], [0], [0], [1], [0, 0, 1, 1], [], []>} : vector<16x32xf32>, vector<32x32xf32>, vector<16x32xf32> -> vector<16x32xf32>
    %106 = arith.mulf %105, %1 : vector<16x32xf32>
    %107 = arith.addf %104, %106 : vector<16x32xf32>
    %108 = tpu.concatenate %107, %103 in 0 : vector<16x32xf32>, vector<16x32xf32> -> vector<32x32xf32>
    %c0_55 = arith.constant 0 : index
    %c0_56 = arith.constant 0 : index
    %c0_57 = arith.constant 0 : index
    %109 = vector.load %arg16[%c0_55, %c0_56, %c0_57] : memref<2x32x96xf32, #tpu.memory_space<vmem>>, vector<1x32x96xf32>
    %110 = vector.shape_cast %109 : vector<1x32x96xf32> to vector<32x96xf32>
    %cst_58 = arith.constant dense<0.000000e+00> : vector<32x96xf32>
    %111 = tpu.matmul %108, %110, %cst_58 {dimension_numbers = #tpu.dot_dimension_numbers<[1], [0], [0], [1], [0, 0, 1, 1], [], []>} : vector<32x32xf32>, vector<32x96xf32>, vector<32x96xf32> -> vector<32x96xf32>
    %c0_59 = arith.constant 0 : index
    %c0_60 = arith.constant 0 : index
    %c0_61 = arith.constant 0 : index
    %112 = vector.load %arg17[%c0_59, %c0_60, %c0_61] : memref<2x1x96xf32, #tpu.memory_space<vmem>>, vector<1x1x96xf32>
    %113 = vector.shape_cast %112 : vector<1x1x96xf32> to vector<1x96xf32>
    %114 = vector.broadcast %113 : vector<1x96xf32> to vector<32x96xf32>
    %115 = arith.addf %111, %114 : vector<32x96xf32>
    %116 = vector.extract_strided_slice %115 {offsets = [0, 0], sizes = [16, 32], strides = [1, 1]} : vector<32x96xf32> to vector<16x32xf32>
    %cst_62 = arith.constant 0.353553385 : f32
    %117 = vector.broadcast %cst_62 : f32 to vector<16x32xf32>
    %118 = arith.mulf %116, %117 : vector<16x32xf32>
    %119 = vector.extract_strided_slice %115 {offsets = [0, 32], sizes = [16, 32], strides = [1, 1]} : vector<32x96xf32> to vector<16x32xf32>
    %120 = vector.extract_strided_slice %115 {offsets = [16, 64], sizes = [16, 32], strides = [1, 1]} : vector<32x96xf32> to vector<16x32xf32>
    %121 = vector.shape_cast %118 : vector<16x32xf32> to vector<2x8x32xf32>
    %122 = vector.shape_cast %119 : vector<16x32xf32> to vector<2x8x32xf32>
    %123 = vector.shape_cast %120 : vector<16x32xf32> to vector<2x8x32xf32>
    %c0_63 = arith.constant 0 : index
    %c0_64 = arith.constant 0 : index
    %c0_65 = arith.constant 0 : index
    %124 = vector.load %arg18[%c0_63, %c0_64, %c0_65] : memref<2x32x32xf32, #tpu.memory_space<vmem>>, vector<1x32x32xf32>
    %125 = vector.shape_cast %124 : vector<1x32x32xf32> to vector<32x32xf32>
    %cst_66 = arith.constant 0.000000e+00 : f32
    %126 = vector.broadcast %cst_66 : f32 to vector<16x32xf32>
    %127 = vector.extract_strided_slice %121 {offsets = [0, 0, 0], sizes = [2, 8, 8], strides = [1, 1, 1]} : vector<2x8x32xf32> to vector<2x8x8xf32>
    %128 = vector.extract_strided_slice %122 {offsets = [0, 0, 0], sizes = [2, 8, 8], strides = [1, 1, 1]} : vector<2x8x32xf32> to vector<2x8x8xf32>
    %129 = vector.extract_strided_slice %123 {offsets = [0, 0, 0], sizes = [2, 8, 8], strides = [1, 1, 1]} : vector<2x8x32xf32> to vector<2x8x8xf32>
    "tpu.trace_start"() <{level = 10 : i32, message = "bqd,bkd->bqk"}> : () -> ()
    %cst_67 = arith.constant dense<0.000000e+00> : vector<2x8x8xf32>
    %130 = tpu.matmul %127, %128, %cst_67 {dimension_numbers = #tpu.dot_dimension_numbers<[2], [2], [1], [1], [0, 0, 0, 1, 1, 1], [0], [0]>} : vector<2x8x8xf32>, vector<2x8x8xf32>, vector<2x8x8xf32> -> vector<2x8x8xf32>
    "tpu.trace_stop"() : () -> ()
    %cst_68 = arith.constant dense<0xFF800000> : vector<2x8xf32>
    %131 = vector.multi_reduction <maximumf>, %130, %cst_68 [2] : vector<2x8x8xf32> to vector<2x8xf32>
    %132 = vector.shape_cast %131 : vector<2x8xf32> to vector<2x8x1xf32>
    %133 = vector.broadcast %132 : vector<2x8x1xf32> to vector<2x8x8xf32>
    %134 = arith.subf %130, %133 : vector<2x8x8xf32>
    %135 = math.exp %134 : vector<2x8x8xf32>
    %cst_69 = arith.constant dense<0.000000e+00> : vector<2x8xf32>
    %136 = vector.multi_reduction <add>, %135, %cst_69 [2] : vector<2x8x8xf32> to vector<2x8xf32>
    %137 = vector.shape_cast %136 : vector<2x8xf32> to vector<2x8x1xf32>
    %138 = tpu.reciprocal %137 {approx = true} : vector<2x8x1xf32> -> vector<2x8x1xf32>
    %139 = vector.broadcast %138 : vector<2x8x1xf32> to vector<2x8x8xf32>
    %140 = arith.mulf %135, %139 : vector<2x8x8xf32>
    "tpu.trace_start"() <{level = 10 : i32, message = "bqk,bkd->bqd"}> : () -> ()
    %cst_70 = arith.constant dense<0.000000e+00> : vector<2x8x8xf32>
    %141 = tpu.matmul %140, %129, %cst_70 {dimension_numbers = #tpu.dot_dimension_numbers<[2], [1], [1], [2], [0, 0, 0, 1, 1, 2], [0], [0]>} : vector<2x8x8xf32>, vector<2x8x8xf32>, vector<2x8x8xf32> -> vector<2x8x8xf32>
    "tpu.trace_stop"() : () -> ()
    %142 = vector.shape_cast %141 : vector<2x8x8xf32> to vector<16x8xf32>
    %143 = vector.extract_strided_slice %125 {offsets = [0, 0], sizes = [8, 32], strides = [1, 1]} : vector<32x32xf32> to vector<8x32xf32>
    %cst_71 = arith.constant dense<0.000000e+00> : vector<16x32xf32>
    %144 = tpu.matmul %142, %143, %cst_71 {dimension_numbers = #tpu.dot_dimension_numbers<[1], [0], [0], [1], [0, 0, 1, 1], [], []>} : vector<16x8xf32>, vector<8x32xf32>, vector<16x32xf32> -> vector<16x32xf32>
    %145 = arith.addf %126, %144 : vector<16x32xf32>
    %146 = vector.extract_strided_slice %121 {offsets = [0, 0, 8], sizes = [2, 8, 8], strides = [1, 1, 1]} : vector<2x8x32xf32> to vector<2x8x8xf32>
    %147 = vector.extract_strided_slice %122 {offsets = [0, 0, 8], sizes = [2, 8, 8], strides = [1, 1, 1]} : vector<2x8x32xf32> to vector<2x8x8xf32>
    %148 = vector.extract_strided_slice %123 {offsets = [0, 0, 8], sizes = [2, 8, 8], strides = [1, 1, 1]} : vector<2x8x32xf32> to vector<2x8x8xf32>
    "tpu.trace_start"() <{level = 10 : i32, message = "bqd,bkd->bqk"}> : () -> ()
    %cst_72 = arith.constant dense<0.000000e+00> : vector<2x8x8xf32>
    %149 = tpu.matmul %146, %147, %cst_72 {dimension_numbers = #tpu.dot_dimension_numbers<[2], [2], [1], [1], [0, 0, 0, 1, 1, 1], [0], [0]>} : vector<2x8x8xf32>, vector<2x8x8xf32>, vector<2x8x8xf32> -> vector<2x8x8xf32>
    "tpu.trace_stop"() : () -> ()
    %cst_73 = arith.constant dense<0xFF800000> : vector<2x8xf32>
    %150 = vector.multi_reduction <maximumf>, %149, %cst_73 [2] : vector<2x8x8xf32> to vector<2x8xf32>
    %151 = vector.shape_cast %150 : vector<2x8xf32> to vector<2x8x1xf32>
    %152 = vector.broadcast %151 : vector<2x8x1xf32> to vector<2x8x8xf32>
    %153 = arith.subf %149, %152 : vector<2x8x8xf32>
    %154 = math.exp %153 : vector<2x8x8xf32>
    %cst_74 = arith.constant dense<0.000000e+00> : vector<2x8xf32>
    %155 = vector.multi_reduction <add>, %154, %cst_74 [2] : vector<2x8x8xf32> to vector<2x8xf32>
    %156 = vector.shape_cast %155 : vector<2x8xf32> to vector<2x8x1xf32>
    %157 = tpu.reciprocal %156 {approx = true} : vector<2x8x1xf32> -> vector<2x8x1xf32>
    %158 = vector.broadcast %157 : vector<2x8x1xf32> to vector<2x8x8xf32>
    %159 = arith.mulf %154, %158 : vector<2x8x8xf32>
    "tpu.trace_start"() <{level = 10 : i32, message = "bqk,bkd->bqd"}> : () -> ()
    %cst_75 = arith.constant dense<0.000000e+00> : vector<2x8x8xf32>
    %160 = tpu.matmul %159, %148, %cst_75 {dimension_numbers = #tpu.dot_dimension_numbers<[2], [1], [1], [2], [0, 0, 0, 1, 1, 2], [0], [0]>} : vector<2x8x8xf32>, vector<2x8x8xf32>, vector<2x8x8xf32> -> vector<2x8x8xf32>
    "tpu.trace_stop"() : () -> ()
    %161 = vector.shape_cast %160 : vector<2x8x8xf32> to vector<16x8xf32>
    %162 = vector.extract_strided_slice %125 {offsets = [8, 0], sizes = [8, 32], strides = [1, 1]} : vector<32x32xf32> to vector<8x32xf32>
    %cst_76 = arith.constant dense<0.000000e+00> : vector<16x32xf32>
    %163 = tpu.matmul %161, %162, %cst_76 {dimension_numbers = #tpu.dot_dimension_numbers<[1], [0], [0], [1], [0, 0, 1, 1], [], []>} : vector<16x8xf32>, vector<8x32xf32>, vector<16x32xf32> -> vector<16x32xf32>
    %164 = arith.addf %145, %163 : vector<16x32xf32>
    %165 = vector.extract_strided_slice %121 {offsets = [0, 0, 16], sizes = [2, 8, 8], strides = [1, 1, 1]} : vector<2x8x32xf32> to vector<2x8x8xf32>
    %166 = vector.extract_strided_slice %122 {offsets = [0, 0, 16], sizes = [2, 8, 8], strides = [1, 1, 1]} : vector<2x8x32xf32> to vector<2x8x8xf32>
    %167 = vector.extract_strided_slice %123 {offsets = [0, 0, 16], sizes = [2, 8, 8], strides = [1, 1, 1]} : vector<2x8x32xf32> to vector<2x8x8xf32>
    "tpu.trace_start"() <{level = 10 : i32, message = "bqd,bkd->bqk"}> : () -> ()
    %cst_77 = arith.constant dense<0.000000e+00> : vector<2x8x8xf32>
    %168 = tpu.matmul %165, %166, %cst_77 {dimension_numbers = #tpu.dot_dimension_numbers<[2], [2], [1], [1], [0, 0, 0, 1, 1, 1], [0], [0]>} : vector<2x8x8xf32>, vector<2x8x8xf32>, vector<2x8x8xf32> -> vector<2x8x8xf32>
    "tpu.trace_stop"() : () -> ()
    %cst_78 = arith.constant dense<0xFF800000> : vector<2x8xf32>
    %169 = vector.multi_reduction <maximumf>, %168, %cst_78 [2] : vector<2x8x8xf32> to vector<2x8xf32>
    %170 = vector.shape_cast %169 : vector<2x8xf32> to vector<2x8x1xf32>
    %171 = vector.broadcast %170 : vector<2x8x1xf32> to vector<2x8x8xf32>
    %172 = arith.subf %168, %171 : vector<2x8x8xf32>
    %173 = math.exp %172 : vector<2x8x8xf32>
    %cst_79 = arith.constant dense<0.000000e+00> : vector<2x8xf32>
    %174 = vector.multi_reduction <add>, %173, %cst_79 [2] : vector<2x8x8xf32> to vector<2x8xf32>
    %175 = vector.shape_cast %174 : vector<2x8xf32> to vector<2x8x1xf32>
    %176 = tpu.reciprocal %175 {approx = true} : vector<2x8x1xf32> -> vector<2x8x1xf32>
    %177 = vector.broadcast %176 : vector<2x8x1xf32> to vector<2x8x8xf32>
    %178 = arith.mulf %173, %177 : vector<2x8x8xf32>
    "tpu.trace_start"() <{level = 10 : i32, message = "bqk,bkd->bqd"}> : () -> ()
    %cst_80 = arith.constant dense<0.000000e+00> : vector<2x8x8xf32>
    %179 = tpu.matmul %178, %167, %cst_80 {dimension_numbers = #tpu.dot_dimension_numbers<[2], [1], [1], [2], [0, 0, 0, 1, 1, 2], [0], [0]>} : vector<2x8x8xf32>, vector<2x8x8xf32>, vector<2x8x8xf32> -> vector<2x8x8xf32>
    "tpu.trace_stop"() : () -> ()
    %180 = vector.shape_cast %179 : vector<2x8x8xf32> to vector<16x8xf32>
    %181 = vector.extract_strided_slice %125 {offsets = [16, 0], sizes = [8, 32], strides = [1, 1]} : vector<32x32xf32> to vector<8x32xf32>
    %cst_81 = arith.constant dense<0.000000e+00> : vector<16x32xf32>
    %182 = tpu.matmul %180, %181, %cst_81 {dimension_numbers = #tpu.dot_dimension_numbers<[1], [0], [0], [1], [0, 0, 1, 1], [], []>} : vector<16x8xf32>, vector<8x32xf32>, vector<16x32xf32> -> vector<16x32xf32>
    %183 = arith.addf %164, %182 : vector<16x32xf32>
    %184 = vector.extract_strided_slice %121 {offsets = [0, 0, 24], sizes = [2, 8, 8], strides = [1, 1, 1]} : vector<2x8x32xf32> to vector<2x8x8xf32>
    %185 = vector.extract_strided_slice %122 {offsets = [0, 0, 24], sizes = [2, 8, 8], strides = [1, 1, 1]} : vector<2x8x32xf32> to vector<2x8x8xf32>
    %186 = vector.extract_strided_slice %123 {offsets = [0, 0, 24], sizes = [2, 8, 8], strides = [1, 1, 1]} : vector<2x8x32xf32> to vector<2x8x8xf32>
    "tpu.trace_start"() <{level = 10 : i32, message = "bqd,bkd->bqk"}> : () -> ()
    %cst_82 = arith.constant dense<0.000000e+00> : vector<2x8x8xf32>
    %187 = tpu.matmul %184, %185, %cst_82 {dimension_numbers = #tpu.dot_dimension_numbers<[2], [2], [1], [1], [0, 0, 0, 1, 1, 1], [0], [0]>} : vector<2x8x8xf32>, vector<2x8x8xf32>, vector<2x8x8xf32> -> vector<2x8x8xf32>
    "tpu.trace_stop"() : () -> ()
    %cst_83 = arith.constant dense<0xFF800000> : vector<2x8xf32>
    %188 = vector.multi_reduction <maximumf>, %187, %cst_83 [2] : vector<2x8x8xf32> to vector<2x8xf32>
    %189 = vector.shape_cast %188 : vector<2x8xf32> to vector<2x8x1xf32>
    %190 = vector.broadcast %189 : vector<2x8x1xf32> to vector<2x8x8xf32>
    %191 = arith.subf %187, %190 : vector<2x8x8xf32>
    %192 = math.exp %191 : vector<2x8x8xf32>
    %cst_84 = arith.constant dense<0.000000e+00> : vector<2x8xf32>
    %193 = vector.multi_reduction <add>, %192, %cst_84 [2] : vector<2x8x8xf32> to vector<2x8xf32>
    %194 = vector.shape_cast %193 : vector<2x8xf32> to vector<2x8x1xf32>
    %195 = tpu.reciprocal %194 {approx = true} : vector<2x8x1xf32> -> vector<2x8x1xf32>
    %196 = vector.broadcast %195 : vector<2x8x1xf32> to vector<2x8x8xf32>
    %197 = arith.mulf %192, %196 : vector<2x8x8xf32>
    "tpu.trace_start"() <{level = 10 : i32, message = "bqk,bkd->bqd"}> : () -> ()
    %cst_85 = arith.constant dense<0.000000e+00> : vector<2x8x8xf32>
    %198 = tpu.matmul %197, %186, %cst_85 {dimension_numbers = #tpu.dot_dimension_numbers<[2], [1], [1], [2], [0, 0, 0, 1, 1, 2], [0], [0]>} : vector<2x8x8xf32>, vector<2x8x8xf32>, vector<2x8x8xf32> -> vector<2x8x8xf32>
    "tpu.trace_stop"() : () -> ()
    %199 = vector.shape_cast %198 : vector<2x8x8xf32> to vector<16x8xf32>
    %200 = vector.extract_strided_slice %125 {offsets = [24, 0], sizes = [8, 32], strides = [1, 1]} : vector<32x32xf32> to vector<8x32xf32>
    %cst_86 = arith.constant dense<0.000000e+00> : vector<16x32xf32>
    %201 = tpu.matmul %199, %200, %cst_86 {dimension_numbers = #tpu.dot_dimension_numbers<[1], [0], [0], [1], [0, 0, 1, 1], [], []>} : vector<16x8xf32>, vector<8x32xf32>, vector<16x32xf32> -> vector<16x32xf32>
    %202 = arith.addf %183, %201 : vector<16x32xf32>
    %c0_87 = arith.constant 0 : index
    %c0_88 = arith.constant 0 : index
    %c0_89 = arith.constant 0 : index
    %203 = vector.load %arg19[%c0_87, %c0_88, %c0_89] : memref<2x1x32xf32, #tpu.memory_space<vmem>>, vector<1x1x32xf32>
    %204 = vector.shape_cast %203 : vector<1x1x32xf32> to vector<1x32xf32>
    %205 = vector.broadcast %204 : vector<1x32xf32> to vector<16x32xf32>
    %206 = arith.addf %202, %205 : vector<16x32xf32>
    %cst_90 = arith.constant 1.000000e+00 : f32
    %207 = vector.broadcast %cst_90 : f32 to vector<16x32xf32>
    %208 = arith.addf %62, %207 : vector<16x32xf32>
    %209 = arith.mulf %208, %206 : vector<16x32xf32>
    %210 = arith.addf %8, %209 : vector<16x32xf32>
    %211 = arith.addf %210, %67 : vector<16x32xf32>
    %c0_91 = arith.constant 0 : index
    %c0_92 = arith.constant 0 : index
    %c0_93 = arith.constant 0 : index
    %212 = vector.load %arg22[%c0_91, %c0_92, %c0_93] : memref<2x1x32xf32, #tpu.memory_space<vmem>>, vector<1x1x32xf32>
    %213 = vector.shape_cast %212 : vector<1x1x32xf32> to vector<1x32xf32>
    %c0_94 = arith.constant 0 : index
    %c0_95 = arith.constant 0 : index
    %c0_96 = arith.constant 0 : index
    %214 = vector.load %arg23[%c0_94, %c0_95, %c0_96] : memref<2x1x32xf32, #tpu.memory_space<vmem>>, vector<1x1x32xf32>
    %215 = vector.shape_cast %214 : vector<1x1x32xf32> to vector<1x32xf32>
    %cst_97 = arith.constant dense<0.000000e+00> : vector<16xf32>
    %216 = vector.multi_reduction <add>, %211, %cst_97 [1] : vector<16x32xf32> to vector<16xf32>
    %217 = vector.shape_cast %216 : vector<16xf32> to vector<16x1xf32>
    %cst_98 = arith.constant 3.200000e+01 : f32
    %218 = vector.broadcast %cst_98 : f32 to vector<16x1xf32>
    %219 = arith.divf %217, %218 : vector<16x1xf32>
    %220 = vector.broadcast %219 : vector<16x1xf32> to vector<16x32xf32>
    %221 = arith.subf %211, %220 : vector<16x32xf32>
    %222 = arith.mulf %221, %221 : vector<16x32xf32>
    %cst_99 = arith.constant dense<0.000000e+00> : vector<16xf32>
    %223 = vector.multi_reduction <add>, %222, %cst_99 [1] : vector<16x32xf32> to vector<16xf32>
    %224 = vector.shape_cast %223 : vector<16xf32> to vector<16x1xf32>
    %cst_100 = arith.constant 3.200000e+01 : f32
    %225 = vector.broadcast %cst_100 : f32 to vector<16x1xf32>
    %226 = arith.divf %224, %225 : vector<16x1xf32>
    %227 = vector.broadcast %219 : vector<16x1xf32> to vector<16x32xf32>
    %228 = arith.subf %211, %227 : vector<16x32xf32>
    %cst_101 = arith.constant 9.99999974E-6 : f32
    %229 = vector.broadcast %cst_101 : f32 to vector<16x1xf32>
    %230 = arith.addf %226, %229 : vector<16x1xf32>
    %231 = math.rsqrt %230 : vector<16x1xf32>
    %232 = vector.broadcast %231 : vector<16x1xf32> to vector<16x32xf32>
    %233 = arith.mulf %228, %232 : vector<16x32xf32>
    %234 = vector.broadcast %213 : vector<1x32xf32> to vector<16x32xf32>
    %235 = arith.mulf %233, %234 : vector<16x32xf32>
    %236 = vector.broadcast %215 : vector<1x32xf32> to vector<16x32xf32>
    %237 = arith.addf %235, %236 : vector<16x32xf32>
    %c0_102 = arith.constant 0 : index
    %c0_103 = arith.constant 0 : index
    %c0_104 = arith.constant 0 : index
    %238 = vector.load %arg24[%c0_102, %c0_103, %c0_104] : memref<2x32x64xf32, #tpu.memory_space<vmem>>, vector<1x32x64xf32>
    %239 = vector.shape_cast %238 : vector<1x32x64xf32> to vector<32x64xf32>
    %cst_105 = arith.constant dense<0.000000e+00> : vector<16x64xf32>
    %240 = tpu.matmul %237, %239, %cst_105 {dimension_numbers = #tpu.dot_dimension_numbers<[1], [0], [0], [1], [0, 0, 1, 1], [], []>} : vector<16x32xf32>, vector<32x64xf32>, vector<16x64xf32> -> vector<16x64xf32>
    %c0_106 = arith.constant 0 : index
    %c0_107 = arith.constant 0 : index
    %c0_108 = arith.constant 0 : index
    %241 = vector.load %arg25[%c0_106, %c0_107, %c0_108] : memref<2x1x64xf32, #tpu.memory_space<vmem>>, vector<1x1x64xf32>
    %242 = vector.shape_cast %241 : vector<1x1x64xf32> to vector<1x64xf32>
    %243 = vector.broadcast %242 : vector<1x64xf32> to vector<16x64xf32>
    %244 = arith.addf %240, %243 : vector<16x64xf32>
    %cst_109 = arith.constant 5.000000e-01 : f32
    %245 = vector.broadcast %cst_109 : f32 to vector<16x64xf32>
    %246 = arith.mulf %245, %244 : vector<16x64xf32>
    %cst_110 = arith.constant 4.471500e-02 : f32
    %247 = vector.broadcast %cst_110 : f32 to vector<16x64xf32>
    %248 = arith.mulf %247, %244 : vector<16x64xf32>
    %249 = arith.mulf %248, %244 : vector<16x64xf32>
    %250 = arith.mulf %249, %244 : vector<16x64xf32>
    %251 = arith.addf %244, %250 : vector<16x64xf32>
    %cst_111 = arith.constant 0.797884583 : f32
    %252 = vector.broadcast %cst_111 : f32 to vector<16x64xf32>
    %253 = arith.mulf %252, %251 : vector<16x64xf32>
    %254 = math.tanh %253 : vector<16x64xf32>
    %cst_112 = arith.constant 1.000000e+00 : f32
    %255 = vector.broadcast %cst_112 : f32 to vector<16x64xf32>
    %256 = arith.addf %255, %254 : vector<16x64xf32>
    %257 = arith.mulf %246, %256 : vector<16x64xf32>
    %c0_113 = arith.constant 0 : index
    %c0_114 = arith.constant 0 : index
    %c0_115 = arith.constant 0 : index
    %258 = vector.load %arg26[%c0_113, %c0_114, %c0_115] : memref<2x64x32xf32, #tpu.memory_space<vmem>>, vector<1x64x32xf32>
    %259 = vector.shape_cast %258 : vector<1x64x32xf32> to vector<64x32xf32>
    %cst_116 = arith.constant dense<0.000000e+00> : vector<16x32xf32>
    %260 = tpu.matmul %257, %259, %cst_116 {dimension_numbers = #tpu.dot_dimension_numbers<[1], [0], [0], [1], [0, 0, 1, 1], [], []>} : vector<16x64xf32>, vector<64x32xf32>, vector<16x32xf32> -> vector<16x32xf32>
    %c0_117 = arith.constant 0 : index
    %c0_118 = arith.constant 0 : index
    %c0_119 = arith.constant 0 : index
    %261 = vector.load %arg27[%c0_117, %c0_118, %c0_119] : memref<2x1x32xf32, #tpu.memory_space<vmem>>, vector<1x1x32xf32>
    %262 = vector.shape_cast %261 : vector<1x1x32xf32> to vector<1x32xf32>
    %263 = vector.broadcast %262 : vector<1x32xf32> to vector<16x32xf32>
    %264 = arith.addf %260, %263 : vector<16x32xf32>
    %cst_120 = arith.constant 1.000000e+00 : f32
    %265 = vector.broadcast %cst_120 : f32 to vector<16x32xf32>
    %266 = arith.addf %72, %265 : vector<16x32xf32>
    %267 = arith.mulf %266, %264 : vector<16x32xf32>
    %268 = arith.addf %211, %267 : vector<16x32xf32>
    %269 = arith.addf %268, %77 : vector<16x32xf32>
    %c1 = arith.constant 1 : index
    %c0_121 = arith.constant 0 : index
    %c0_122 = arith.constant 0 : index
    %270 = vector.load %arg20[%c1, %c0_121, %c0_122] : memref<2x32x64xf32, #tpu.memory_space<vmem>>, vector<1x32x64xf32>
    %271 = vector.shape_cast %270 : vector<1x32x64xf32> to vector<32x64xf32>
    %cst_123 = arith.constant dense<0.000000e+00> : vector<2x64xf32>
    %272 = tpu.matmul %43, %271, %cst_123 {dimension_numbers = #tpu.dot_dimension_numbers<[1], [0], [0], [1], [0, 0, 1, 1], [], []>} : vector<2x32xf32>, vector<32x64xf32>, vector<2x64xf32> -> vector<2x64xf32>
    %c1_124 = arith.constant 1 : index
    %c0_125 = arith.constant 0 : index
    %c0_126 = arith.constant 0 : index
    %273 = vector.load %arg21[%c1_124, %c0_125, %c0_126] : memref<2x1x64xf32, #tpu.memory_space<vmem>>, vector<1x1x64xf32>
    %274 = vector.shape_cast %273 : vector<1x1x64xf32> to vector<1x64xf32>
    %275 = vector.broadcast %274 : vector<1x64xf32> to vector<2x64xf32>
    %276 = arith.addf %272, %275 : vector<2x64xf32>
    %c1_127 = arith.constant 1 : index
    %c0_128 = arith.constant 0 : index
    %c0_129 = arith.constant 0 : index
    %277 = vector.load %arg28[%c1_127, %c0_128, %c0_129] : memref<2x32x64xf32, #tpu.memory_space<vmem>>, vector<1x32x64xf32>
    %278 = vector.shape_cast %277 : vector<1x32x64xf32> to vector<32x64xf32>
    %cst_130 = arith.constant dense<0.000000e+00> : vector<2x64xf32>
    %279 = tpu.matmul %43, %278, %cst_130 {dimension_numbers = #tpu.dot_dimension_numbers<[1], [0], [0], [1], [0, 0, 1, 1], [], []>} : vector<2x32xf32>, vector<32x64xf32>, vector<2x64xf32> -> vector<2x64xf32>
    %c1_131 = arith.constant 1 : index
    %c0_132 = arith.constant 0 : index
    %c0_133 = arith.constant 0 : index
    %280 = vector.load %arg29[%c1_131, %c0_132, %c0_133] : memref<2x1x64xf32, #tpu.memory_space<vmem>>, vector<1x1x64xf32>
    %281 = vector.shape_cast %280 : vector<1x1x64xf32> to vector<1x64xf32>
    %282 = vector.broadcast %281 : vector<1x64xf32> to vector<2x64xf32>
    %283 = arith.addf %279, %282 : vector<2x64xf32>
    %284 = vector.extract_strided_slice %276 {offsets = [0, 0], sizes = [2, 32], strides = [1, 1]} : vector<2x64xf32> to vector<2x32xf32>
    %285 = vector.shape_cast %284 : vector<2x32xf32> to vector<2x1x32xf32>
    %286 = vector.shape_cast %285 : vector<2x1x32xf32> to vector<2x1x32xf32>
    %287 = vector.broadcast %286 : vector<2x1x32xf32> to vector<2x8x32xf32>
    %288 = vector.shape_cast %287 : vector<2x8x32xf32> to vector<16x32xf32>
    %289 = vector.extract_strided_slice %276 {offsets = [0, 32], sizes = [2, 32], strides = [1, 1]} : vector<2x64xf32> to vector<2x32xf32>
    %290 = vector.shape_cast %289 : vector<2x32xf32> to vector<2x1x32xf32>
    %291 = vector.shape_cast %290 : vector<2x1x32xf32> to vector<2x1x32xf32>
    %292 = vector.broadcast %291 : vector<2x1x32xf32> to vector<2x8x32xf32>
    %293 = vector.shape_cast %292 : vector<2x8x32xf32> to vector<16x32xf32>
    %294 = vector.extract_strided_slice %283 {offsets = [0, 0], sizes = [2, 32], strides = [1, 1]} : vector<2x64xf32> to vector<2x32xf32>
    %295 = vector.shape_cast %294 : vector<2x32xf32> to vector<2x1x32xf32>
    %296 = vector.shape_cast %295 : vector<2x1x32xf32> to vector<2x1x32xf32>
    %297 = vector.broadcast %296 : vector<2x1x32xf32> to vector<2x8x32xf32>
    %298 = vector.shape_cast %297 : vector<2x8x32xf32> to vector<16x32xf32>
    %299 = vector.extract_strided_slice %283 {offsets = [0, 32], sizes = [2, 32], strides = [1, 1]} : vector<2x64xf32> to vector<2x32xf32>
    %300 = vector.shape_cast %299 : vector<2x32xf32> to vector<2x1x32xf32>
    %301 = vector.shape_cast %300 : vector<2x1x32xf32> to vector<2x1x32xf32>
    %302 = vector.broadcast %301 : vector<2x1x32xf32> to vector<2x8x32xf32>
    %303 = vector.shape_cast %302 : vector<2x8x32xf32> to vector<16x32xf32>
    %c1_134 = arith.constant 1 : index
    %c0_135 = arith.constant 0 : index
    %c0_136 = arith.constant 0 : index
    %304 = vector.load %arg14[%c1_134, %c0_135, %c0_136] : memref<2x1x32xf32, #tpu.memory_space<vmem>>, vector<1x1x32xf32>
    %305 = vector.shape_cast %304 : vector<1x1x32xf32> to vector<1x32xf32>
    %c1_137 = arith.constant 1 : index
    %c0_138 = arith.constant 0 : index
    %c0_139 = arith.constant 0 : index
    %306 = vector.load %arg15[%c1_137, %c0_138, %c0_139] : memref<2x1x32xf32, #tpu.memory_space<vmem>>, vector<1x1x32xf32>
    %307 = vector.shape_cast %306 : vector<1x1x32xf32> to vector<1x32xf32>
    %cst_140 = arith.constant dense<0.000000e+00> : vector<16xf32>
    %308 = vector.multi_reduction <add>, %269, %cst_140 [1] : vector<16x32xf32> to vector<16xf32>
    %309 = vector.shape_cast %308 : vector<16xf32> to vector<16x1xf32>
    %cst_141 = arith.constant 3.200000e+01 : f32
    %310 = vector.broadcast %cst_141 : f32 to vector<16x1xf32>
    %311 = arith.divf %309, %310 : vector<16x1xf32>
    %312 = vector.broadcast %311 : vector<16x1xf32> to vector<16x32xf32>
    %313 = arith.subf %269, %312 : vector<16x32xf32>
    %314 = arith.mulf %313, %313 : vector<16x32xf32>
    %cst_142 = arith.constant dense<0.000000e+00> : vector<16xf32>
    %315 = vector.multi_reduction <add>, %314, %cst_142 [1] : vector<16x32xf32> to vector<16xf32>
    %316 = vector.shape_cast %315 : vector<16xf32> to vector<16x1xf32>
    %cst_143 = arith.constant 3.200000e+01 : f32
    %317 = vector.broadcast %cst_143 : f32 to vector<16x1xf32>
    %318 = arith.divf %316, %317 : vector<16x1xf32>
    %319 = vector.broadcast %311 : vector<16x1xf32> to vector<16x32xf32>
    %320 = arith.subf %269, %319 : vector<16x32xf32>
    %cst_144 = arith.constant 9.99999974E-6 : f32
    %321 = vector.broadcast %cst_144 : f32 to vector<16x1xf32>
    %322 = arith.addf %318, %321 : vector<16x1xf32>
    %323 = math.rsqrt %322 : vector<16x1xf32>
    %324 = vector.broadcast %323 : vector<16x1xf32> to vector<16x32xf32>
    %325 = arith.mulf %320, %324 : vector<16x32xf32>
    %326 = vector.broadcast %305 : vector<1x32xf32> to vector<16x32xf32>
    %327 = arith.mulf %325, %326 : vector<16x32xf32>
    %328 = vector.broadcast %307 : vector<1x32xf32> to vector<16x32xf32>
    %329 = arith.addf %327, %328 : vector<16x32xf32>
    %330 = arith.mulf %329, %0 : vector<16x32xf32>
    %cst_145 = arith.constant dense<0.000000e+00> : vector<16x32xf32>
    %331 = tpu.matmul %329, %2, %cst_145 {dimension_numbers = #tpu.dot_dimension_numbers<[1], [0], [0], [1], [0, 0, 1, 1], [], []>} : vector<16x32xf32>, vector<32x32xf32>, vector<16x32xf32> -> vector<16x32xf32>
    %332 = arith.mulf %331, %1 : vector<16x32xf32>
    %333 = arith.addf %330, %332 : vector<16x32xf32>
    %334 = tpu.concatenate %333, %329 in 0 : vector<16x32xf32>, vector<16x32xf32> -> vector<32x32xf32>
    %c1_146 = arith.constant 1 : index
    %c0_147 = arith.constant 0 : index
    %c0_148 = arith.constant 0 : index
    %335 = vector.load %arg16[%c1_146, %c0_147, %c0_148] : memref<2x32x96xf32, #tpu.memory_space<vmem>>, vector<1x32x96xf32>
    %336 = vector.shape_cast %335 : vector<1x32x96xf32> to vector<32x96xf32>
    %cst_149 = arith.constant dense<0.000000e+00> : vector<32x96xf32>
    %337 = tpu.matmul %334, %336, %cst_149 {dimension_numbers = #tpu.dot_dimension_numbers<[1], [0], [0], [1], [0, 0, 1, 1], [], []>} : vector<32x32xf32>, vector<32x96xf32>, vector<32x96xf32> -> vector<32x96xf32>
    %c1_150 = arith.constant 1 : index
    %c0_151 = arith.constant 0 : index
    %c0_152 = arith.constant 0 : index
    %338 = vector.load %arg17[%c1_150, %c0_151, %c0_152] : memref<2x1x96xf32, #tpu.memory_space<vmem>>, vector<1x1x96xf32>
    %339 = vector.shape_cast %338 : vector<1x1x96xf32> to vector<1x96xf32>
    %340 = vector.broadcast %339 : vector<1x96xf32> to vector<32x96xf32>
    %341 = arith.addf %337, %340 : vector<32x96xf32>
    %342 = vector.extract_strided_slice %341 {offsets = [0, 0], sizes = [16, 32], strides = [1, 1]} : vector<32x96xf32> to vector<16x32xf32>
    %cst_153 = arith.constant 0.353553385 : f32
    %343 = vector.broadcast %cst_153 : f32 to vector<16x32xf32>
    %344 = arith.mulf %342, %343 : vector<16x32xf32>
    %345 = vector.extract_strided_slice %341 {offsets = [0, 32], sizes = [16, 32], strides = [1, 1]} : vector<32x96xf32> to vector<16x32xf32>
    %346 = vector.extract_strided_slice %341 {offsets = [16, 64], sizes = [16, 32], strides = [1, 1]} : vector<32x96xf32> to vector<16x32xf32>
    %347 = vector.shape_cast %344 : vector<16x32xf32> to vector<2x8x32xf32>
    %348 = vector.shape_cast %345 : vector<16x32xf32> to vector<2x8x32xf32>
    %349 = vector.shape_cast %346 : vector<16x32xf32> to vector<2x8x32xf32>
    %c1_154 = arith.constant 1 : index
    %c0_155 = arith.constant 0 : index
    %c0_156 = arith.constant 0 : index
    %350 = vector.load %arg18[%c1_154, %c0_155, %c0_156] : memref<2x32x32xf32, #tpu.memory_space<vmem>>, vector<1x32x32xf32>
    %351 = vector.shape_cast %350 : vector<1x32x32xf32> to vector<32x32xf32>
    %cst_157 = arith.constant 0.000000e+00 : f32
    %352 = vector.broadcast %cst_157 : f32 to vector<16x32xf32>
    %353 = vector.extract_strided_slice %347 {offsets = [0, 0, 0], sizes = [2, 8, 8], strides = [1, 1, 1]} : vector<2x8x32xf32> to vector<2x8x8xf32>
    %354 = vector.extract_strided_slice %348 {offsets = [0, 0, 0], sizes = [2, 8, 8], strides = [1, 1, 1]} : vector<2x8x32xf32> to vector<2x8x8xf32>
    %355 = vector.extract_strided_slice %349 {offsets = [0, 0, 0], sizes = [2, 8, 8], strides = [1, 1, 1]} : vector<2x8x32xf32> to vector<2x8x8xf32>
    "tpu.trace_start"() <{level = 10 : i32, message = "bqd,bkd->bqk"}> : () -> ()
    %cst_158 = arith.constant dense<0.000000e+00> : vector<2x8x8xf32>
    %356 = tpu.matmul %353, %354, %cst_158 {dimension_numbers = #tpu.dot_dimension_numbers<[2], [2], [1], [1], [0, 0, 0, 1, 1, 1], [0], [0]>} : vector<2x8x8xf32>, vector<2x8x8xf32>, vector<2x8x8xf32> -> vector<2x8x8xf32>
    "tpu.trace_stop"() : () -> ()
    %cst_159 = arith.constant dense<0xFF800000> : vector<2x8xf32>
    %357 = vector.multi_reduction <maximumf>, %356, %cst_159 [2] : vector<2x8x8xf32> to vector<2x8xf32>
    %358 = vector.shape_cast %357 : vector<2x8xf32> to vector<2x8x1xf32>
    %359 = vector.broadcast %358 : vector<2x8x1xf32> to vector<2x8x8xf32>
    %360 = arith.subf %356, %359 : vector<2x8x8xf32>
    %361 = math.exp %360 : vector<2x8x8xf32>
    %cst_160 = arith.constant dense<0.000000e+00> : vector<2x8xf32>
    %362 = vector.multi_reduction <add>, %361, %cst_160 [2] : vector<2x8x8xf32> to vector<2x8xf32>
    %363 = vector.shape_cast %362 : vector<2x8xf32> to vector<2x8x1xf32>
    %364 = tpu.reciprocal %363 {approx = true} : vector<2x8x1xf32> -> vector<2x8x1xf32>
    %365 = vector.broadcast %364 : vector<2x8x1xf32> to vector<2x8x8xf32>
    %366 = arith.mulf %361, %365 : vector<2x8x8xf32>
    "tpu.trace_start"() <{level = 10 : i32, message = "bqk,bkd->bqd"}> : () -> ()
    %cst_161 = arith.constant dense<0.000000e+00> : vector<2x8x8xf32>
    %367 = tpu.matmul %366, %355, %cst_161 {dimension_numbers = #tpu.dot_dimension_numbers<[2], [1], [1], [2], [0, 0, 0, 1, 1, 2], [0], [0]>} : vector<2x8x8xf32>, vector<2x8x8xf32>, vector<2x8x8xf32> -> vector<2x8x8xf32>
    "tpu.trace_stop"() : () -> ()
    %368 = vector.shape_cast %367 : vector<2x8x8xf32> to vector<16x8xf32>
    %369 = vector.extract_strided_slice %351 {offsets = [0, 0], sizes = [8, 32], strides = [1, 1]} : vector<32x32xf32> to vector<8x32xf32>
    %cst_162 = arith.constant dense<0.000000e+00> : vector<16x32xf32>
    %370 = tpu.matmul %368, %369, %cst_162 {dimension_numbers = #tpu.dot_dimension_numbers<[1], [0], [0], [1], [0, 0, 1, 1], [], []>} : vector<16x8xf32>, vector<8x32xf32>, vector<16x32xf32> -> vector<16x32xf32>
    %371 = arith.addf %352, %370 : vector<16x32xf32>
    %372 = vector.extract_strided_slice %347 {offsets = [0, 0, 8], sizes = [2, 8, 8], strides = [1, 1, 1]} : vector<2x8x32xf32> to vector<2x8x8xf32>
    %373 = vector.extract_strided_slice %348 {offsets = [0, 0, 8], sizes = [2, 8, 8], strides = [1, 1, 1]} : vector<2x8x32xf32> to vector<2x8x8xf32>
    %374 = vector.extract_strided_slice %349 {offsets = [0, 0, 8], sizes = [2, 8, 8], strides = [1, 1, 1]} : vector<2x8x32xf32> to vector<2x8x8xf32>
    "tpu.trace_start"() <{level = 10 : i32, message = "bqd,bkd->bqk"}> : () -> ()
    %cst_163 = arith.constant dense<0.000000e+00> : vector<2x8x8xf32>
    %375 = tpu.matmul %372, %373, %cst_163 {dimension_numbers = #tpu.dot_dimension_numbers<[2], [2], [1], [1], [0, 0, 0, 1, 1, 1], [0], [0]>} : vector<2x8x8xf32>, vector<2x8x8xf32>, vector<2x8x8xf32> -> vector<2x8x8xf32>
    "tpu.trace_stop"() : () -> ()
    %cst_164 = arith.constant dense<0xFF800000> : vector<2x8xf32>
    %376 = vector.multi_reduction <maximumf>, %375, %cst_164 [2] : vector<2x8x8xf32> to vector<2x8xf32>
    %377 = vector.shape_cast %376 : vector<2x8xf32> to vector<2x8x1xf32>
    %378 = vector.broadcast %377 : vector<2x8x1xf32> to vector<2x8x8xf32>
    %379 = arith.subf %375, %378 : vector<2x8x8xf32>
    %380 = math.exp %379 : vector<2x8x8xf32>
    %cst_165 = arith.constant dense<0.000000e+00> : vector<2x8xf32>
    %381 = vector.multi_reduction <add>, %380, %cst_165 [2] : vector<2x8x8xf32> to vector<2x8xf32>
    %382 = vector.shape_cast %381 : vector<2x8xf32> to vector<2x8x1xf32>
    %383 = tpu.reciprocal %382 {approx = true} : vector<2x8x1xf32> -> vector<2x8x1xf32>
    %384 = vector.broadcast %383 : vector<2x8x1xf32> to vector<2x8x8xf32>
    %385 = arith.mulf %380, %384 : vector<2x8x8xf32>
    "tpu.trace_start"() <{level = 10 : i32, message = "bqk,bkd->bqd"}> : () -> ()
    %cst_166 = arith.constant dense<0.000000e+00> : vector<2x8x8xf32>
    %386 = tpu.matmul %385, %374, %cst_166 {dimension_numbers = #tpu.dot_dimension_numbers<[2], [1], [1], [2], [0, 0, 0, 1, 1, 2], [0], [0]>} : vector<2x8x8xf32>, vector<2x8x8xf32>, vector<2x8x8xf32> -> vector<2x8x8xf32>
    "tpu.trace_stop"() : () -> ()
    %387 = vector.shape_cast %386 : vector<2x8x8xf32> to vector<16x8xf32>
    %388 = vector.extract_strided_slice %351 {offsets = [8, 0], sizes = [8, 32], strides = [1, 1]} : vector<32x32xf32> to vector<8x32xf32>
    %cst_167 = arith.constant dense<0.000000e+00> : vector<16x32xf32>
    %389 = tpu.matmul %387, %388, %cst_167 {dimension_numbers = #tpu.dot_dimension_numbers<[1], [0], [0], [1], [0, 0, 1, 1], [], []>} : vector<16x8xf32>, vector<8x32xf32>, vector<16x32xf32> -> vector<16x32xf32>
    %390 = arith.addf %371, %389 : vector<16x32xf32>
    %391 = vector.extract_strided_slice %347 {offsets = [0, 0, 16], sizes = [2, 8, 8], strides = [1, 1, 1]} : vector<2x8x32xf32> to vector<2x8x8xf32>
    %392 = vector.extract_strided_slice %348 {offsets = [0, 0, 16], sizes = [2, 8, 8], strides = [1, 1, 1]} : vector<2x8x32xf32> to vector<2x8x8xf32>
    %393 = vector.extract_strided_slice %349 {offsets = [0, 0, 16], sizes = [2, 8, 8], strides = [1, 1, 1]} : vector<2x8x32xf32> to vector<2x8x8xf32>
    "tpu.trace_start"() <{level = 10 : i32, message = "bqd,bkd->bqk"}> : () -> ()
    %cst_168 = arith.constant dense<0.000000e+00> : vector<2x8x8xf32>
    %394 = tpu.matmul %391, %392, %cst_168 {dimension_numbers = #tpu.dot_dimension_numbers<[2], [2], [1], [1], [0, 0, 0, 1, 1, 1], [0], [0]>} : vector<2x8x8xf32>, vector<2x8x8xf32>, vector<2x8x8xf32> -> vector<2x8x8xf32>
    "tpu.trace_stop"() : () -> ()
    %cst_169 = arith.constant dense<0xFF800000> : vector<2x8xf32>
    %395 = vector.multi_reduction <maximumf>, %394, %cst_169 [2] : vector<2x8x8xf32> to vector<2x8xf32>
    %396 = vector.shape_cast %395 : vector<2x8xf32> to vector<2x8x1xf32>
    %397 = vector.broadcast %396 : vector<2x8x1xf32> to vector<2x8x8xf32>
    %398 = arith.subf %394, %397 : vector<2x8x8xf32>
    %399 = math.exp %398 : vector<2x8x8xf32>
    %cst_170 = arith.constant dense<0.000000e+00> : vector<2x8xf32>
    %400 = vector.multi_reduction <add>, %399, %cst_170 [2] : vector<2x8x8xf32> to vector<2x8xf32>
    %401 = vector.shape_cast %400 : vector<2x8xf32> to vector<2x8x1xf32>
    %402 = tpu.reciprocal %401 {approx = true} : vector<2x8x1xf32> -> vector<2x8x1xf32>
    %403 = vector.broadcast %402 : vector<2x8x1xf32> to vector<2x8x8xf32>
    %404 = arith.mulf %399, %403 : vector<2x8x8xf32>
    "tpu.trace_start"() <{level = 10 : i32, message = "bqk,bkd->bqd"}> : () -> ()
    %cst_171 = arith.constant dense<0.000000e+00> : vector<2x8x8xf32>
    %405 = tpu.matmul %404, %393, %cst_171 {dimension_numbers = #tpu.dot_dimension_numbers<[2], [1], [1], [2], [0, 0, 0, 1, 1, 2], [0], [0]>} : vector<2x8x8xf32>, vector<2x8x8xf32>, vector<2x8x8xf32> -> vector<2x8x8xf32>
    "tpu.trace_stop"() : () -> ()
    %406 = vector.shape_cast %405 : vector<2x8x8xf32> to vector<16x8xf32>
    %407 = vector.extract_strided_slice %351 {offsets = [16, 0], sizes = [8, 32], strides = [1, 1]} : vector<32x32xf32> to vector<8x32xf32>
    %cst_172 = arith.constant dense<0.000000e+00> : vector<16x32xf32>
    %408 = tpu.matmul %406, %407, %cst_172 {dimension_numbers = #tpu.dot_dimension_numbers<[1], [0], [0], [1], [0, 0, 1, 1], [], []>} : vector<16x8xf32>, vector<8x32xf32>, vector<16x32xf32> -> vector<16x32xf32>
    %409 = arith.addf %390, %408 : vector<16x32xf32>
    %410 = vector.extract_strided_slice %347 {offsets = [0, 0, 24], sizes = [2, 8, 8], strides = [1, 1, 1]} : vector<2x8x32xf32> to vector<2x8x8xf32>
    %411 = vector.extract_strided_slice %348 {offsets = [0, 0, 24], sizes = [2, 8, 8], strides = [1, 1, 1]} : vector<2x8x32xf32> to vector<2x8x8xf32>
    %412 = vector.extract_strided_slice %349 {offsets = [0, 0, 24], sizes = [2, 8, 8], strides = [1, 1, 1]} : vector<2x8x32xf32> to vector<2x8x8xf32>
    "tpu.trace_start"() <{level = 10 : i32, message = "bqd,bkd->bqk"}> : () -> ()
    %cst_173 = arith.constant dense<0.000000e+00> : vector<2x8x8xf32>
    %413 = tpu.matmul %410, %411, %cst_173 {dimension_numbers = #tpu.dot_dimension_numbers<[2], [2], [1], [1], [0, 0, 0, 1, 1, 1], [0], [0]>} : vector<2x8x8xf32>, vector<2x8x8xf32>, vector<2x8x8xf32> -> vector<2x8x8xf32>
    "tpu.trace_stop"() : () -> ()
    %cst_174 = arith.constant dense<0xFF800000> : vector<2x8xf32>
    %414 = vector.multi_reduction <maximumf>, %413, %cst_174 [2] : vector<2x8x8xf32> to vector<2x8xf32>
    %415 = vector.shape_cast %414 : vector<2x8xf32> to vector<2x8x1xf32>
    %416 = vector.broadcast %415 : vector<2x8x1xf32> to vector<2x8x8xf32>
    %417 = arith.subf %413, %416 : vector<2x8x8xf32>
    %418 = math.exp %417 : vector<2x8x8xf32>
    %cst_175 = arith.constant dense<0.000000e+00> : vector<2x8xf32>
    %419 = vector.multi_reduction <add>, %418, %cst_175 [2] : vector<2x8x8xf32> to vector<2x8xf32>
    %420 = vector.shape_cast %419 : vector<2x8xf32> to vector<2x8x1xf32>
    %421 = tpu.reciprocal %420 {approx = true} : vector<2x8x1xf32> -> vector<2x8x1xf32>
    %422 = vector.broadcast %421 : vector<2x8x1xf32> to vector<2x8x8xf32>
    %423 = arith.mulf %418, %422 : vector<2x8x8xf32>
    "tpu.trace_start"() <{level = 10 : i32, message = "bqk,bkd->bqd"}> : () -> ()
    %cst_176 = arith.constant dense<0.000000e+00> : vector<2x8x8xf32>
    %424 = tpu.matmul %423, %412, %cst_176 {dimension_numbers = #tpu.dot_dimension_numbers<[2], [1], [1], [2], [0, 0, 0, 1, 1, 2], [0], [0]>} : vector<2x8x8xf32>, vector<2x8x8xf32>, vector<2x8x8xf32> -> vector<2x8x8xf32>
    "tpu.trace_stop"() : () -> ()
    %425 = vector.shape_cast %424 : vector<2x8x8xf32> to vector<16x8xf32>
    %426 = vector.extract_strided_slice %351 {offsets = [24, 0], sizes = [8, 32], strides = [1, 1]} : vector<32x32xf32> to vector<8x32xf32>
    %cst_177 = arith.constant dense<0.000000e+00> : vector<16x32xf32>
    %427 = tpu.matmul %425, %426, %cst_177 {dimension_numbers = #tpu.dot_dimension_numbers<[1], [0], [0], [1], [0, 0, 1, 1], [], []>} : vector<16x8xf32>, vector<8x32xf32>, vector<16x32xf32> -> vector<16x32xf32>
    %428 = arith.addf %409, %427 : vector<16x32xf32>
    %c1_178 = arith.constant 1 : index
    %c0_179 = arith.constant 0 : index
    %c0_180 = arith.constant 0 : index
    %429 = vector.load %arg19[%c1_178, %c0_179, %c0_180] : memref<2x1x32xf32, #tpu.memory_space<vmem>>, vector<1x1x32xf32>
    %430 = vector.shape_cast %429 : vector<1x1x32xf32> to vector<1x32xf32>
    %431 = vector.broadcast %430 : vector<1x32xf32> to vector<16x32xf32>
    %432 = arith.addf %428, %431 : vector<16x32xf32>
    %cst_181 = arith.constant 1.000000e+00 : f32
    %433 = vector.broadcast %cst_181 : f32 to vector<16x32xf32>
    %434 = arith.addf %288, %433 : vector<16x32xf32>
    %435 = arith.mulf %434, %432 : vector<16x32xf32>
    %436 = arith.addf %269, %435 : vector<16x32xf32>
    %437 = arith.addf %436, %293 : vector<16x32xf32>
    %c1_182 = arith.constant 1 : index
    %c0_183 = arith.constant 0 : index
    %c0_184 = arith.constant 0 : index
    %438 = vector.load %arg22[%c1_182, %c0_183, %c0_184] : memref<2x1x32xf32, #tpu.memory_space<vmem>>, vector<1x1x32xf32>
    %439 = vector.shape_cast %438 : vector<1x1x32xf32> to vector<1x32xf32>
    %c1_185 = arith.constant 1 : index
    %c0_186 = arith.constant 0 : index
    %c0_187 = arith.constant 0 : index
    %440 = vector.load %arg23[%c1_185, %c0_186, %c0_187] : memref<2x1x32xf32, #tpu.memory_space<vmem>>, vector<1x1x32xf32>
    %441 = vector.shape_cast %440 : vector<1x1x32xf32> to vector<1x32xf32>
    %cst_188 = arith.constant dense<0.000000e+00> : vector<16xf32>
    %442 = vector.multi_reduction <add>, %437, %cst_188 [1] : vector<16x32xf32> to vector<16xf32>
    %443 = vector.shape_cast %442 : vector<16xf32> to vector<16x1xf32>
    %cst_189 = arith.constant 3.200000e+01 : f32
    %444 = vector.broadcast %cst_189 : f32 to vector<16x1xf32>
    %445 = arith.divf %443, %444 : vector<16x1xf32>
    %446 = vector.broadcast %445 : vector<16x1xf32> to vector<16x32xf32>
    %447 = arith.subf %437, %446 : vector<16x32xf32>
    %448 = arith.mulf %447, %447 : vector<16x32xf32>
    %cst_190 = arith.constant dense<0.000000e+00> : vector<16xf32>
    %449 = vector.multi_reduction <add>, %448, %cst_190 [1] : vector<16x32xf32> to vector<16xf32>
    %450 = vector.shape_cast %449 : vector<16xf32> to vector<16x1xf32>
    %cst_191 = arith.constant 3.200000e+01 : f32
    %451 = vector.broadcast %cst_191 : f32 to vector<16x1xf32>
    %452 = arith.divf %450, %451 : vector<16x1xf32>
    %453 = vector.broadcast %445 : vector<16x1xf32> to vector<16x32xf32>
    %454 = arith.subf %437, %453 : vector<16x32xf32>
    %cst_192 = arith.constant 9.99999974E-6 : f32
    %455 = vector.broadcast %cst_192 : f32 to vector<16x1xf32>
    %456 = arith.addf %452, %455 : vector<16x1xf32>
    %457 = math.rsqrt %456 : vector<16x1xf32>
    %458 = vector.broadcast %457 : vector<16x1xf32> to vector<16x32xf32>
    %459 = arith.mulf %454, %458 : vector<16x32xf32>
    %460 = vector.broadcast %439 : vector<1x32xf32> to vector<16x32xf32>
    %461 = arith.mulf %459, %460 : vector<16x32xf32>
    %462 = vector.broadcast %441 : vector<1x32xf32> to vector<16x32xf32>
    %463 = arith.addf %461, %462 : vector<16x32xf32>
    %c1_193 = arith.constant 1 : index
    %c0_194 = arith.constant 0 : index
    %c0_195 = arith.constant 0 : index
    %464 = vector.load %arg24[%c1_193, %c0_194, %c0_195] : memref<2x32x64xf32, #tpu.memory_space<vmem>>, vector<1x32x64xf32>
    %465 = vector.shape_cast %464 : vector<1x32x64xf32> to vector<32x64xf32>
    %cst_196 = arith.constant dense<0.000000e+00> : vector<16x64xf32>
    %466 = tpu.matmul %463, %465, %cst_196 {dimension_numbers = #tpu.dot_dimension_numbers<[1], [0], [0], [1], [0, 0, 1, 1], [], []>} : vector<16x32xf32>, vector<32x64xf32>, vector<16x64xf32> -> vector<16x64xf32>
    %c1_197 = arith.constant 1 : index
    %c0_198 = arith.constant 0 : index
    %c0_199 = arith.constant 0 : index
    %467 = vector.load %arg25[%c1_197, %c0_198, %c0_199] : memref<2x1x64xf32, #tpu.memory_space<vmem>>, vector<1x1x64xf32>
    %468 = vector.shape_cast %467 : vector<1x1x64xf32> to vector<1x64xf32>
    %469 = vector.broadcast %468 : vector<1x64xf32> to vector<16x64xf32>
    %470 = arith.addf %466, %469 : vector<16x64xf32>
    %cst_200 = arith.constant 5.000000e-01 : f32
    %471 = vector.broadcast %cst_200 : f32 to vector<16x64xf32>
    %472 = arith.mulf %471, %470 : vector<16x64xf32>
    %cst_201 = arith.constant 4.471500e-02 : f32
    %473 = vector.broadcast %cst_201 : f32 to vector<16x64xf32>
    %474 = arith.mulf %473, %470 : vector<16x64xf32>
    %475 = arith.mulf %474, %470 : vector<16x64xf32>
    %476 = arith.mulf %475, %470 : vector<16x64xf32>
    %477 = arith.addf %470, %476 : vector<16x64xf32>
    %cst_202 = arith.constant 0.797884583 : f32
    %478 = vector.broadcast %cst_202 : f32 to vector<16x64xf32>
    %479 = arith.mulf %478, %477 : vector<16x64xf32>
    %480 = math.tanh %479 : vector<16x64xf32>
    %cst_203 = arith.constant 1.000000e+00 : f32
    %481 = vector.broadcast %cst_203 : f32 to vector<16x64xf32>
    %482 = arith.addf %481, %480 : vector<16x64xf32>
    %483 = arith.mulf %472, %482 : vector<16x64xf32>
    %c1_204 = arith.constant 1 : index
    %c0_205 = arith.constant 0 : index
    %c0_206 = arith.constant 0 : index
    %484 = vector.load %arg26[%c1_204, %c0_205, %c0_206] : memref<2x64x32xf32, #tpu.memory_space<vmem>>, vector<1x64x32xf32>
    %485 = vector.shape_cast %484 : vector<1x64x32xf32> to vector<64x32xf32>
    %cst_207 = arith.constant dense<0.000000e+00> : vector<16x32xf32>
    %486 = tpu.matmul %483, %485, %cst_207 {dimension_numbers = #tpu.dot_dimension_numbers<[1], [0], [0], [1], [0, 0, 1, 1], [], []>} : vector<16x64xf32>, vector<64x32xf32>, vector<16x32xf32> -> vector<16x32xf32>
    %c1_208 = arith.constant 1 : index
    %c0_209 = arith.constant 0 : index
    %c0_210 = arith.constant 0 : index
    %487 = vector.load %arg27[%c1_208, %c0_209, %c0_210] : memref<2x1x32xf32, #tpu.memory_space<vmem>>, vector<1x1x32xf32>
    %488 = vector.shape_cast %487 : vector<1x1x32xf32> to vector<1x32xf32>
    %489 = vector.broadcast %488 : vector<1x32xf32> to vector<16x32xf32>
    %490 = arith.addf %486, %489 : vector<16x32xf32>
    %cst_211 = arith.constant 1.000000e+00 : f32
    %491 = vector.broadcast %cst_211 : f32 to vector<16x32xf32>
    %492 = arith.addf %298, %491 : vector<16x32xf32>
    %493 = arith.mulf %492, %490 : vector<16x32xf32>
    %494 = arith.addf %437, %493 : vector<16x32xf32>
    %495 = arith.addf %494, %303 : vector<16x32xf32>
    %c0_212 = arith.constant 0 : index
    %c0_213 = arith.constant 0 : index
    %496 = vector.load %arg12[%c0_212, %c0_213] : memref<32x8xf32, #tpu.memory_space<vmem>>, vector<32x8xf32>
    %cst_214 = arith.constant dense<0.000000e+00> : vector<16x8xf32>
    %497 = tpu.matmul %495, %496, %cst_214 {dimension_numbers = #tpu.dot_dimension_numbers<[1], [0], [0], [1], [0, 0, 1, 1], [], []>} : vector<16x32xf32>, vector<32x8xf32>, vector<16x8xf32> -> vector<16x8xf32>
    %c0_215 = arith.constant 0 : index
    %c0_216 = arith.constant 0 : index
    %498 = vector.load %arg13[%c0_215, %c0_216] : memref<1x8xf32, #tpu.memory_space<vmem>>, vector<1x8xf32>
    %499 = vector.broadcast %498 : vector<1x8xf32> to vector<16x8xf32>
    %500 = arith.addf %497, %499 : vector<16x8xf32>
    %c0_217 = arith.constant 0 : index
    %c0_218 = arith.constant 0 : index
    %501 = vector.load %arg30[%c0_217, %c0_218] : memref<16x8xf32, #tpu.memory_space<vmem>>, vector<16x8xf32>
    tpu.vector_store %arg30[%c0_217, %c0_218], %500 {strides = array<i32>} : memref<16x8xf32, #tpu.memory_space<vmem>>, vector<16x8xf32>,
    return
  }
  func.func @transform_0(%arg0: i32) -> (i32, i32) {
    %c0_i32 = arith.constant 0 : i32
    %c0_i32_0 = arith.constant 0 : i32
    %c0_i32_1 = arith.constant 0 : i32
    return %c0_i32, %c0_i32_0 : i32, i32
  }
  func.func @transform_1(%arg0: i32) -> (i32, i32) {
    %c0_i32 = arith.constant 0 : i32
    %c0_i32_0 = arith.constant 0 : i32
    %c0_i32_1 = arith.constant 0 : i32
    return %c0_i32, %c0_i32_0 : i32, i32
  }
  func.func @transform_2(%arg0: i32) -> (i32, i32) {
    %c0_i32 = arith.constant 0 : i32
    %c0_i32_0 = arith.constant 0 : i32
    %c0_i32_1 = arith.constant 0 : i32
    return %c0_i32, %c0_i32_0 : i32, i32
  }
  func.func @transform_3(%arg0: i32) -> (i32, i32) {
    %c0_i32 = arith.constant 0 : i32
    %c0_i32_0 = arith.constant 0 : i32
    %c0_i32_1 = arith.constant 0 : i32
    return %c0_i32, %c0_i32_0 : i32, i32
  }
  func.func @transform_4(%arg0: i32) -> (i32, i32) {
    %c0_i32 = arith.constant 0 : i32
    %c0_i32_0 = arith.constant 0 : i32
    %c0_i32_1 = arith.constant 0 : i32
    return %c0_i32, %c0_i32_0 : i32, i32
  }
  func.func @transform_5(%arg0: i32) -> (i32, i32) {
    %c0_i32 = arith.constant 0 : i32
    %c0_i32_0 = arith.constant 0 : i32
    %c0_i32_1 = arith.constant 0 : i32
    return %c0_i32, %c0_i32_0 : i32, i32
  }
  func.func @transform_6(%arg0: i32) -> (i32, i32) {
    %c0_i32 = arith.constant 0 : i32
    %c0_i32_0 = arith.constant 0 : i32
    %c0_i32_1 = arith.constant 0 : i32
    return %c0_i32, %c0_i32_0 : i32, i32
  }
  func.func @transform_7(%arg0: i32) -> (i32, i32) {
    %c0_i32 = arith.constant 0 : i32
    %c0_i32_0 = arith.constant 0 : i32
    %c0_i32_1 = arith.constant 0 : i32
    return %c0_i32, %c0_i32_0 : i32, i32
  }
  func.func @transform_8(%arg0: i32) -> (i32, i32) {
    %c0_i32 = arith.constant 0 : i32
    %c0_i32_0 = arith.constant 0 : i32
    %c0_i32_1 = arith.constant 0 : i32
    return %c0_i32, %c0_i32_0 : i32, i32
  }
  func.func @transform_9(%arg0: i32) -> (i32, i32) {
    %c0_i32 = arith.constant 0 : i32
    %c0_i32_0 = arith.constant 0 : i32
    %c0_i32_1 = arith.constant 0 : i32
    return %c0_i32, %c0_i32_0 : i32, i32
  }
  func.func @transform_10(%arg0: i32) -> (i32, i32) {
    %c0_i32 = arith.constant 0 : i32
    %c0_i32_0 = arith.constant 0 : i32
    %c0_i32_1 = arith.constant 0 : i32
    return %c0_i32, %c0_i32_0 : i32, i32
  }
  func.func @transform_11(%arg0: i32) -> (i32, i32) {
    %c0_i32 = arith.constant 0 : i32
    %c0_i32_0 = arith.constant 0 : i32
    %c0_i32_1 = arith.constant 0 : i32
    return %c0_i32, %c0_i32_0 : i32, i32
  }
  func.func @transform_12(%arg0: i32) -> (i32, i32) {
    %c0_i32 = arith.constant 0 : i32
    %c0_i32_0 = arith.constant 0 : i32
    %c0_i32_1 = arith.constant 0 : i32
    return %c0_i32, %c0_i32_0 : i32, i32
  }
  func.func @transform_13(%arg0: i32) -> (i32, i32, i32) {
    %c0_i32 = arith.constant 0 : i32
    %c0_i32_0 = arith.constant 0 : i32
    %c0_i32_1 = arith.constant 0 : i32
    %c0_i32_2 = arith.constant 0 : i32
    return %c0_i32, %c0_i32_0, %c0_i32_1 : i32, i32, i32
  }
  func.func @transform_14(%arg0: i32) -> (i32, i32, i32) {
    %c0_i32 = arith.constant 0 : i32
    %c0_i32_0 = arith.constant 0 : i32
    %c0_i32_1 = arith.constant 0 : i32
    %c0_i32_2 = arith.constant 0 : i32
    return %c0_i32, %c0_i32_0, %c0_i32_1 : i32, i32, i32
  }
  func.func @transform_15(%arg0: i32) -> (i32, i32, i32) {
    %c0_i32 = arith.constant 0 : i32
    %c0_i32_0 = arith.constant 0 : i32
    %c0_i32_1 = arith.constant 0 : i32
    %c0_i32_2 = arith.constant 0 : i32
    return %c0_i32, %c0_i32_0, %c0_i32_1 : i32, i32, i32
  }
  func.func @transform_16(%arg0: i32) -> (i32, i32, i32) {
    %c0_i32 = arith.constant 0 : i32
    %c0_i32_0 = arith.constant 0 : i32
    %c0_i32_1 = arith.constant 0 : i32
    %c0_i32_2 = arith.constant 0 : i32
    return %c0_i32, %c0_i32_0, %c0_i32_1 : i32, i32, i32
  }
  func.func @transform_17(%arg0: i32) -> (i32, i32, i32) {
    %c0_i32 = arith.constant 0 : i32
    %c0_i32_0 = arith.constant 0 : i32
    %c0_i32_1 = arith.constant 0 : i32
    %c0_i32_2 = arith.constant 0 : i32
    return %c0_i32, %c0_i32_0, %c0_i32_1 : i32, i32, i32
  }
  func.func @transform_18(%arg0: i32) -> (i32, i32, i32) {
    %c0_i32 = arith.constant 0 : i32
    %c0_i32_0 = arith.constant 0 : i32
    %c0_i32_1 = arith.constant 0 : i32
    %c0_i32_2 = arith.constant 0 : i32
    return %c0_i32, %c0_i32_0, %c0_i32_1 : i32, i32, i32
  }
  func.func @transform_19(%arg0: i32) -> (i32, i32, i32) {
    %c0_i32 = arith.constant 0 : i32
    %c0_i32_0 = arith.constant 0 : i32
    %c0_i32_1 = arith.constant 0 : i32
    %c0_i32_2 = arith.constant 0 : i32
    return %c0_i32, %c0_i32_0, %c0_i32_1 : i32, i32, i32
  }
  func.func @transform_20(%arg0: i32) -> (i32, i32, i32) {
    %c0_i32 = arith.constant 0 : i32
    %c0_i32_0 = arith.constant 0 : i32
    %c0_i32_1 = arith.constant 0 : i32
    %c0_i32_2 = arith.constant 0 : i32
    return %c0_i32, %c0_i32_0, %c0_i32_1 : i32, i32, i32
  }
  func.func @transform_21(%arg0: i32) -> (i32, i32, i32) {
    %c0_i32 = arith.constant 0 : i32
    %c0_i32_0 = arith.constant 0 : i32
    %c0_i32_1 = arith.constant 0 : i32
    %c0_i32_2 = arith.constant 0 : i32
    return %c0_i32, %c0_i32_0, %c0_i32_1 : i32, i32, i32
  }
  func.func @transform_22(%arg0: i32) -> (i32, i32, i32) {
    %c0_i32 = arith.constant 0 : i32
    %c0_i32_0 = arith.constant 0 : i32
    %c0_i32_1 = arith.constant 0 : i32
    %c0_i32_2 = arith.constant 0 : i32
    return %c0_i32, %c0_i32_0, %c0_i32_1 : i32, i32, i32
  }
  func.func @transform_23(%arg0: i32) -> (i32, i32, i32) {
    %c0_i32 = arith.constant 0 : i32
    %c0_i32_0 = arith.constant 0 : i32
    %c0_i32_1 = arith.constant 0 : i32
    %c0_i32_2 = arith.constant 0 : i32
    return %c0_i32, %c0_i32_0, %c0_i32_1 : i32, i32, i32
  }
  func.func @transform_24(%arg0: i32) -> (i32, i32, i32) {
    %c0_i32 = arith.constant 0 : i32
    %c0_i32_0 = arith.constant 0 : i32
    %c0_i32_1 = arith.constant 0 : i32
    %c0_i32_2 = arith.constant 0 : i32
    return %c0_i32, %c0_i32_0, %c0_i32_1 : i32, i32, i32
  }
  func.func @transform_25(%arg0: i32) -> (i32, i32, i32) {
    %c0_i32 = arith.constant 0 : i32
    %c0_i32_0 = arith.constant 0 : i32
    %c0_i32_1 = arith.constant 0 : i32
    %c0_i32_2 = arith.constant 0 : i32
    return %c0_i32, %c0_i32_0, %c0_i32_1 : i32, i32, i32
  }
  func.func @transform_26(%arg0: i32) -> (i32, i32, i32) {
    %c0_i32 = arith.constant 0 : i32
    %c0_i32_0 = arith.constant 0 : i32
    %c0_i32_1 = arith.constant 0 : i32
    %c0_i32_2 = arith.constant 0 : i32
    return %c0_i32, %c0_i32_0, %c0_i32_1 : i32, i32, i32
  }
  func.func @transform_27(%arg0: i32) -> (i32, i32, i32) {
    %c0_i32 = arith.constant 0 : i32
    %c0_i32_0 = arith.constant 0 : i32
    %c0_i32_1 = arith.constant 0 : i32
    %c0_i32_2 = arith.constant 0 : i32
    return %c0_i32, %c0_i32_0, %c0_i32_1 : i32, i32, i32
  }
  func.func @transform_28(%arg0: i32) -> (i32, i32, i32) {
    %c0_i32 = arith.constant 0 : i32
    %c0_i32_0 = arith.constant 0 : i32
    %c0_i32_1 = arith.constant 0 : i32
    %c0_i32_2 = arith.constant 0 : i32
    return %c0_i32, %c0_i32_0, %c0_i32_1 : i32, i32, i32
  }
  func.func @transform_29(%arg0: i32) -> (i32, i32) {
    %c0_i32 = arith.constant 0 : i32
    %c0_i32_0 = arith.constant 0 : i32
    %c0_i32_1 = arith.constant 0 : i32
    return %c0_i32, %c0_i32_0 : i32, i32
  }
}

</mosaic_0001>

<bundles_post_ra>
// kernel: tpu_custom_call.1
= control target key start
LH: loop header
LB: loop body
LE: loop exit
PB: predicated region body
PF: predicated region fallthrough
CT: control target
= control target key end

     0   :  { %s6715_s6 = smov 1   ;;  %s6716_s10 = smov 2   ;;  %s7590_s0 = inlined_call_operand.smem [shape: u32[30], index: -1, kind: input, shape index: {}] }
   0x1   :  { %s6776_s5 = sld [smem:[%s7590_s0]]   ;;  %s6717_s14 = smov 3  }
   0x2   :  { %s6781_s9 = sld [smem:[%s7590_s0 + %s6715_s6]]   ;;  %s6718_s18 = smov 4  }
   0x3   :  { %s6786_s13 = sld [smem:[%s7590_s0 + %s6716_s10]]   ;;  %s6719_s22 = smov 5  }
   0x4   :  { %s6791_s17 = sld [smem:[%s7590_s0 + %s6717_s14]]   ;;  %s6720_s26 = smov 6  }
   0x5   :  { %s6796_s21 = sld [smem:[%s7590_s0 + %s6718_s18]]   ;;  %s6721_s30 = smov 7  }
   0x6   :  { %s6801_s25 = sld [smem:[%s7590_s0 + %s6719_s22]]   ;;  %s6722_s4 = smov 8  }
   0x7   :  { %s6806_s29 = sld [smem:[%s7590_s0 + %s6720_s26]]   ;;  %s6723_s10 = smov 9  }
   0x8   :  { %s6811_s3 = sld [smem:[%s7590_s0 + %s6721_s30]]   ;;  %s6724_s15 = smov 10  }
   0x9   :  { %s6816_s8 = sld [smem:[%s7590_s0 + %s6722_s4]]   ;;  %s6725_s20 = smov 11  }
   0xa   :  { %s6821_s14 = sld [smem:[%s7590_s0 + %s6723_s10]]   ;;  %s6726_s26 = smov 12  }
   0xb   :  { %s6826_s19 = sld [smem:[%s7590_s0 + %s6724_s15]]   ;;  %s6727_s1 = smov 13  }
   0xc   :  { %s6831_s24 = sld [smem:[%s7590_s0 + %s6725_s20]]   ;;  %s6728_s7 = smov 14  }
   0xd   :  { %s6836_s30 = sld [smem:[%s7590_s0 + %s6726_s26]]   ;;  %s6729_s15 = smov 15  }
   0xe   :  { %s6841_s6 = sld [smem:[%s7590_s0 + %s6727_s1]]   ;;  %s6730_s22 = smov 16  }
   0xf   :  { %s6846_s12 = sld [smem:[%s7590_s0 + %s6728_s7]]   ;;  %s6731_s28 = smov 17  }
  0x10   :  { %s6851_s20 = sld [smem:[%s7590_s0 + %s6729_s15]]   ;;  %s6732_s7 = smov 18  }
  0x11   :  { %s6856_s27 = sld [smem:[%s7590_s0 + %s6730_s22]]   ;;  %s6733_s15 = smov 19  }
  0x12   :  { %7602 = sst [smem:[#allocation17_spill]] %s6831_s24  ;;  %s6734_s22 = smov 20  }
  0x13   :  { %7603 = sst [smem:[#allocation18_spill]] %s6836_s30 }
  0x14   :  { %s6861_s4 = sld [smem:[%s7590_s0 + %s6731_s28]]   ;;  %s6735_s28 = smov 21  }
  0x15   :  { %s6866_s30 = sld [smem:[%s7590_s0 + %s6732_s7]]   ;;  %s6736_s7 = smov 22  }
  0x16   :  { %7604 = sst [smem:[#allocation19_spill]] %s6851_s20 }
  0x17   :  { %7605 = sst [smem:[#allocation20_spill]] %s6856_s27 }
  0x18   :  { %s6871_s24 = sld [smem:[%s7590_s0 + %s6733_s15]]   ;;  %s6737_s15 = smov 23  }
  0x19   :  { %s6876_s27 = sld [smem:[%s7590_s0 + %s6734_s22]]   ;;  %s6738_s22 = smov 24  }
  0x1a   :  { %7606 = sst [smem:[#allocation21_spill]] %s6861_s4 }
  0x1b   :  { %7607 = sst [smem:[#allocation22_spill]] %s6866_s30 }
  0x1c   :  { %s6881_s4 = sld [smem:[%s7590_s0 + %s6735_s28]]   ;;  %s6739_s28 = smov 25  }
  0x1d   :  { %s6886_s30 = sld [smem:[%s7590_s0 + %s6736_s7]]   ;;  %s6740_s7 = smov 26  }
  0x1e   :  { %s6891_s20 = sld [smem:[%s7590_s0 + %s6737_s15]]   ;;  %s6741_s15 = smov 27  }
  0x1f   :  { %7608 = sst [smem:[#allocation23_spill]] %s6876_s27 }
  0x20   :  { %s6896_s27 = sld [smem:[%s7590_s0 + %s6738_s22]]   ;;  %s6742_s22 = smov 28  }
  0x22   :  { %7609 = sst [smem:[#allocation24_spill]] %s6881_s4 }
  0x23   :  { %7610 = sst [smem:[#allocation25_spill]] %s6886_s30 }
  0x24   :  { %7611 = sst [smem:[#allocation26_spill]] %s6891_s20 }
  0x25   :  { %s6901_s4 = sld [smem:[%s7590_s0 + %s6739_s28]]   ;;  %s6743_s28 = smov 29  }
  0x26   :  { %7612 = sst [smem:[#allocation27_spill]] %s6896_s27 }
  0x27   :  { %s6906_s30 = sld [smem:[%s7590_s0 + %s6740_s7]]  }
  0x28   :  { %s6911_s20 = sld [smem:[%s7590_s0 + %s6741_s15]]  }
  0x29   :  { %s6916_s27 = sld [smem:[%s7590_s0 + %s6742_s22]]  }
  0x2b   :  { %7613 = sst [smem:[#allocation28_spill]] %s6901_s4 }
  0x2c   :  { %s6921_s4 = sld [smem:[%s7590_s0 + %s6743_s28]]  }
  0x2d   :  { %64 = vsyncpa [#allocation3], 0 }
  0x2e   :  { %65 = vsyncpa [#allocation5], 0 }
  0x2f   :  { %66 = vsyncpa [#allocation8], 0 }
  0x30   :  { %67 = vsyncpa [#allocation11], 0  ;;  %s6744_s7 = smov [#allocation4]   ;;  %s6553_s11 = scalar_lea.hbm %s6786_s13, 256 }
  0x31   :  { %s85_s10 = sshll.u32 %s6744_s7, 4  ;;  %p6554_p0 = scmp.ne.s32.totalorder %s6786_s13, %s6553_s11  ;;  %s86_s10 = int_to_ptr.vmem [resolvable:$true] %s85_s10 }
  0x32   :  { %p6557_p1 = scmp.lt.u32.totalorder %s6553_s11, %s6786_s13 }
  0x34   :  { %p6559_p2 = pnand %p6557_p1, %p6554_p0 }
  0x36   :  { %6562 = shalt.err (!%p6559_p2)
}
  0x37   :  { %s6563_s15 = scalar_lea.vmem %s86_s10, 256  ;;  %p6568_p4 = scmp.lt.s32.totalorder %s86_s10, %s86_s10 }
  0x38   :  { %p6564_p3 = scmp.ne.s32.totalorder %s86_s10, %s6563_s15  ;;  %p6569_p5 = scmp.lt.s32.totalorder %s6563_s15, %s6563_s15 }
  0x3a   :  { %p6570_p6 = por %p6569_p5, %p6568_p4 }
  0x3c   :  { %p6571_p7 = pnand %p6570_p6, %p6564_p3 }
  0x3e   :  { %6574 = shalt.err (!%p6571_p7)
}
  0x3f   :  { %s6745_s0 = smov 128   ;;  %s6746_s16 = smov 8  }
  0x40   :  { %91 = dma.hbm_to_vmem [thread:$0]  %s6786_s13, 256, %s86_s10, [#allocation5], %s6745_s0, %s6745_s0, %s6746_s16  }
  0x41   :  { %s6747_s18 = smov [#allocation7]   ;;  %s6748_s23 = smov [#allocation10]  }
  0x42   :  { %s109_s22 = sshll.u32 %s6747_s18, 4  ;;  %s133_s26 = sshll.u32 %s6748_s23, 4  ;;  %s110_s22 = int_to_ptr.vmem [resolvable:$true] %s109_s22  ;;  %s134_s26 = int_to_ptr.vmem [resolvable:$true] %s133_s26 }
  0x43   :  { %s6575_s28 = scalar_lea.hbm %s6796_s21, 512 }
  0x44   :  { %p6576_p8 = scmp.ne.s32.totalorder %s6796_s21, %s6575_s28  ;;  %p6579_p9 = scmp.lt.u32.totalorder %s6575_s28, %s6796_s21 }
  0x46   :  { %p6581_p10 = pnand %p6579_p9, %p6576_p8 }
  0x48   :  { %6584 = shalt.err (!%p6581_p10)
}
  0x49   :  { %s6585_s1 = scalar_lea.vmem %s110_s22, 512  ;;  %p6590_p12 = scmp.lt.s32.totalorder %s110_s22, %s110_s22 }
  0x4a   :  { %p6586_p11 = scmp.ne.s32.totalorder %s110_s22, %s6585_s1  ;;  %p6591_p13 = scmp.lt.s32.totalorder %s6585_s1, %s6585_s1 }
  0x4c   :  { %p6592_p0 = por %p6591_p13, %p6590_p12 }
  0x4e   :  { %p6593_p1 = pnand %p6592_p0, %p6586_p11 }
  0x50   :  { %6596 = shalt.err (!%p6593_p1)
}
  0x51   :  { %115 = dma.hbm_to_vmem [thread:$0]  %s6796_s21, 512, %s110_s22, [#allocation8], %s6745_s0, %s6745_s0, %s6746_s16  }
  0x52   :  { %s6597_s13 = scalar_lea.hbm %s6811_s3, 512 }
  0x53   :  { %p6598_p2 = scmp.ne.s32.totalorder %s6811_s3, %s6597_s13  ;;  %p6601_p3 = scmp.lt.u32.totalorder %s6597_s13, %s6811_s3 }
  0x55   :  { %p6603_p4 = pnand %p6601_p3, %p6598_p2 }
  0x57   :  { %6606 = shalt.err (!%p6603_p4)
}
  0x58   :  { %s6607_s2 = scalar_lea.vmem %s134_s26, 512  ;;  %p6612_p6 = scmp.lt.s32.totalorder %s134_s26, %s134_s26 }
  0x59   :  { %p6608_p5 = scmp.ne.s32.totalorder %s134_s26, %s6607_s2  ;;  %p6613_p7 = scmp.lt.s32.totalorder %s6607_s2, %s6607_s2 }
  0x5b   :  { %p6614_p8 = por %p6613_p7, %p6612_p6 }
  0x5d   :  { %p6615_p9 = pnand %p6614_p8, %p6608_p5 }
  0x5f   :  { %6618 = shalt.err (!%p6615_p9)
}
  0x60   :  { %139 = dma.hbm_to_vmem [thread:$0]  %s6811_s3, 512, %s134_s26, [#allocation11], %s6745_s0, %s6745_s0, %s6746_s16  }
  0x61   :  { %s6749_s21 = smov [#allocation2]   ;;  %s6750_s10 = smov [#allocation6]  }
  0x62   :  { %s76_s7 = sshll.u32 %s6749_s21, 4  ;;  %s97_s11 = sshll.u32 %s6750_s10, 4  ;;  %s77_s7 = int_to_ptr.vmem [resolvable:$true] %s76_s7  ;;  %s98_s11 = int_to_ptr.vmem [resolvable:$true] %s97_s11 }
  0x63   :  { %s6619_s15 = scalar_lea.hbm %s6781_s9, 32 }
  0x64   :  { %p6620_p10 = scmp.ne.s32.totalorder %s6781_s9, %s6619_s15  ;;  %p6623_p11 = scmp.lt.u32.totalorder %s6619_s15, %s6781_s9 }
  0x66   :  { %p6625_p12 = pnand %p6623_p11, %p6620_p10 }
  0x68   :  { %6628 = shalt.err (!%p6625_p12)
}
  0x69   :  { %s6629_s18 = scalar_lea.vmem %s77_s7, 32  ;;  %p6634_p0 = scmp.lt.s32.totalorder %s77_s7, %s77_s7 }
  0x6a   :  { %p6630_p13 = scmp.ne.s32.totalorder %s77_s7, %s6629_s18  ;;  %p6635_p1 = scmp.lt.s32.totalorder %s6629_s18, %s6629_s18 }
  0x6c   :  { %p6636_p2 = por %p6635_p1, %p6634_p0 }
  0x6e   :  { %p6637_p3 = pnand %p6636_p2, %p6630_p13 }
  0x70   :  { %6640 = shalt.err (!%p6637_p3)
}
  0x71   :  { %79 = dma.hbm_to_vmem [thread:$0]  %s6781_s9, 32, %s77_s7, [#allocation3]  }
  0x72   :  { %s6641_s3 = scalar_lea.hbm %s6791_s17, 256 }
  0x73   :  { %p6642_p4 = scmp.ne.s32.totalorder %s6791_s17, %s6641_s3  ;;  %p6645_p5 = scmp.lt.u32.totalorder %s6641_s3, %s6791_s17 }
  0x75   :  { %p6647_p6 = pnand %p6645_p5, %p6642_p4 }
  0x77   :  { %6650 = shalt.err (!%p6647_p6)
}
  0x78   :  { %s6651_s22 = scalar_lea.vmem %s98_s11, 256  ;;  %p6656_p8 = scmp.lt.s32.totalorder %s98_s11, %s98_s11 }
  0x79   :  { %p6652_p7 = scmp.ne.s32.totalorder %s98_s11, %s6651_s22  ;;  %p6657_p9 = scmp.lt.s32.totalorder %s6651_s22, %s6651_s22 }
  0x7b   :  { %p6658_p10 = por %p6657_p9, %p6656_p8 }
  0x7d   :  { %p6659_p11 = pnand %p6658_p10, %p6652_p7 }
  0x7f   :  { %6662 = shalt.err (!%p6659_p11)
}
  0x80   :  { %103 = dma.hbm_to_vmem [thread:$0]  %s6791_s17, 256, %s98_s11, [#allocation5], %s6745_s0, %s6745_s0, %s6746_s16  }
  0x81   :  { %s6751_s9 = smov [#allocation9]   ;;  %s6752_s26 = smov [#allocation12]  }
  0x82   :  { %s124_s23 = sshll.u32 %s6751_s9, 4  ;;  %s146_s28 = sshll.u32 %s6752_s26, 4  ;;  %s125_s23 = int_to_ptr.vmem [resolvable:$true] %s124_s23  ;;  %s147_s28 = int_to_ptr.vmem [resolvable:$true] %s146_s28 }
  0x83   :  { %s6663_s1 = scalar_lea.hbm %s6806_s29, 16 }
  0x84   :  { %p6664_p12 = scmp.ne.s32.totalorder %s6806_s29, %s6663_s1  ;;  %p6667_p13 = scmp.lt.u32.totalorder %s6663_s1, %s6806_s29 }
  0x86   :  { %p6669_p0 = pnand %p6667_p13, %p6664_p12 }
  0x88   :  { %6672 = shalt.err (!%p6669_p0)
}
  0x89   :  { %s6673_s13 = scalar_lea.vmem %s125_s23, 16  ;;  %s6677_s2 = scalar_lea.vmem %s125_s23, 32 }
  0x8a   :  { %p6674_p1 = scmp.ne.s32.totalorder %s125_s23, %s6673_s13  ;;  %p6678_p2 = scmp.lt.s32.totalorder %s125_s23, %s125_s23 }
  0x8b   :  { %p6679_p3 = scmp.lt.s32.totalorder %s6677_s2, %s6673_s13 }
  0x8d   :  { %p6680_p4 = por %p6679_p3, %p6678_p2 }
  0x8f   :  { %p6681_p5 = pnand %p6680_p4, %p6674_p1 }
  0x91   :  { %6684 = shalt.err (!%p6681_p5)
}
  0x92   :  { %127 = dma.hbm_to_vmem [thread:$0]  %s6806_s29, 16, %s125_s23, [#allocation8]  }
  0x93   :  { %s6685_s17 = scalar_lea.hbm %s6816_s8, 16 }
  0x94   :  { %p6686_p6 = scmp.ne.s32.totalorder %s6816_s8, %s6685_s17  ;;  %p6689_p7 = scmp.lt.u32.totalorder %s6685_s17, %s6816_s8 }
  0x96   :  { %p6691_p8 = pnand %p6689_p7, %p6686_p6 }
  0x98   :  { %6694 = shalt.err (!%p6691_p8)
}
  0x99   :  { %s6695_s0 = scalar_lea.vmem %s147_s28, 16  ;;  %s6699_s16 = scalar_lea.vmem %s147_s28, 32 }
  0x9a   :  { %p6696_p9 = scmp.ne.s32.totalorder %s147_s28, %s6695_s0  ;;  %p6700_p10 = scmp.lt.s32.totalorder %s147_s28, %s147_s28 }
  0x9b   :  { %p6701_p11 = scmp.lt.s32.totalorder %s6699_s16, %s6695_s0 }
  0x9d   :  { %p6702_p12 = por %p6701_p11, %p6700_p10 }
  0x9f   :  { %p6703_p13 = pnand %p6702_p12, %p6696_p9 }
  0xa1   :  { %6706 = shalt.err (!%p6703_p13)
}
  0xa2   :  { %149 = dma.hbm_to_vmem [thread:$0]  %s6816_s8, 16, %s147_s28, [#allocation11]  }
  0xa3   :  { %6707 = dma.done.wait [#allocation3], 32  }
  0xa4   :  { %6708 = vsyncadd [#allocation3], 4294967264 }
  0xa5   :  { %6709 = dma.done.wait [#allocation5], 512  }
  0xa6   :  { %6710 = vsyncadd [#allocation5], 4294966784 }
  0xa7   :  { %6711 = dma.done.wait [#allocation8], 528  }
  0xa8   :  { %6712 = vsyncadd [#allocation8], 4294966768 }
  0xa9   :  { %6713 = dma.done.wait [#allocation11], 528  }
  0xaa   :  { %6714 = vsyncadd [#allocation11], 4294966768  ;;  %v6753_v0 = vmov 0.0|0.0   ;;  %vm6754_vm0 = vmmov 0   ;;  %v6755_v1 = vmov 0.0   ;;  %vm229_vm1 = vcmask 64512  }
  0xab   :  { %6242 = vmatprep.subr.bf16.mxu1 %v6753_v0  ;;  %5839 = vmatprep.mubr.msk.f32.mxu1 %vm6754_vm0, %v6755_v1  ;;  %v221_v2 = vld [vmem:[%s6801_s25] sm:$0xff]  ;;  %v220_v4 = vld [vmem:[%s6776_s5 + $0x8] sm:$0xff]  ;;  %v315_v9 = vld [vmem:[#allocation10 + $0x18] sm:$0xff]  ;;  %vm323_vm2 = vcmask 261120   ;;  %s7615_s25 = sld [smem:[#allocation20_spill]]  ;;  %s6756_s29 = smov 96  }
  0xac   :  { %v219_v3 = vld [vmem:[%s6776_s5] sm:$0xff]  ;;  %5826 = vmatprep.subr.mxu0 %v221_v2  ;;  %v314_v7 = vld [vmem:[#allocation10 + $0x10] sm:$0xff]  ;;  %v311_v11 = vld [vmem:[#allocation2] sm:$0x3]  ;;  %s7614_s5 = sld [smem:[#allocation19_spill]]  ;;  %s6757_s8 = smov 88  }
  0xad   :  { %5828 = vmatprep.mubr.msk.f32.mxu0 %vm229_vm1, %v219_v3  ;;  %v312_v5 = vld [vmem:[#allocation10] sm:$0xff]  ;;  %v313_v6 = vld [vmem:[#allocation10 + $0x8] sm:$0xff]  ;;  %5827 = vmatpush3.msra.mxu0 %v221_v2  ;;  %v6246_v10 = vpack.c.bf16 %v315_v9, %v314_v7  ;;  %v410_v15 = vld [vmem:[%s6821_s14 + $0x10] sm:$0xff]  ;;  %s6760_s21 = smov 56   ;;  %s6761_s7 = smov 112   ;;  %vm2825_vm3 = vcmask 523264  }
  0xae   :  { %v6243_v8 = vpack.c.bf16 %v313_v6, %v312_v5  ;;  %5829 = vmatmul.mubr.msk.f32.vlgmr.msra.gmra.mrb[0].mxu0 %vm229_vm1, %v220_v4  ;;  %6248 = vmatprep.subr.bf16.mxu0 %v6753_v0  ;;  %v408_v12 = vld [vmem:[%s6821_s14] sm:$0xff]  ;;  %v409_v13 = vld [vmem:[%s6821_s14 + $0x8] sm:$0xff]  ;;  %v411_v16 = vld [vmem:[%s6821_s14 + $0x18] sm:$0xff]  ;;  %s6762_s10 = smov 80   ;;  %s6763_s11 = smov 48  }
  0xaf   :  { %5874 = vmatprep.mubr.msk.f32.mxu0 %vm6754_vm0, %v6755_v1  ;;  %v6249_v14 = vpack.c.bf16 %v409_v13, %v408_v12  ;;  %v6252_v17 = vpack.c.bf16 %v411_v16, %v410_v15  ;;  %v412_v18 = vld [vmem:[%s6821_s14 + $0x20] sm:$0xff]  ;;  %v413_v19 = vld [vmem:[%s6821_s14 + $0x28] sm:$0xff]  ;;  %v414_v21 = vld [vmem:[%s6821_s14 + $0x30] sm:$0xff]  ;;  %s6764_s15 = smov 72   ;;  %s6765_s18 = smov 104  }
  0xb0   :  { %6244 = vmatpush3.bf16.msra.mxu1 %v6243_v8  ;;  %v6255_v20 = vpack.c.bf16 %v413_v19, %v412_v18  ;;  %v415_v22 = vld [vmem:[%s6821_s14 + $0x38] sm:$0xff]  ;;  %v416_v24 = vld [vmem:[%s6821_s14 + $0x40] sm:$0xff]  ;;  %v417_v25 = vld [vmem:[%s6821_s14 + $0x48] sm:$0xff]  ;;  %s7616_s3 = sld [smem:[#allocation21_spill]]  ;;  %s7617_s22 = sld [smem:[#allocation23_spill]] }
  0xb1   :  { %6245 = vmatprep.subr.bf16.mxu1 %v6753_v0  ;;  %6250 = vmatpush3.bf16.msra.mxu0 %v6249_v14  ;;  %v6258_v23 = vpack.c.bf16 %v415_v22, %v414_v21  ;;  %v6261_v26 = vpack.c.bf16 %v417_v25, %v416_v24  ;;  %v418_v27 = vld [vmem:[%s6821_s14 + $0x50] sm:$0xff]  ;;  %v419_v28 = vld [vmem:[%s6821_s14 + $0x58] sm:$0xff]  ;;  %v420_v30 = vld [vmem:[%s6821_s14 + $0x60] sm:$0xff]  ;;  %s6767_s9 = smov 40   ;;  %s7618_s23 = sld [smem:[#allocation22_spill]] }
  0xb2   :  { %6251 = vmatprep.subr.bf16.mxu0 %v6753_v0  ;;  %v6264_v29 = vpack.c.bf16 %v419_v28, %v418_v27  ;;  %v421_v31 = vld [vmem:[%s6821_s14 + $0x68] sm:$0xff]  ;;  %v422_v33 = vld [vmem:[%s6821_s14 + $0x70] sm:$0xff]  ;;  %v423_v34 = vld [vmem:[%s6821_s14 + $0x78] sm:$0xff]  ;;  %s6758_s14 = smov 120   ;;  %s7619_s26 = sld [smem:[#allocation26_spill]] }
  0xb3   :  { %v6267_v32 = vpack.c.bf16 %v421_v31, %v420_v30  ;;  %v6270_v35 = vpack.c.bf16 %v423_v34, %v422_v33  ;;  %v5472_v36 = vld [vmem:[#allocation9] ss:$0 sm:$0xff]  ;;  %v5475_v42 = vld [vmem:[#allocation12] ss:$0 sm:$0xff]  ;;  %v512_v6 = vld [vmem:[%s6871_s24] sm:$0xff]  ;;  %s7620_s28 = sld [smem:[#allocation24_spill]] }
  0xb4   :  { %6247 = vmatpush3.bf16.msra.mxu1 %v6246_v10  ;;  %v513_v7 = vld [vmem:[%s6871_s24 + $0x8] sm:$0xff]  ;;  %v514_v9 = vld [vmem:[%s6871_s24 + $0x10] sm:$0xff]  ;;  %v515_v10 = vld [vmem:[%s6871_s24 + $0x18] sm:$0xff]  ;;  %s7621_s1 = sld [smem:[#allocation25_spill]]  ;;  %s7622_s13 = sld [smem:[#allocation28_spill]] }
  0xb5   :  { %6272 = vmatprep.subr.bf16.mxu1 %v6753_v0  ;;  %6253 = vmatpush3.bf16.msra.mxu0 %v6252_v17  ;;  %v6273_v8 = vpack.c.bf16 %v513_v7, %v512_v6  ;;  %v5477_v12 = vld [vmem:[%s6826_s19] ss:$0 sm:$0xff]  ;;  %v213_v7 = vld [vmem:[#allocation6] sm:$0xff]  ;;  %s6759_s19 = smov 64  }
  0xb6   :  { %6254 = vmatprep.subr.bf16.mxu0 %v6753_v0  ;;  %v596_v31 = vld [vmem:[%s6911_s20] sm:$0xff] }
  0xb7   :  { %5840 = vmatmul.mubr.msk.f32.vlgmr.msra.gmra.mrb[0].mxu1 %vm323_vm2, %v311_v11  ;;  %v6276_v11 = vpack.c.bf16 %v515_v10, %v514_v9  ;;  %v211_v6 = vld [vmem:[#allocation4] sm:$0xff] }
  0xb8   :  { %5885 = vmatprep.mubr.msk.f32.mxu1 %vm6754_vm0, %v6755_v1  ;;  %6274 = vmatpush3.bf16.msra.mxu1 %v6273_v8  ;;  %v212_v8 = vld [vmem:[#allocation4 + $0x8] sm:$0xff] }
  0xb9   :  { %6256 = vmatpush3.bf16.msra.mxu0 %v6255_v20  ;;  %6275 = vmatprep.subr.bf16.mxu1 %v6753_v0 }
  0xba   :  { %6257 = vmatprep.subr.bf16.mxu0 %v6753_v0 }
  0xbc   :  { %6277 = vmatpush3.bf16.msra.mxu1 %v6276_v11 }
  0xbd   :  { %6259 = vmatpush3.bf16.msra.mxu0 %v6258_v23  ;;  %6278 = vmatprep.subr.bf16.mxu1 %v6753_v0 }
  0xbe   :  { %6260 = vmatprep.subr.bf16.mxu0 %v6753_v0 }
  0xc1   :  { %6262 = vmatpush3.bf16.msra.mxu0 %v6261_v26 }
  0xc2   :  { %6263 = vmatprep.subr.bf16.mxu0 %v6753_v0 }
  0xc5   :  { %6265 = vmatpush3.bf16.msra.mxu0 %v6264_v29 }
  0xc6   :  { %6266 = vmatprep.subr.bf16.mxu0 %v6753_v0 }
  0xc9   :  { %6268 = vmatpush3.bf16.msra.mxu0 %v6267_v32  ;;  %v597_v32 = vld [vmem:[%s6911_s20 + $0x8] sm:$0xff] }
  0xca   :  { %6269 = vmatprep.subr.bf16.mxu0 %v6753_v0 }
  0xcd   :  { %6271 = vmatpush3.bf16.msra.mxu0 %v6270_v35  ;;  %v6279_v35 = vpack.c.bf16 %v597_v32, %v596_v31 }
  0xce   :  { %5924 = vmatprep.subr.mxu0 %v6755_v1 }
 0x181   :  { %v5830_v37 = vpop.f32.mrb[0].mxu0 }
 0x182   :  { %v302_v38 = vpop.f32.mrb[1].mxu0  ;;  %v7003_v39 = vadd.f32 %v5830_v37, %v5472_v36  ;;  %v598_v37 = vld [vmem:[%s6911_s20 + $0x10] sm:$0xff] }
 0x183   :  { %v7005_v40 = vadd.f32 %v5472_v36, %v302_v38  ;;  %v599_v38 = vld [vmem:[%s6911_s20 + $0x18] sm:$0xff] }
 0x184   :  { %v748_v43 = vsel %vm323_vm2, %v7003_v39, 0.0 }
 0x185   :  { %v745_v41 = vsel %vm323_vm2, %v7005_v40, 0.0 }
 0x186   :  { %746 = vadd.xlane.f32.xlu0 %v745_v41  ;;  %v215_v41 = vld [vmem:[#allocation7] sm:$0xff] }
 0x18a   :  { %v393_v44 = vpop.f32.mrb[0].mxu1  ;;  %749 = vadd.xlane.f32.xlu0 %v748_v43 }
 0x18b   :  { %v394_v45 = vadd.f32 %v5475_v42, %v393_v44  ;;  %v5841_v46 = vpop.f32.mrb[1].mxu1  ;;  %v216_v42 = vld [vmem:[#allocation7 + $0x8] sm:$0xff]  ;;  %v5482_v44 = vld [vmem:[%s6841_s6] ss:$0 sm:$0xff] }
 0x18c   :  { %v7040_v46 = vpack.c.bf16 %v216_v42, %v215_v41 }
 0x18d   :  { %v398_v47 = vand.u32 2147483647, %v394_v45  ;;  %v397_v53 = vmax.f32 %v394_v45, 0.0 }
 0x18f   :  { %v399_v48 = vsub.f32 0.0, %v398_v47 }
 0x191   :  { %v400_v49 = vmul.f32 1.442695, %v399_v48 }
 0x193   :  { %6449 = vpow2.f32 %v400_v49  ;;  %v217_v49 = vld [vmem:[#allocation7 + $0x10] sm:$0xff] }
 0x19d   :  { %v6450_v50 = vpop.eup %6449 }
 0x19e   :  { %v402_v51 = vadd.f32 1.0, %v6450_v50  ;;  %v218_v50 = vld [vmem:[#allocation7 + $0x18] sm:$0xff] }
 0x1a0   :  { %6451 = vlog2.f32 %v402_v51  ;;  %v5483_v51 = vld [vmem:[%s6846_s12] ss:$0 sm:$0xff] }
 0x1aa   :  { %v6452_v52 = vpop.eup %6451 }
 0x1ab   :  { %v404_v54 = vmul.f32 0.6931472, %v6452_v52 }
 0x1ad   :  { %v405_v55 = vadd.f32 %v404_v54, %v397_v53  ;;  %v7045_v53 = vpack.c.bf16 %v218_v50, %v217_v49 }
 0x1af   :  { %6453 = vtanh.f32 %v405_v55 }
 0x1b9   :  { %v6454_v56 = vpop.eup %6453 }
 0x1ba   :  { %v407_v57 = vmul.f32 %v6454_v56, %v394_v45  ;;  %v6282_v45 = vpack.c.bf16 %v599_v38, %v598_v37 }
 0x1bc   :  { %5875 = vmatmul.mubr.f32.vlgmr.msra.gmra.mrb[2].mxu0 %v407_v57  ;;  %v875_v57 = vld [vmem:[%s7614_s5] sm:$0xff] }
 0x1bd   :  { %5926 = vmatprep.mubr.msk.f32.mxu0 %vm6754_vm0, %v6755_v1 }
 0x213   :  { %v747_v58 = vpop.xlane.xlu0 %746 }
 0x214   :  { %v752_v59 = vmul.f32 0.03125, %v747_v58  ;;  %v876_v58 = vld [vmem:[%s7614_s5 + $0x8] sm:$0xff] }
 0x216   :  { %v754_v60 = vsub.f32 %v7005_v40, %v752_v59  ;;  %v6292_v59 = vpack.c.bf16 %v876_v58, %v875_v57 }
 0x217   :  { %v750_v61 = vpop.xlane.xlu0 %749 }
 0x218   :  { %v753_v62 = vmul.f32 0.03125, %v750_v61  ;;  %v756_v63 = vmul.f32 %v754_v60, %v754_v60  ;;  %v878_v61 = vld [vmem:[%s7614_s5 + $0x18] sm:$0xff] }
 0x21a   :  { %v7015_v2 = vsub.f32 %v7003_v39, %v753_v62  ;;  %v758_v3 = vsel %vm323_vm2, %v756_v63, 0.0 }
 0x21b   :  { %759 = vadd.xlane.f32.xlu1 %v758_v3 }
 0x21c   :  { %v757_v4 = vmul.f32 %v7015_v2, %v7015_v2 }
 0x21e   :  { %v761_v5 = vsel %vm323_vm2, %v757_v4, 0.0 }
 0x21f   :  { %762 = vadd.xlane.f32.xlu1 %v761_v5  ;;  %v214_v5 = vld [vmem:[#allocation6 + $0x8] sm:$0xff] }
 0x28f   :  { %v497_v13 = vpop.f32.mrb[2].mxu0 }
 0x290   :  { %v498_v14 = vadd.f32 %v5477_v12, %v497_v13  ;;  %v5876_v15 = vpop.f32.mrb[3].mxu0 }
 0x292   :  { %v502_v16 = vand.u32 2147483647, %v498_v14  ;;  %v501_v26 = vmax.f32 %v498_v14, 0.0 }
 0x294   :  { %v503_v17 = vsub.f32 0.0, %v502_v16 }
 0x296   :  { %v504_v18 = vmul.f32 1.442695, %v503_v17  ;;  %v5486_v17 = vld [vmem:[%s7615_s25] ss:$0 sm:$0xff] }
 0x298   :  { %6455 = vpow2.f32 %v504_v18 }
 0x2a2   :  { %v6456_v19 = vpop.eup %6455 }
 0x2a3   :  { %v506_v20 = vadd.f32 1.0, %v6456_v19 }
 0x2a5   :  { %6457 = vlog2.f32 %v506_v20 }
 0x2a8   :  { %v760_v21 = vpop.xlane.xlu1 %759 }
 0x2a9   :  { %v764_v22 = vmul.f32 0.03125, %v760_v21 }
 0x2ab   :  { %v766_v24 = vadd.f32 1e-05, %v764_v22 }
 0x2ac   :  { %v763_v25 = vpop.xlane.xlu1 %762 }
 0x2ad   :  { %v765_v29 = vmul.f32 0.03125, %v763_v25  ;;  %6459 = vrsqrt.f32 %v766_v24 }
 0x2af   :  { %v6458_v23 = vpop.eup %6457  ;;  %v767_v30 = vadd.f32 1e-05, %v765_v29 }
 0x2b0   :  { %v508_v27 = vmul.f32 0.6931472, %v6458_v23 }
 0x2b2   :  { %v509_v28 = vadd.f32 %v508_v27, %v501_v26 }
 0x2b4   :  { %6461 = vtanh.f32 %v509_v28 }
 0x2b5   :  { %6463 = vrsqrt.f32 %v767_v30 }
 0x2b7   :  { %v6460_v33 = vpop.eup %6459 }
 0x2b8   :  { %v770_v43 = vmul.f32 %v6460_v33, %v754_v60  ;;  %v877_v60 = vld [vmem:[%s7614_s5 + $0x10] sm:$0xff] }
 0x2b9   :  { %v6296_v62 = vpack.c.bf16 %v878_v61, %v877_v60 }
 0x2ba   :  { %v778_v48 = vmul.f32 %v5482_v44, %v770_v43 }
 0x2bc   :  { %v786_v54 = vadd.f32 %v5483_v51, %v778_v48 }
 0x2be   :  { %v6462_v34 = vpop.eup %6461  ;;  %v788_v12 = vmul.f32 %v786_v54, %v211_v6 }
 0x2bf   :  { %v7030_v36 = vmul.f32 %v6462_v34, %v498_v14  ;;  %v6464_v47 = vpop.eup %6463 }
 0x2c0   :  { %v771_v52 = vmul.f32 %v6464_v47, %v7015_v2 }
 0x2c1   :  { %5886 = vmatmul.mubr.msk.f32.vlgmr.msra.gmra.mrb[2].mxu1 %vm323_vm2, %v7030_v36 }
 0x2c2   :  { %6280 = vmatpush3.bf16.msra.mxu1 %v6279_v35  ;;  %5896 = vmatprep.mubr.msk.f32.mxu1 %vm6754_vm0, %v6755_v1  ;;  %v779_v55 = vmul.f32 %v5482_v44, %v771_v52 }
 0x2c3   :  { %6281 = vmatprep.subr.bf16.mxu1 %v6753_v0 }
 0x2c4   :  { %v787_v56 = vadd.f32 %v5483_v51, %v779_v55 }
 0x2c6   :  { %6283 = vmatpush3.bf16.msra.mxu1 %v6282_v45  ;;  %v789_v14 = vmul.f32 %v787_v56, %v212_v8 }
 0x2c7   :  { %6285 = vmatprep.subr.bf16.mxu1 %v7040_v46 }
 0x2c9   :  { %5897 = vmatmul.mubr.msk.f32.vlgmr.msra.gmra.mrb[4].mxu1 %vm323_vm2, %v7030_v36 }
 0x2ca   :  { %6287 = vmatpush3.bf16.msra.mxu1 %v7040_v46  ;;  %5907 = vmatprep.mubr.msk.f32.mxu1 %vm323_vm2, %v786_v54 }
 0x2cb   :  { %6289 = vmatprep.subr.bf16.mxu1 %v7045_v53 }
 0x2ce   :  { %6291 = vmatpush3.bf16.msra.mxu1 %v7045_v53 }
 0x2cf   :  { %6293 = vmatprep.subr.bf16.mxu1 %v6292_v59 }
 0x2d1   :  { %5908 = vmatmul.mubr.msk.f32.vlgmr.msra.gmra.mrb[6].mxu1 %vm323_vm2, %v787_v56 }
 0x2d2   :  { %6295 = vmatpush3.bf16.msra.mxu1 %v6292_v59 }
 0x2d3   :  { %6297 = vmatprep.subr.bf16.mxu1 %v6296_v62 }
 0x2d6   :  { %6299 = vmatpush3.bf16.msra.mxu1 %v6296_v62 }
 0x2d7   :  { %5949 = vmatprep.subr.mxu1 %v6755_v1 }
 0x394   :  { %v7059_v63 = vpop.f32.mrb[2].mxu1 }
 0x395   :  { %v5887_v2 = vpop.f32.mrb[3].mxu1 }
 0x39c   :  { %v7061_v3 = vpop.f32.mrb[4].mxu1 }
 0x39d   :  { %v5898_v4 = vpop.f32.mrb[5].mxu1 }
 0x3a4   :  { %v5909_v9 = vpop.f32.mrb[6].mxu1 }
 0x3a5   :  { %v872_v10 = vmul.f32 %v5909_v9, %v214_v5  ;;  %v862_v11 = vpop.f32.mrb[7].mxu1 }
 0x3a6   :  { %v871_v13 = vmul.f32 %v862_v11, %v213_v7 }
 0x3a7   :  { %v874_v16 = vadd.f32 %v872_v10, %v789_v14 }
 0x3a8   :  { %v873_v15 = vadd.f32 %v871_v13, %v788_v12 }
 0x3aa   :  { %5918 = vmatprep.mubr.msk.f32.mxu1 %vm323_vm2, %v873_v15 }
 0x3ab   :  { %5919 = vmatmul.mubr.msk.f32.vlgmr.msra.gmra.mrb[8].mxu1 %vm323_vm2, %v874_v16 }
 0x3ac   :  { %5921 = vmatprep.mubr.msk.f32.mxu1 %vm323_vm2, %v786_v54 }
 0x3af   :  { %5922 = vmatmul.mubr.msk.f32.gmra.mrb[10].mxu1 %vm323_vm2, %v787_v56 }
 0x3b0   :  { %5951 = vmatprep.mubr.msk.f32.mxu1 %vm6754_vm0, %v6755_v1 }
 0x47e   :  { %v5920_v18 = vpop.f32.mrb[8].mxu1 }
 0x47f   :  { %v7070_v19 = vadd.f32 %v5920_v18, %v5486_v17  ;;  %v958_v20 = vpop.f32.mrb[9].mxu1 }
 0x480   :  { %v7072_v21 = vadd.f32 %v5486_v17, %v958_v20 }
 0x481   :  { %1062 = vrot.lane.b32.xlu1 %v7070_v19, %s6756_s29  ;;  %v7085_v26 = vmul.f32 0.35355338, %v7070_v19 }
 0x482   :  { %v5923_v22 = vpop.f32.mrb[10].mxu1  ;;  %984 = vrot.lane.b32.xlu0 %v7072_v21, %s6756_s29  ;;  %v7091_v29 = vmul.f32 0.35355338, %v7072_v21 }
 0x483   :  { %v7078_v23 = vadd.f32 %v5923_v22, %v5486_v17  ;;  %v968_v24 = vpop.f32.mrb[11].mxu1 }
 0x484   :  { %v7080_v25 = vadd.f32 %v5486_v17, %v968_v24 }
 0x485   :  { %1395 = vrot.lane.b32.xlu1 %v7070_v19, %s6757_s8 }
 0x489   :  { %1393 = vrot.lane.b32.xlu1 %v7085_v26, %s6758_s14 }
 0x4f3   :  { %v1063_v27 = vpop.permute.xlu1 %1062 }
 0x4f4   :  { %v985_v28 = vpop.permute.xlu0 %984 }
 0x4f5   :  { %5925 = vmatpush3.xpose.msk.msra.mxu0 %vm229_vm1, %v985_v28 }
 0x4f6   :  { %5929 = vmatprep.subr.mxu0 %v6755_v1 }
 0x4f7   :  { %v1396_v30 = vpop.permute.xlu1 %1395 }
 0x4f8   :  { %5927 = vmatmul.mubr.msk.f32.vlgmr.msra.gmra.mrb[4].mxu0 %vm229_vm1, %v7091_v29  ;;  %5950 = vmatpush3.xpose.msk.msra.mxu1 %vm229_vm1, %v1396_v30 }
 0x4f9   :  { %5930 = vmatpush3.xpose.msk.msra.mxu0 %vm229_vm1, %v1063_v27  ;;  %5931 = vmatprep.mubr.msk.f32.mxu0 %vm6754_vm0, %v6755_v1 }
 0x4fa   :  { %5934 = vmatprep.subr.mxu0 %v6755_v1  ;;  %5959 = vmatprep.subr.mxu1 %v6755_v1 }
 0x4fb   :  { %v1394_v31 = vpop.permute.xlu1 %1393 }
 0x4fc   :  { %5932 = vmatmul.mubr.msk.f32.vlgmr.msra.gmra.mrb[6].mxu0 %vm229_vm1, %v7085_v26  ;;  %5952 = vmatmul.mubr.msk.f32.vlgmr.msra.gmra.mrb[12].mxu1 %vm229_vm1, %v1394_v31 }
 0x4fd   :  { %5936 = vmatprep.mubr.msk.f32.mxu0 %vm6754_vm0, %v6755_v1  ;;  %5961 = vmatprep.mubr.msk.f32.mxu1 %vm6754_vm0, %v6755_v1 }
 0x5cb   :  { %v1057_v32 = vpop.f32.mrb[4].mxu0 }
 0x5cc   :  { %v5928_v33 = vpop.f32.mrb[5].mxu0  ;;  %v1139_v34 = vsel %vm229_vm1, %v1057_v32, -inf }
 0x5cd   :  { %1140 = vmax.xlane.f32.xlu0 %v1139_v34 }
 0x5cf   :  { %v1135_v35 = vpop.f32.mrb[6].mxu0  ;;  %v1467_v37 = vpop.f32.mrb[12].mxu1 }
 0x5d0   :  { %v5933_v38 = vpop.f32.mrb[7].mxu0  ;;  %v5953_v41 = vpop.f32.mrb[13].mxu1  ;;  %v1142_v42 = vsel %vm229_vm1, %v1135_v35, -inf  ;;  %v1474_v55 = vsel %vm229_vm1, %v1467_v37, -inf }
 0x5d1   :  { %1143 = vmax.xlane.f32.xlu1 %v1142_v42 }
 0x5e2   :  { %1239 = vrot.lane.b32.xlu1 %v7078_v23, %s6759_s19 }
 0x5e6   :  { %1317 = vrot.lane.b32.xlu1 %v7072_v21, %s6757_s8 }
 0x5ea   :  { %1315 = vrot.lane.b32.xlu1 %v7091_v29, %s6758_s14 }
 0x65a   :  { %v1141_v43 = vpop.xlane.xlu0 %1140 }
 0x65b   :  { %v1145_v44 = vsub.f32 %v1057_v32, %v1141_v43 }
 0x65d   :  { %v1147_v45 = vmul.f32 1.442695, %v1145_v44 }
 0x65e   :  { %v1144_v47 = vpop.xlane.xlu1 %1143 }
 0x65f   :  { %6465 = vpow2.f32 %v1147_v45  ;;  %v1146_v48 = vsub.f32 %v1135_v35, %v1144_v47 }
 0x661   :  { %v1149_v49 = vmul.f32 1.442695, %v1146_v48 }
 0x662   :  { %v1240_v60 = vpop.permute.xlu1 %1239 }
 0x663   :  { %6467 = vpow2.f32 %v1149_v49 }
 0x666   :  { %v1318_v4 = vpop.permute.xlu1 %1317 }
 0x669   :  { %v6466_v50 = vpop.eup %6465 }
 0x66a   :  { %v1151_v51 = vsel %vm229_vm1, %v6466_v50, 0.0  ;;  %v1316_v5 = vpop.permute.xlu1 %1315 }
 0x66b   :  { %1152 = vadd.xlane.f32.xlu0 %v1151_v51 }
 0x66d   :  { %v6468_v52 = vpop.eup %6467 }
 0x66e   :  { %v1154_v54 = vsel %vm229_vm1, %v6468_v52, 0.0 }
 0x66f   :  { %1155 = vadd.xlane.f32.xlu0 %v1154_v54 }
 0x685   :  { %1162 = vrot.lane.b32.xlu0 %v7080_v25, %s6759_s19 }
 0x6a4   :  { %1475 = vmax.xlane.f32.xlu0 %v1474_v55 }
 0x6ba   :  { %1569 = vrot.lane.b32.xlu0 %v7078_v23, %s6760_s21 }
 0x6be   :  { %1807 = vrot.lane.b32.xlu0 %v7091_v29, %s6761_s7 }
 0x6c2   :  { %1885 = vrot.lane.b32.xlu0 %v7085_v26, %s6761_s7 }
 0x6f8   :  { %v1153_v56 = vpop.xlane.xlu0 %1152 }
 0x6f9   :  { %6469 = vrcp.f32 %v1153_v56 }
 0x6fc   :  { %v1156_v57 = vpop.xlane.xlu0 %1155 }
 0x6fd   :  { %6471 = vrcp.f32 %v1156_v57 }
 0x700   :  { %v1163_v58 = vpop.permute.xlu0 %1162 }
 0x701   :  { %5935 = vmatpush3.msra.mxu0 %v1163_v58 }
 0x702   :  { %5939 = vmatprep.subr.mxu0 %v6755_v1 }
 0x703   :  { %v6470_v59 = vpop.eup %6469 }
 0x704   :  { %v1159_v61 = vmul.f32 %v6470_v59, %v6466_v50 }
 0x706   :  { %5937 = vmatmul.mubr.msk.f32.vlgmr.msra.gmra.mrb[8].mxu0 %vm229_vm1, %v1159_v61 }
 0x707   :  { %v6472_v62 = vpop.eup %6471  ;;  %5940 = vmatpush3.msra.mxu0 %v1240_v60  ;;  %5941 = vmatprep.mubr.msk.f32.mxu0 %vm6754_vm0, %v6755_v1 }
 0x708   :  { %v1160_v2 = vmul.f32 %v6472_v62, %v6468_v52  ;;  %5944 = vmatprep.subr.mxu0 %v6755_v1  ;;  %v980_v62 = vld [vmem:[%s7616_s3 + $0x8] sm:$0xff] }
 0x70a   :  { %5942 = vmatmul.mubr.msk.f32.vlgmr.msra.gmra.mrb[10].mxu0 %vm229_vm1, %v1160_v2  ;;  %v979_v2 = vld [vmem:[%s7616_s3] sm:$0xff] }
 0x70b   :  { %5946 = vmatprep.mubr.msk.f32.mxu0 %vm6754_vm0, %v6755_v1 }
 0x70e   :  { %5945 = vmatpush3.xpose.msk.msra.mxu0 %vm229_vm1, %v1318_v4 }
 0x70f   :  { %5954 = vmatprep.subr.mxu0 %v6755_v1 }
 0x711   :  { %5947 = vmatmul.mubr.msk.f32.vlgmr.msra.gmra.mrb[12].mxu0 %vm229_vm1, %v1316_v5 }
 0x712   :  { %5956 = vmatprep.mubr.msk.f32.mxu0 %vm6754_vm0, %v6755_v1 }
 0x731   :  { %v1476_v6 = vpop.xlane.xlu0 %1475 }
 0x732   :  { %v1478_v7 = vsub.f32 %v1467_v37, %v1476_v6 }
 0x734   :  { %v1481_v8 = vmul.f32 1.442695, %v1478_v7 }
 0x735   :  { %v1570_v9 = vpop.permute.xlu0 %1569 }
 0x736   :  { %6473 = vpow2.f32 %v1481_v8  ;;  %5960 = vmatpush3.msra.mxu1 %v1570_v9 }
 0x737   :  { %5974 = vmatprep.subr.mxu1 %v6755_v1 }
 0x739   :  { %v1808_v20 = vpop.permute.xlu0 %1807 }
 0x73d   :  { %v1886_v27 = vpop.permute.xlu0 %1885 }
 0x740   :  { %v6474_v10 = vpop.eup %6473 }
 0x741   :  { %v1486_v11 = vsel %vm229_vm1, %v6474_v10, 0.0 }
 0x742   :  { %1487 = vadd.xlane.f32.xlu1 %v1486_v11 }
 0x753   :  { %1809 = vrot.lane.b32.xlu1 %v7072_v21, %s6762_s10 }
 0x757   :  { %1887 = vrot.lane.b32.xlu1 %v7070_v19, %s6762_s10 }
 0x7cf   :  { %v1488_v12 = vpop.xlane.xlu1 %1487 }
 0x7d0   :  { %6475 = vrcp.f32 %v1488_v12 }
 0x7d3   :  { %v1810_v17 = vpop.permute.xlu1 %1809 }
 0x7d7   :  { %v1888_v24 = vpop.permute.xlu1 %1887 }
 0x7d9   :  { %v7147_v13 = vpop.f32.mrb[8].mxu0 }
 0x7da   :  { %v6476_v14 = vpop.eup %6475  ;;  %v5938_v15 = vpop.f32.mrb[9].mxu0 }
 0x7db   :  { %v1492_v16 = vmul.f32 %v6476_v14, %v6474_v10  ;;  %v981_v15 = vld [vmem:[%s7616_s3 + $0x10] sm:$0xff] }
 0x7dd   :  { %v7149_v18 = vpop.f32.mrb[10].mxu0  ;;  %5962 = vmatmul.mubr.msk.f32.vlgmr.msra.gmra.mrb[14].mxu1 %vm229_vm1, %v1492_v16 }
 0x7de   :  { %5975 = vmatpush3.xpose.msk.msra.mxu1 %vm229_vm1, %v1810_v17  ;;  %v5943_v22 = vpop.f32.mrb[11].mxu0  ;;  %5976 = vmatprep.mubr.msk.f32.mxu1 %vm6754_vm0, %v6755_v1 }
 0x7df   :  { %5979 = vmatprep.subr.mxu1 %v6755_v1 }
 0x7e1   :  { %5977 = vmatmul.mubr.msk.f32.vlgmr.msra.gmra.mrb[16].mxu1 %vm229_vm1, %v1808_v20 }
 0x7e2   :  { %5980 = vmatpush3.xpose.msk.msra.mxu1 %vm229_vm1, %v1888_v24  ;;  %5981 = vmatprep.mubr.msk.f32.mxu1 %vm6754_vm0, %v6755_v1 }
 0x7e3   :  { %5989 = vmatprep.subr.mxu1 %v6755_v1 }
 0x7e4   :  { %v1389_v28 = vpop.f32.mrb[12].mxu0 }
 0x7e5   :  { %v5948_v30 = vpop.f32.mrb[13].mxu0  ;;  %5982 = vmatmul.mubr.msk.f32.vlgmr.msra.gmra.mrb[18].mxu1 %vm229_vm1, %v1886_v27  ;;  %v1471_v31 = vsel %vm229_vm1, %v1389_v28, -inf }
 0x7e6   :  { %1472 = vmax.xlane.f32.xlu1 %v1471_v31  ;;  %5991 = vmatprep.mubr.msk.f32.mxu1 %vm6754_vm0, %v6755_v1 }
 0x873   :  { %v1473_v32 = vpop.xlane.xlu1 %1472 }
 0x874   :  { %v1477_v33 = vsub.f32 %v1389_v28, %v1473_v32 }
 0x876   :  { %v1479_v34 = vmul.f32 1.442695, %v1477_v33 }
 0x878   :  { %6477 = vpow2.f32 %v1479_v34 }
 0x882   :  { %v6478_v35 = vpop.eup %6477 }
 0x883   :  { %v1483_v37 = vsel %vm229_vm1, %v6478_v35, 0.0 }
 0x884   :  { %1484 = vadd.xlane.f32.xlu0 %v1483_v37  ;;  %v6766_v37 = vmov 1966171168  }
 0x89a   :  { %1493 = vrot.lane.b32.xlu0 %v7080_v25, %s6760_s21 }
 0x89e   :  { %2061 = vrot.lane.b32.xlu0 %v7078_v23, %s6763_s11 }
 0x8a2   :  { %2222 = vrot.lane.b32.xlu0 %v7072_v21, %s6764_s15 }
 0x8a6   :  { %2300 = vrot.lane.b32.xlu0 %v7070_v19, %s6764_s15 }
 0x8aa   :  { %2220 = vrot.lane.b32.xlu0 %v7091_v29, %s6765_s18 }
 0x8b0   :  { %v1641_v38 = vpop.f32.mrb[14].mxu1 }
 0x8b1   :  { %v5963_v41 = vpop.f32.mrb[15].mxu1 }
 0x8b2   :  { %v681_v41 = vlaneseq }
 0x8b4   :  { %v1881_v42 = vpop.f32.mrb[16].mxu1 }
 0x8b5   :  { %v5978_v43 = vpop.f32.mrb[17].mxu1  ;;  %v1963_v44 = vsel %vm229_vm1, %v1881_v42, -inf }
 0x8b6   :  { %1964 = vmax.xlane.f32.xlu1 %v1963_v44 }
 0x8b8   :  { %v1959_v45 = vpop.f32.mrb[18].mxu1 }
 0x8b9   :  { %v5983_v47 = vpop.f32.mrb[19].mxu1  ;;  %v1966_v48 = vsel %vm229_vm1, %v1959_v45, -inf }
 0x8ba   :  { %1967 = vmax.xlane.f32.xlu1 %v1966_v48  ;;  %v5478_v47 = vld [vmem:[%s7617_s22] ss:$0 sm:$0xff] }
 0x8bb   :  { %v593_v48 = vadd.f32 %v5478_v47, %v7059_v63 }
 0x911   :  { %v1485_v21 = vpop.xlane.xlu0 %1484 }
 0x912   :  { %6479 = vrcp.f32 %v1485_v21 }
 0x915   :  { %v1494_v49 = vpop.permute.xlu0 %1493 }
 0x916   :  { %5955 = vmatpush3.msra.mxu0 %v1494_v49 }
 0x917   :  { %5964 = vmatprep.subr.mxu0 %v980_v62 }
 0x919   :  { %v2062_v19 = vpop.permute.xlu0 %2061 }
 0x91a   :  { %5990 = vmatpush3.msra.mxu1 %v2062_v19 }
 0x91b   :  { %5999 = vmatprep.subr.mxu1 %v6755_v1 }
 0x91c   :  { %v6480_v29 = vpop.eup %6479 }
 0x91d   :  { %v1491_v50 = vmul.f32 %v6480_v29, %v6478_v35  ;;  %v2223_v6 = vpop.permute.xlu0 %2222 }
 0x91f   :  { %5957 = vmatmul.mubr.msk.f32.vlgmr.msra.gmra.mrb[14].mxu0 %vm229_vm1, %v1491_v50 }
 0x920   :  { %5965 = vmatpush3.msra.mxu0 %v980_v62 }
 0x921   :  { %5969 = vmatprep.subr.mxu0 %v979_v2  ;;  %v2301_v8 = vpop.permute.xlu0 %2300 }
 0x943   :  { %v1965_v51 = vpop.xlane.xlu1 %1964 }
 0x944   :  { %v1969_v52 = vsub.f32 %v1881_v42, %v1965_v51 }
 0x946   :  { %v1971_v54 = vmul.f32 1.442695, %v1969_v52 }
 0x947   :  { %v1968_v55 = vpop.xlane.xlu1 %1967 }
 0x948   :  { %6481 = vpow2.f32 %v1971_v54  ;;  %v1970_v56 = vsub.f32 %v1959_v45, %v1968_v55  ;;  %v682_v45 = vshrl.u32 %v681_v41, 7 }
 0x94a   :  { %v1973_v57 = vmul.f32 1.442695, %v1970_v56  ;;  %v7226_v50 = vsub.s32 0, %v682_v45 }
 0x94c   :  { %6483 = vpow2.f32 %v1973_v57 }
 0x952   :  { %v6482_v58 = vpop.eup %6481 }
 0x953   :  { %v1975_v59 = vsel %vm229_vm1, %v6482_v58, 0.0 }
 0x954   :  { %1976 = vadd.xlane.f32.xlu1 %v1975_v59 }
 0x956   :  { %v6484_v60 = vpop.eup %6483 }
 0x957   :  { %v1978_v61 = vsel %vm229_vm1, %v6484_v60, 0.0 }
 0x958   :  { %1979 = vadd.xlane.f32.xlu1 %v1978_v61 }
 0x969   :  { %1985 = vrot.lane.b32.xlu1 %v7080_v25, %s6763_s11 }
 0x96d   :  { %2298 = vrot.lane.b32.xlu1 %v7085_v26, %s6765_s18  ;;  %v2221_v26 = vpop.permute.xlu0 %2220 }
 0x9e1   :  { %v1977_v4 = vpop.xlane.xlu1 %1976 }
 0x9e5   :  { %v1980_v5 = vpop.xlane.xlu1 %1979 }
 0x9e6   :  { %6485 = vrcp.f32 %v1980_v5 }
 0x9e7   :  { %6487 = vrcp.f32 %v1977_v4 }
 0x9e9   :  { %v1986_v14 = vpop.permute.xlu1 %1985 }
 0x9ed   :  { %v2299_v28 = vpop.permute.xlu1 %2298 }
 0x9f0   :  { %v6486_v7 = vpop.eup %6485 }
 0x9f1   :  { %v1984_v9 = vmul.f32 %v6486_v7, %v6484_v60  ;;  %v6488_v12 = vpop.eup %6487 }
 0x9f2   :  { %v1565_v10 = vpop.f32.mrb[14].mxu0 }
 0x9f3   :  { %v5958_v11 = vpop.f32.mrb[15].mxu0  ;;  %5966 = vmatprep.mubr.msk.f32.mxu0 %vm229_vm1, %v1565_v10  ;;  %5992 = vmatmul.mubr.msk.f32.vlgmr.msra.gmra.mrb[20].mxu1 %vm229_vm1, %v1984_v9  ;;  %v5523_v10 = vld [vmem:[%s7618_s23] ss:$0 sm:$0xff] }
 0x9f4   :  { %5967 = vmatmul.mubr.msk.f32.vlgmr.msra.gmra.mrb[16].mxu0 %vm229_vm1, %v1641_v38  ;;  %6000 = vmatpush3.xpose.msk.msra.mxu1 %vm229_vm1, %v2223_v6  ;;  %v679_v38 = vunpack.c.l.s4 %v6766_v37  ;;  %v982_v6 = vld [vmem:[%s7616_s3 + $0x18] sm:$0xff] }
 0x9f5   :  { %5970 = vmatpush3.msra.mxu0 %v979_v2  ;;  %5971 = vmatprep.mubr.msk.f32.mxu0 %vm229_vm1, %v7147_v13  ;;  %v1983_v13 = vmul.f32 %v6488_v12, %v6482_v58 }
 0x9f6   :  { %6001 = vmatprep.mubr.msk.f32.mxu1 %vm6754_vm0, %v6755_v1  ;;  %5984 = vmatprep.subr.mxu0 %v6755_v1  ;;  %v680_v44 = vunpack.c.0.s8 %v679_v38 }
 0x9f7   :  { %6002 = vmatmul.mubr.msk.f32.vlgmr.msra.gmra.mrb[22].mxu1 %vm229_vm1, %v2221_v26  ;;  %6009 = vmatprep.subr.mxu1 %v6755_v1 }
 0x9f8   :  { %6011 = vmatprep.mubr.msk.f32.mxu1 %vm6754_vm0, %v6755_v1  ;;  %v7222_v21 = vsub.s32 %v680_v44, %v682_v45 }
 0x9fa   :  { %v684_v49 = vrot.slane %v593_v48, %v7222_v21 }
 0x9fc   :  { %5972 = vmatmul.mubr.msk.f32.vlgmr.msra.gmra.mrb[16].mxu0 %vm229_vm1, %v7149_v18  ;;  %v685_v19 = vcombine.high %v684_v49, %v684_v49  ;;  %v692_v29 = vrot.slane %v684_v49, %v7222_v21 }
 0x9fd   :  { %5985 = vmatpush3.msra.mxu0 %v1986_v14  ;;  %5986 = vmatprep.mubr.msk.f32.mxu0 %vm6754_vm0, %v6755_v1 }
 0x9fe   :  { %5994 = vmatprep.subr.mxu0 %v981_v15  ;;  %v703_v51 = vrot.slane %v692_v29, %v7226_v50  ;;  %v699_v52 = vrot.slane %v685_v19, %v7222_v21  ;;  %v2700_v29 = vld [vmem:[%s7619_s26] sm:$0xff] }
 0xa00   :  { %5987 = vmatmul.mubr.msk.f32.vlgmr.msra.gmra.mrb[18].mxu0 %vm229_vm1, %v1983_v13  ;;  %v707_v63 = vrot.slane %v699_v52, %v7226_v50 }
 0xa01   :  { %5995 = vmatpush3.msra.mxu0 %v981_v15 }
 0xa02   :  { %6004 = vmatprep.subr.mxu0 %v6755_v1  ;;  %v2643_v14 = vadd.f32 1.0, %v707_v63 }
 0xac6   :  { %v2133_v16 = vpop.f32.mrb[20].mxu1 }
 0xac7   :  { %v5993_v17 = vpop.f32.mrb[21].mxu1 }
 0xaca   :  { %v2294_v20 = vpop.f32.mrb[22].mxu1 }
 0xacb   :  { %v6003_v22 = vpop.f32.mrb[23].mxu1  ;;  %v2376_v24 = vsel %vm229_vm1, %v2294_v20, -inf }
 0xacc   :  { %2377 = vmax.xlane.f32.xlu0 %v2376_v24  ;;  %v5480_v24 = vld [vmem:[%s6916_s27] ss:$0 sm:$0xff] }
 0xad3   :  { %v2057_v18 = vpop.f32.mrb[18].mxu0 }
 0xad4   :  { %v5988_v27 = vpop.f32.mrb[19].mxu0  ;;  %5996 = vmatprep.mubr.msk.f32.mxu0 %vm229_vm1, %v2057_v18 }
 0xad5   :  { %5997 = vmatmul.mubr.msk.f32.vlgmr.msra.gmra.mrb[16].mxu0 %vm229_vm1, %v2133_v16  ;;  %v2642_v16 = vadd.f32 1.0, %v703_v51 }
 0xad6   :  { %6005 = vmatpush3.xpose.msk.msra.mxu0 %vm229_vm1, %v2301_v8  ;;  %6006 = vmatprep.mubr.msk.f32.mxu0 %vm6754_vm0, %v6755_v1 }
 0xad7   :  { %6014 = vmatprep.subr.mxu0 %v6755_v1 }
 0xad9   :  { %6007 = vmatmul.mubr.msk.f32.vlgmr.msra.gmra.mrb[20].mxu0 %vm229_vm1, %v2299_v28 }
 0xada   :  { %6016 = vmatprep.mubr.msk.f32.mxu0 %vm6754_vm0, %v6755_v1 }
 0xb59   :  { %v2378_v30 = vpop.xlane.xlu0 %2377 }
 0xb5a   :  { %v2382_v31 = vsub.f32 %v2294_v20, %v2378_v30 }
 0xb5c   :  { %v2384_v32 = vmul.f32 1.442695, %v2382_v31  ;;  %v674_v31 = vadd.f32 %v5480_v24, %v7061_v3 }
 0xb5e   :  { %6489 = vpow2.f32 %v2384_v32 }
 0xb68   :  { %v6490_v33 = vpop.eup %6489 }
 0xb69   :  { %v2388_v34 = vsel %vm229_vm1, %v6490_v33, 0.0 }
 0xb6a   :  { %2389 = vadd.xlane.f32.xlu0 %v2388_v34 }
 0xbac   :  { %v2372_v35 = vpop.f32.mrb[20].mxu0 }
 0xbad   :  { %v6008_v42 = vpop.f32.mrb[21].mxu0  ;;  %v2379_v43 = vsel %vm229_vm1, %v2372_v35, -inf }
 0xbae   :  { %2380 = vmax.xlane.f32.xlu1 %v2379_v43 }
 0xbbf   :  { %2474 = vrot.lane.b32.xlu1 %v7078_v23, %s6767_s9 }
 0xbc3   :  { %2648 = vrot.lane.b32.xlu1 %v703_v51, %s6756_s29  ;;  %v2701_v51 = vld [vmem:[%s7619_s26 + $0x8] sm:$0xff] }
 0xbc4   :  { %v6300_v52 = vpack.c.bf16 %v2701_v51, %v2700_v29 }
 0xbc7   :  { %2650 = vrot.lane.b32.xlu1 %v707_v63, %s6756_s29  ;;  %v2702_v63 = vld [vmem:[%s7619_s26 + $0x10] sm:$0xff] }
 0xbf7   :  { %v2390_v59 = vpop.xlane.xlu0 %2389 }
 0xc3b   :  { %v2381_v54 = vpop.xlane.xlu1 %2380 }
 0xc3c   :  { %v2383_v55 = vsub.f32 %v2372_v35, %v2381_v54  ;;  %v2703_v54 = vld [vmem:[%s7619_s26 + $0x18] sm:$0xff] }
 0xc3e   :  { %v2386_v56 = vmul.f32 1.442695, %v2383_v55  ;;  %v6304_v55 = vpack.c.bf16 %v2703_v54, %v2702_v63 }
 0xc3f   :  { %v2475_v57 = vpop.permute.xlu1 %2474 }
 0xc40   :  { %6491 = vpow2.f32 %v2386_v56  ;;  %6015 = vmatpush3.msra.mxu0 %v2475_v57 }
 0xc41   :  { %6493 = vrcp.f32 %v2390_v59  ;;  %6019 = vmatprep.subr.mxu0 %v982_v6 }
 0xc43   :  { %v2649_v11 = vpop.permute.xlu1 %2648 }
 0xc47   :  { %v2651_v18 = vpop.permute.xlu1 %2650 }
 0xc4a   :  { %v6492_v58 = vpop.eup %6491 }
 0xc4b   :  { %v2391_v23 = vsel %vm229_vm1, %v6492_v58, 0.0  ;;  %v6494_v61 = vpop.eup %6493 }
 0xc4c   :  { %2392 = vadd.xlane.f32.xlu0 %v2391_v23  ;;  %v2396_v62 = vmul.f32 %v6494_v61, %v6490_v33 }
 0xc62   :  { %2398 = vrot.lane.b32.xlu0 %v7080_v25, %s6767_s9 }
 0xcd9   :  { %v2393_v60 = vpop.xlane.xlu0 %2392 }
 0xcda   :  { %6495 = vrcp.f32 %v2393_v60 }
 0xcdd   :  { %v2399_v2 = vpop.permute.xlu0 %2398 }
 0xcde   :  { %6010 = vmatpush3.msra.mxu1 %v2399_v2 }
 0xcdf   :  { %6012 = vmatmul.mubr.msk.f32.vlgmr.msra.gmra.mrb[24].mxu1 %vm229_vm1, %v2396_v62  ;;  %6301 = vmatprep.subr.bf16.mxu1 %v6300_v52  ;;  %v5524_v62 = vld [vmem:[%s7620_s28] ss:$0 sm:$0xff] }
 0xce0   :  { %6303 = vmatpush3.bf16.msra.mxu1 %v6300_v52 }
 0xce1   :  { %6305 = vmatprep.subr.bf16.mxu1 %v6304_v55 }
 0xce4   :  { %v6496_v4 = vpop.eup %6495  ;;  %6307 = vmatpush3.bf16.msra.mxu1 %v6304_v55 }
 0xce5   :  { %v2397_v5 = vmul.f32 %v6496_v4, %v6492_v58  ;;  %6324 = vmatprep.subr.bf16.mxu1 %v6753_v0  ;;  %v5525_v4 = vld [vmem:[%s7621_s1] ss:$0 sm:$0xff] }
 0xce7   :  { %6017 = vmatmul.mubr.msk.f32.vlgmr.msra.gmra.mrb[22].mxu0 %vm229_vm1, %v2397_v5 }
 0xce8   :  { %6020 = vmatpush3.msra.mxu0 %v982_v6 }
 0xdb2   :  { %v2470_v7 = vpop.f32.mrb[24].mxu1 }
 0xdb3   :  { %v6013_v25 = vpop.f32.mrb[25].mxu1  ;;  %6021 = vmatprep.mubr.msk.f32.mxu0 %vm229_vm1, %v2470_v7 }
 0xdba   :  { %v2546_v8 = vpop.f32.mrb[22].mxu0 }
 0xdbb   :  { %v6018_v9 = vpop.f32.mrb[23].mxu0  ;;  %6022 = vmatmul.mubr.msk.f32.vlgmr.msra.gmra.mrb[16].mxu0 %vm229_vm1, %v2546_v8  ;;  %v5532_v8 = vld [vmem:[%s6871_s24 + $0x20] sm:$0xff] }
 0xdbc   :  { %v5533_v9 = vld [vmem:[%s6871_s24 + $0x28] sm:$0xff] }
 0xe8e   :  { %v6023_v26 = vpop.f32.mrb[16].mxu0 }
 0xe8f   :  { %v2641_v12 = vadd.f32 %v6023_v26, %v5523_v10  ;;  %v2622_v13 = vpop.f32.mrb[17].mxu0 }
 0xe90   :  { %v2640_v15 = vadd.f32 %v5523_v10, %v2622_v13 }
 0xe91   :  { %v2645_v17 = vmul.f32 %v2643_v14, %v2641_v12  ;;  %v5534_v12 = vld [vmem:[%s6871_s24 + $0x30] sm:$0xff]  ;;  %v5535_v14 = vld [vmem:[%s6871_s24 + $0x38] sm:$0xff]  ;;  %s7623_s24 = sld [smem:[#allocation27_spill]] }
 0xe92   :  { %v2644_v20 = vmul.f32 %v2642_v16, %v2640_v15  ;;  %v6328_v13 = vpack.c.bf16 %v5535_v14, %v5534_v12  ;;  %v5539_v15 = vld [vmem:[%s6911_s20 + $0x20] sm:$0xff]  ;;  %v5540_v16 = vld [vmem:[%s6911_s20 + $0x28] sm:$0xff] }
 0xe93   :  { %v2647_v22 = vadd.f32 %v2645_v17, %v7003_v39  ;;  %v717_v39 = vrot.slane %v674_v31, %v7222_v21  ;;  %v6331_v17 = vpack.c.bf16 %v5540_v16, %v5539_v15 }
 0xe94   :  { %v2646_v27 = vadd.f32 %v2644_v20, %v7005_v40  ;;  %v5541_v20 = vld [vmem:[%s6911_s20 + $0x30] sm:$0xff] }
 0xe95   :  { %v7247_v28 = vadd.f32 %v2651_v18, %v2647_v22  ;;  %v718_v34 = vcombine.high %v717_v39, %v717_v39  ;;  %v725_v49 = vrot.slane %v717_v39, %v7222_v21  ;;  %v5542_v22 = vld [vmem:[%s6911_s20 + $0x38] sm:$0xff]  ;;  %v2810_v18 = vld [vmem:[%s7622_s13] sm:$0xff] }
 0xe96   :  { %v7249_v30 = vadd.f32 %v2649_v11, %v2646_v27  ;;  %v6325_v11 = vpack.c.bf16 %v5533_v9, %v5532_v8  ;;  %v6334_v24 = vpack.c.bf16 %v5542_v22, %v5541_v20  ;;  %v2811_v27 = vld [vmem:[%s7622_s13 + $0x8] sm:$0xff] }
 0xe97   :  { %v2661_v32 = vsel %vm323_vm2, %v7247_v28, 0.0  ;;  %v732_v35 = vrot.slane %v718_v34, %v7222_v21  ;;  %v7269_v19 = vrot.slane %v725_v49, %v7226_v50  ;;  %v6308_v31 = vpack.c.bf16 %v2811_v27, %v2810_v18  ;;  %v2814_v34 = vld [vmem:[%s7622_s13 + $0x20] sm:$0xff] }
 0xe98   :  { %2662 = vadd.xlane.f32.xlu1 %v2661_v32  ;;  %v2658_v33 = vsel %vm323_vm2, %v7249_v30, 0.0  ;;  %v2812_v32 = vld [vmem:[%s7622_s13 + $0x10] sm:$0xff] }
 0xe99   :  { %2659 = vadd.xlane.f32.xlu0 %v2658_v33  ;;  %v7259_v40 = vrot.slane %v732_v35, %v7226_v50  ;;  %6309 = vmatprep.subr.bf16.mxu0 %v6308_v31  ;;  %v2813_v33 = vld [vmem:[%s7622_s13 + $0x18] sm:$0xff]  ;;  %v2815_v35 = vld [vmem:[%s7622_s13 + $0x28] sm:$0xff] }
 0xe9a   :  { %6311 = vmatpush3.bf16.msra.mxu0 %v6308_v31  ;;  %v6312_v39 = vpack.c.bf16 %v2813_v33, %v2812_v32 }
 0xe9b   :  { %v2908_v9 = vadd.f32 1.0, %v7259_v40 }
 0xe9c   :  { %6313 = vmatprep.subr.bf16.mxu0 %v6312_v39 }
 0xe9e   :  { %6315 = vmatpush3.bf16.msra.mxu0 %v6312_v39  ;;  %v5552_v39 = vld [vmem:[%s7614_s5 + $0x20] sm:$0xff] }
 0xea9   :  { %2915 = vrot.lane.b32.xlu1 %v7259_v40, %s6756_s29 }
 0xf25   :  { %v2663_v3 = vpop.xlane.xlu1 %2662 }
 0xf26   :  { %v2665_v37 = vmul.f32 0.03125, %v2663_v3  ;;  %v2660_v38 = vpop.xlane.xlu0 %2659  ;;  %v2816_v3 = vld [vmem:[%s7622_s13 + $0x30] sm:$0xff] }
 0xf27   :  { %v2664_v41 = vmul.f32 0.03125, %v2660_v38  ;;  %v5526_v38 = vld [vmem:[%s7623_s24] ss:$0 sm:$0xff] }
 0xf28   :  { %v2667_v42 = vsub.f32 %v7247_v28, %v2665_v37  ;;  %v2817_v37 = vld [vmem:[%s7622_s13 + $0x38] sm:$0xff] }
 0xf29   :  { %v2666_v43 = vsub.f32 %v7249_v30, %v2664_v41 }
 0xf2a   :  { %v2669_v47 = vmul.f32 %v2667_v42, %v2667_v42 }
 0xf2b   :  { %v2668_v44 = vmul.f32 %v2666_v43, %v2666_v43 }
 0xf2c   :  { %v2673_v48 = vsel %vm323_vm2, %v2669_v47, 0.0 }
 0xf2d   :  { %v2670_v45 = vsel %vm323_vm2, %v2668_v44, 0.0 }
 0xf2e   :  { %2671 = vadd.xlane.f32.xlu0 %v2670_v45 }
 0xf32   :  { %2674 = vadd.xlane.f32.xlu0 %v2673_v48 }
 0xf48   :  { %2913 = vrot.lane.b32.xlu0 %v7269_v19, %s6756_s29 }
 0xfbb   :  { %v2672_v56 = vpop.xlane.xlu0 %2671 }
 0xfbc   :  { %v2676_v57 = vmul.f32 0.03125, %v2672_v56 }
 0xfbe   :  { %v2678_v58 = vadd.f32 1e-05, %v2676_v57 }
 0xfbf   :  { %v2675_v23 = vpop.xlane.xlu0 %2674 }
 0xfc0   :  { %6497 = vrsqrt.f32 %v2678_v58  ;;  %v2677_v59 = vmul.f32 0.03125, %v2675_v23 }
 0xfc2   :  { %v2679_v60 = vadd.f32 1e-05, %v2677_v59 }
 0xfc3   :  { %v2914_v16 = vpop.permute.xlu0 %2913 }
 0xfc4   :  { %6499 = vrsqrt.f32 %v2679_v60 }
 0xfca   :  { %v6498_v61 = vpop.eup %6497 }
 0xfcb   :  { %v2682_v2 = vmul.f32 %v6498_v61, %v2666_v43 }
 0xfcd   :  { %v2690_v5 = vmul.f32 %v5524_v62, %v2682_v2 }
 0xfce   :  { %v6500_v6 = vpop.eup %6499 }
 0xfcf   :  { %v2683_v7 = vmul.f32 %v6500_v6, %v2667_v42  ;;  %v2698_v25 = vadd.f32 %v5525_v4, %v2690_v5 }
 0xfd1   :  { %v2691_v10 = vmul.f32 %v5524_v62, %v2683_v7  ;;  %6032 = vmatprep.mubr.msk.f32.mxu1 %vm323_vm2, %v2698_v25  ;;  %v5529_v7 = vld [vmem:[%s6906_s30] ss:$0 sm:$0xff] }
 0xfd3   :  { %v2699_v26 = vadd.f32 %v5525_v4, %v2691_v10 }
 0xfd5   :  { %6033 = vmatmul.mubr.msk.f32.vlgmr.msra.gmra.mrb[26].mxu1 %vm323_vm2, %v2699_v26  ;;  %v2907_v26 = vadd.f32 1.0, %v7269_v19 }
 0xfd6   :  { %6326 = vmatpush3.bf16.msra.mxu1 %v6325_v11  ;;  %6062 = vmatprep.mubr.msk.f32.mxu1 %vm6754_vm0, %v6755_v1 }
 0xfd7   :  { %6327 = vmatprep.subr.bf16.mxu1 %v6753_v0 }
 0xfda   :  { %6329 = vmatpush3.bf16.msra.mxu1 %v6328_v13 }
 0xfdb   :  { %6330 = vmatprep.subr.bf16.mxu1 %v6753_v0 }
 0xfdd   :  { %6063 = vmatmul.mubr.msk.f32.vlgmr.msra.gmra.mrb[28].mxu1 %vm323_vm2, %v7030_v36 }
 0xfde   :  { %6332 = vmatpush3.bf16.msra.mxu1 %v6331_v17  ;;  %6073 = vmatprep.mubr.msk.f32.mxu1 %vm6754_vm0, %v6755_v1 }
 0xfdf   :  { %6333 = vmatprep.subr.bf16.mxu1 %v6753_v0  ;;  %v6316_v0 = vpack.c.bf16 %v2815_v35, %v2814_v34  ;;  %v5553_v34 = vld [vmem:[%s7614_s5 + $0x28] sm:$0xff] }
 0xfe0   :  { %v6344_v35 = vpack.c.bf16 %v5553_v34, %v5552_v39 }
 0xfe1   :  { %6317 = vmatprep.subr.bf16.mxu0 %v6316_v0 }
 0xfe2   :  { %6335 = vmatpush3.bf16.msra.mxu1 %v6334_v24  ;;  %6319 = vmatpush3.bf16.msra.mxu0 %v6316_v0 }
 0xfe3   :  { %6345 = vmatprep.subr.bf16.mxu1 %v6344_v35 }
 0xfe5   :  { %6074 = vmatmul.mubr.msk.f32.vlgmr.msra.gmra.mrb[30].mxu1 %vm323_vm2, %v7030_v36  ;;  %v6320_v36 = vpack.c.bf16 %v2817_v37, %v2816_v3 }
 0xfe6   :  { %6347 = vmatpush3.bf16.msra.mxu1 %v6344_v35 }
 0xfe7   :  { %6321 = vmatprep.subr.bf16.mxu0 %v6320_v36 }
 0xfe8   :  { %6323 = vmatpush3.bf16.msra.mxu0 %v6320_v36 }
 0xfe9   :  { %6337 = vmatprep.subr.bf16.mxu0 %v7040_v46 }
0x10a8   :  { %v6034_v41 = vpop.f32.mrb[26].mxu1 }
0x10a9   :  { %v2789_v42 = vadd.f32 %v6034_v41, %v5526_v38  ;;  %v2783_v43 = vpop.f32.mrb[27].mxu1 }
0x10aa   :  { %v2784_v44 = vadd.f32 %v5526_v38, %v2783_v43  ;;  %v5548_v43 = vld [vmem:[%s6841_s6 + $0x1] ss:$0 sm:$0xff]  ;;  %s7624_s6 = sld [smem:[#allocation17_spill]] }
0x10ab   :  { %v2795_v45 = vmul.f32 0.044715, %v2789_v42  ;;  %v2793_v4 = vmul.f32 0.5, %v2789_v42 }
0x10ac   :  { %v2794_v47 = vmul.f32 0.044715, %v2784_v44  ;;  %v2792_v62 = vmul.f32 0.5, %v2784_v44 }
0x10ad   :  { %v2797_v48 = vmul.f32 %v2795_v45, %v2789_v42 }
0x10ae   :  { %v2796_v49 = vmul.f32 %v2794_v47, %v2784_v44 }
0x10af   :  { %v2799_v29 = vmul.f32 %v2797_v48, %v2789_v42  ;;  %v5549_v48 = vld [vmem:[%s6846_s12 + $0x1] ss:$0 sm:$0xff]  ;;  %s7625_s12 = sld [smem:[#allocation18_spill]] }
0x10b0   :  { %v2798_v51 = vmul.f32 %v2796_v49, %v2784_v44  ;;  %v7311_v52 = vpop.f32.mrb[28].mxu1 }
0x10b1   :  { %v2801_v63 = vadd.f32 %v2799_v29, %v2789_v42  ;;  %v6064_v54 = vpop.f32.mrb[29].mxu1 }
0x10b2   :  { %v2800_v55 = vadd.f32 %v2798_v51, %v2784_v44  ;;  %v5554_v54 = vld [vmem:[%s7614_s5 + $0x30] sm:$0xff] }
0x10b3   :  { %v2803_v56 = vmul.f32 0.7978846, %v2801_v63 }
0x10b4   :  { %v2802_v57 = vmul.f32 0.7978846, %v2800_v55  ;;  %v5555_v55 = vld [vmem:[%s7614_s5 + $0x38] sm:$0xff] }
0x10b5   :  { %6501 = vtanh.f32 %v2803_v56  ;;  %v6348_v56 = vpack.c.bf16 %v5555_v55, %v5554_v54 }
0x10b6   :  { %6503 = vtanh.f32 %v2802_v57 }
0x10b7   :  { %6349 = vmatprep.subr.bf16.mxu1 %v6348_v56 }
0x10b8   :  { %v7313_v58 = vpop.f32.mrb[30].mxu1  ;;  %6351 = vmatpush3.bf16.msra.mxu1 %v6348_v56 }
0x10b9   :  { %v6075_v23 = vpop.f32.mrb[31].mxu1  ;;  %6111 = vmatprep.subr.mxu1 %v6755_v1 }
0x10ba   :  { %v6549_v23 = vld [vmem:[#allocation6 + $0x8] sm:$0xff] }
0x10bf   :  { %v6502_v59 = vpop.eup %6501 }
0x10c0   :  { %v6504_v60 = vpop.eup %6503  ;;  %v2807_v61 = vadd.f32 1.0, %v6502_v59 }
0x10c1   :  { %v2806_v2 = vadd.f32 1.0, %v6504_v60 }
0x10c2   :  { %v2809_v6 = vmul.f32 %v2807_v61, %v2793_v4  ;;  %v6550_v61 = vld [vmem:[#allocation4] sm:$0xff] }
0x10c3   :  { %v2808_v5 = vmul.f32 %v2806_v2, %v2792_v62  ;;  %v6551_v2 = vld [vmem:[#allocation6] sm:$0xff] }
0x10c5   :  { %6051 = vmatprep.mubr.msk.f32.mxu0 %vm2825_vm3, %v2808_v5  ;;  %v6552_v5 = vld [vmem:[#allocation4 + $0x8] sm:$0xff] }
0x10c6   :  { %6052 = vmatmul.mubr.msk.f32.vlgmr.msra.gmra.mrb[24].mxu0 %vm2825_vm3, %v2809_v6 }
0x10c7   :  { %6339 = vmatpush3.bf16.msra.mxu0 %v7040_v46  ;;  %v2916_v46 = vpop.permute.xlu1 %2915 }
0x10c8   :  { %6341 = vmatprep.subr.bf16.mxu0 %v7045_v53 }
0x10cb   :  { %6343 = vmatpush3.bf16.msra.mxu0 %v7045_v53 }
0x10cc   :  { %6101 = vmatprep.subr.mxu0 %v6755_v1 }
0x1199   :  { %v6053_v25 = vpop.f32.mrb[24].mxu0 }
0x119a   :  { %v2904_v8 = vadd.f32 %v6053_v25, %v5529_v7  ;;  %v2898_v10 = vpop.f32.mrb[25].mxu0 }
0x119b   :  { %v2899_v11 = vadd.f32 %v5529_v7, %v2898_v10 }
0x119c   :  { %v2910_v12 = vmul.f32 %v2908_v9, %v2904_v8  ;;  %v5557_v8 = vld [vmem:[%s7615_s25 + $0x1] ss:$0 sm:$0xff] }
0x119d   :  { %v2909_v14 = vmul.f32 %v2907_v26, %v2899_v11 }
0x119e   :  { %v2912_v13 = vadd.f32 %v2910_v12, %v7247_v28 }
0x119f   :  { %v2911_v15 = vadd.f32 %v2909_v14, %v7249_v30 }
0x11a0   :  { %v7326_v53 = vadd.f32 %v2916_v46, %v2912_v13 }
0x11a1   :  { %v7328_v17 = vadd.f32 %v2914_v16, %v2911_v15 }
0x11a2   :  { %v3160_v20 = vsel %vm323_vm2, %v7326_v53, 0.0 }
0x11a3   :  { %3161 = vadd.xlane.f32.xlu0 %v3160_v20  ;;  %v3157_v40 = vsel %vm323_vm2, %v7328_v17, 0.0 }
0x11a4   :  { %3158 = vadd.xlane.f32.xlu1 %v3157_v40 }
0x1230   :  { %v3162_v19 = vpop.xlane.xlu0 %3161 }
0x1231   :  { %v3164_v28 = vmul.f32 0.03125, %v3162_v19  ;;  %v3159_v22 = vpop.xlane.xlu1 %3158 }
0x1232   :  { %v3163_v24 = vmul.f32 0.03125, %v3159_v22 }
0x1233   :  { %v3166_v30 = vsub.f32 %v7326_v53, %v3164_v28 }
0x1234   :  { %v3165_v18 = vsub.f32 %v7328_v17, %v3163_v24 }
0x1235   :  { %v3168_v27 = vmul.f32 %v3166_v30, %v3166_v30 }
0x1236   :  { %v3167_v31 = vmul.f32 %v3165_v18, %v3165_v18 }
0x1237   :  { %v3172_v32 = vsel %vm323_vm2, %v3168_v27, 0.0 }
0x1238   :  { %3173 = vadd.xlane.f32.xlu1 %v3172_v32  ;;  %v3169_v33 = vsel %vm323_vm2, %v3167_v31, 0.0 }
0x1239   :  { %3170 = vadd.xlane.f32.xlu0 %v3169_v33 }
0x12c5   :  { %v3174_v0 = vpop.xlane.xlu1 %3173 }
0x12c6   :  { %v3176_v3 = vmul.f32 0.03125, %v3174_v0  ;;  %v3171_v37 = vpop.xlane.xlu0 %3170 }
0x12c7   :  { %v3175_v36 = vmul.f32 0.03125, %v3171_v37 }
0x12c8   :  { %v3178_v38 = vadd.f32 1e-05, %v3176_v3 }
0x12c9   :  { %v3177_v41 = vadd.f32 1e-05, %v3175_v36 }
0x12ca   :  { %6505 = vrsqrt.f32 %v3178_v38 }
0x12cb   :  { %6507 = vrsqrt.f32 %v3177_v41 }
0x12d4   :  { %v6506_v42 = vpop.eup %6505 }
0x12d5   :  { %v6508_v44 = vpop.eup %6507  ;;  %v3182_v45 = vmul.f32 %v6506_v42, %v3166_v30 }
0x12d6   :  { %v3181_v47 = vmul.f32 %v6508_v44, %v3165_v18 }
0x12d7   :  { %v3190_v49 = vmul.f32 %v5548_v43, %v3182_v45 }
0x12d8   :  { %v3189_v29 = vmul.f32 %v5548_v43, %v3181_v47 }
0x12d9   :  { %v3198_v63 = vadd.f32 %v5549_v48, %v3190_v49 }
0x12da   :  { %v3197_v51 = vadd.f32 %v5549_v48, %v3189_v29 }
0x12db   :  { %v3200_v6 = vmul.f32 %v6552_v5, %v3198_v63 }
0x12dc   :  { %6084 = vmatprep.mubr.msk.f32.mxu0 %vm323_vm2, %v3197_v51  ;;  %v3199_v62 = vmul.f32 %v6550_v61, %v3197_v51 }
0x12dd   :  { %6085 = vmatmul.mubr.msk.f32.vlgmr.msra.gmra.mrb[26].mxu0 %vm323_vm2, %v3198_v63 }
0x12de   :  { %6103 = vmatprep.mubr.msk.f32.mxu0 %vm6754_vm0, %v6755_v1 }
0x13b0   :  { %v6086_v57 = vpop.f32.mrb[26].mxu0 }
0x13b1   :  { %v3283_v59 = vmul.f32 %v6549_v23, %v6086_v57  ;;  %v3273_v60 = vpop.f32.mrb[27].mxu0 }
0x13b2   :  { %v3282_v4 = vmul.f32 %v6551_v2, %v3273_v60 }
0x13b3   :  { %v3285_v25 = vadd.f32 %v3283_v59, %v3200_v6 }
0x13b4   :  { %v3284_v7 = vadd.f32 %v3282_v4, %v3199_v62 }
0x13b6   :  { %6095 = vmatprep.mubr.msk.f32.mxu1 %vm323_vm2, %v3284_v7 }
0x13b7   :  { %6096 = vmatmul.mubr.msk.f32.vlgmr.msra.gmra.mrb[32].mxu1 %vm323_vm2, %v3285_v25 }
0x13b8   :  { %6098 = vmatprep.mubr.msk.f32.mxu1 %vm323_vm2, %v3197_v51 }
0x13bb   :  { %6099 = vmatmul.mubr.msk.f32.gmra.mrb[34].mxu1 %vm323_vm2, %v3198_v63 }
0x13bc   :  { %6113 = vmatprep.mubr.msk.f32.mxu1 %vm6754_vm0, %v6755_v1 }
0x148a   :  { %v6097_v9 = vpop.f32.mrb[32].mxu1 }
0x148b   :  { %v7356_v10 = vadd.f32 %v6097_v9, %v5557_v8  ;;  %v3371_v11 = vpop.f32.mrb[33].mxu1 }
0x148c   :  { %v7358_v26 = vadd.f32 %v5557_v8, %v3371_v11 }
0x148d   :  { %3476 = vrot.lane.b32.xlu1 %v7356_v10, %s6756_s29  ;;  %v7379_v40 = vmul.f32 0.35355338, %v7356_v10 }
0x148e   :  { %v6100_v12 = vpop.f32.mrb[34].mxu1  ;;  %3398 = vrot.lane.b32.xlu0 %v7358_v26, %s6756_s29  ;;  %v7370_v16 = vmul.f32 0.35355338, %v7358_v26 }
0x148f   :  { %v7364_v14 = vadd.f32 %v6100_v12, %v5557_v8  ;;  %v3381_v13 = vpop.f32.mrb[35].mxu1 }
0x1490   :  { %v7366_v46 = vadd.f32 %v5557_v8, %v3381_v13 }
0x14ff   :  { %v3477_v20 = vpop.permute.xlu1 %3476 }
0x1500   :  { %v3399_v15 = vpop.permute.xlu0 %3398 }
0x1501   :  { %6102 = vmatpush3.xpose.msk.msra.mxu0 %vm229_vm1, %v3399_v15 }
0x1502   :  { %6106 = vmatprep.subr.mxu0 %v6755_v1 }
0x1504   :  { %6104 = vmatmul.mubr.msk.f32.vlgmr.msra.gmra.mrb[28].mxu0 %vm229_vm1, %v7370_v16 }
0x1505   :  { %6107 = vmatpush3.xpose.msk.msra.mxu0 %vm229_vm1, %v3477_v20  ;;  %6108 = vmatprep.mubr.msk.f32.mxu0 %vm6754_vm0, %v6755_v1 }
0x1506   :  { %6116 = vmatprep.subr.mxu0 %v6755_v1 }
0x1508   :  { %6109 = vmatmul.mubr.msk.f32.vlgmr.msra.gmra.mrb[30].mxu0 %vm229_vm1, %v7379_v40 }
0x1509   :  { %6118 = vmatprep.mubr.msk.f32.mxu0 %vm6754_vm0, %v6755_v1 }
0x15d7   :  { %v3471_v19 = vpop.f32.mrb[28].mxu0 }
0x15d8   :  { %v6105_v28 = vpop.f32.mrb[29].mxu0  ;;  %v3553_v18 = vsel %vm229_vm1, %v3471_v19, -inf }
0x15db   :  { %v3549_v22 = vpop.f32.mrb[30].mxu0 }
0x15dc   :  { %v6110_v24 = vpop.f32.mrb[31].mxu0  ;;  %v3556_v30 = vsel %vm229_vm1, %v3549_v22, -inf }
0x15dd   :  { %3557 = vmax.xlane.f32.xlu1 %v3556_v30 }
0x15ee   :  { %3809 = vrot.lane.b32.xlu1 %v7356_v10, %s6757_s8 }
0x15f2   :  { %3807 = vrot.lane.b32.xlu1 %v7379_v40, %s6758_s14 }
0x1616   :  { %3554 = vmax.xlane.f32.xlu1 %v3553_v18 }
0x1627   :  { %3731 = vrot.lane.b32.xlu1 %v7358_v26, %s6757_s8 }
0x162b   :  { %3729 = vrot.lane.b32.xlu1 %v7370_v16, %s6758_s14 }
0x162f   :  { %4223 = vrot.lane.b32.xlu1 %v7358_v26, %s6762_s10 }
0x166a   :  { %v3558_v27 = vpop.xlane.xlu1 %3557 }
0x166b   :  { %v3560_v31 = vsub.f32 %v3549_v22, %v3558_v27 }
0x166d   :  { %v3563_v32 = vmul.f32 1.442695, %v3560_v31 }
0x166e   :  { %v3810_v34 = vpop.permute.xlu1 %3809 }
0x166f   :  { %6509 = vpow2.f32 %v3563_v32 }
0x1672   :  { %v3808_v35 = vpop.permute.xlu1 %3807 }
0x1679   :  { %v6510_v33 = vpop.eup %6509 }
0x167a   :  { %v3568_v39 = vsel %vm229_vm1, %v6510_v33, 0.0 }
0x167b   :  { %3569 = vadd.xlane.f32.xlu0 %v3568_v39 }
0x1691   :  { %3653 = vrot.lane.b32.xlu0 %v7364_v14, %s6759_s19 }
0x16a3   :  { %v3555_v0 = vpop.xlane.xlu1 %3554 }
0x16a4   :  { %v3559_v3 = vsub.f32 %v3471_v19, %v3555_v0 }
0x16a6   :  { %v3561_v37 = vmul.f32 1.442695, %v3559_v3 }
0x16a7   :  { %v3732_v49 = vpop.permute.xlu1 %3731 }
0x16a8   :  { %6511 = vpow2.f32 %v3561_v37  ;;  %v5563_v37 = vld [vmem:[%s7616_s3 + $0x28] sm:$0xff] }
0x16ab   :  { %v3730_v51 = vpop.permute.xlu1 %3729 }
0x16af   :  { %v4224_v8 = vpop.permute.xlu1 %4223 }
0x16b2   :  { %v6512_v36 = vpop.eup %6511 }
0x16b3   :  { %v3565_v38 = vsel %vm229_vm1, %v6512_v36, 0.0 }
0x16b4   :  { %3566 = vadd.xlane.f32.xlu0 %v3565_v38 }
0x16ca   :  { %3576 = vrot.lane.b32.xlu0 %v7366_v46, %s6759_s19 }
0x1708   :  { %v3570_v41 = vpop.xlane.xlu0 %3569 }
0x1709   :  { %6513 = vrcp.f32 %v3570_v41 }
0x170c   :  { %v3654_v42 = vpop.permute.xlu0 %3653 }
0x170d   :  { %6117 = vmatpush3.msra.mxu0 %v3654_v42 }
0x170e   :  { %6126 = vmatprep.subr.mxu0 %v6755_v1 }
0x1713   :  { %v6514_v43 = vpop.eup %6513 }
0x1714   :  { %v3574_v44 = vmul.f32 %v6514_v43, %v6510_v33 }
0x1716   :  { %6119 = vmatmul.mubr.msk.f32.vlgmr.msra.gmra.mrb[32].mxu0 %vm229_vm1, %v3574_v44 }
0x1717   :  { %6127 = vmatpush3.xpose.msk.msra.mxu0 %vm229_vm1, %v3810_v34  ;;  %6128 = vmatprep.mubr.msk.f32.mxu0 %vm6754_vm0, %v6755_v1 }
0x1718   :  { %6136 = vmatprep.subr.mxu0 %v6755_v1 }
0x171a   :  { %6129 = vmatmul.mubr.msk.f32.vlgmr.msra.gmra.mrb[34].mxu0 %vm229_vm1, %v3808_v35 }
0x171b   :  { %6138 = vmatprep.mubr.msk.f32.mxu0 %vm6754_vm0, %v6755_v1 }
0x1741   :  { %v3567_v45 = vpop.xlane.xlu0 %3566 }
0x1742   :  { %6515 = vrcp.f32 %v3567_v45 }
0x1745   :  { %v3577_v47 = vpop.permute.xlu0 %3576 }
0x1746   :  { %6112 = vmatpush3.msra.mxu1 %v3577_v47 }
0x1747   :  { %6121 = vmatprep.subr.mxu1 %v6755_v1 }
0x174c   :  { %v6516_v48 = vpop.eup %6515 }
0x174d   :  { %v3573_v29 = vmul.f32 %v6516_v48, %v6512_v36  ;;  %v5562_v36 = vld [vmem:[%s7616_s3 + $0x20] sm:$0xff] }
0x174f   :  { %6114 = vmatmul.mubr.msk.f32.vlgmr.msra.gmra.mrb[36].mxu1 %vm229_vm1, %v3573_v29 }
0x1750   :  { %6122 = vmatpush3.xpose.msk.msra.mxu1 %vm229_vm1, %v3732_v49  ;;  %6123 = vmatprep.mubr.msk.f32.mxu1 %vm6754_vm0, %v6755_v1 }
0x1751   :  { %6131 = vmatprep.subr.mxu1 %v6755_v1 }
0x1753   :  { %6124 = vmatmul.mubr.msk.f32.vlgmr.msra.gmra.mrb[38].mxu1 %vm229_vm1, %v3730_v51 }
0x1754   :  { %6133 = vmatprep.mubr.msk.f32.mxu1 %vm6754_vm0, %v6755_v1 }
0x17e9   :  { %v7422_v63 = vpop.f32.mrb[32].mxu0 }
0x17ea   :  { %v6120_v54 = vpop.f32.mrb[33].mxu0 }
0x17ed   :  { %v3881_v55 = vpop.f32.mrb[34].mxu0 }
0x17ee   :  { %v6130_v56 = vpop.f32.mrb[35].mxu0  ;;  %v3888_v57 = vsel %vm229_vm1, %v3881_v55, -inf }
0x17ef   :  { %3889 = vmax.xlane.f32.xlu0 %v3888_v57  ;;  %v5564_v56 = vld [vmem:[%s7616_s3 + $0x30] sm:$0xff] }
0x1805   :  { %3983 = vrot.lane.b32.xlu0 %v7364_v14, %s6760_s21 }
0x1809   :  { %4221 = vrot.lane.b32.xlu0 %v7370_v16, %s6761_s7 }
0x180d   :  { %4299 = vrot.lane.b32.xlu0 %v7379_v40, %s6761_s7 }
0x1822   :  { %v7431_v23 = vpop.f32.mrb[36].mxu1 }
0x1823   :  { %v6115_v59 = vpop.f32.mrb[37].mxu1 }
0x1826   :  { %v3803_v60 = vpop.f32.mrb[38].mxu1 }
0x1827   :  { %v6125_v61 = vpop.f32.mrb[39].mxu1  ;;  %v3885_v25 = vsel %vm229_vm1, %v3803_v60, -inf }
0x187c   :  { %v3890_v62 = vpop.xlane.xlu0 %3889 }
0x187d   :  { %v3892_v2 = vsub.f32 %v3881_v55, %v3890_v62 }
0x187f   :  { %v3895_v4 = vmul.f32 1.442695, %v3892_v2 }
0x1880   :  { %v3984_v5 = vpop.permute.xlu0 %3983 }
0x1881   :  { %6517 = vpow2.f32 %v3895_v4  ;;  %6137 = vmatpush3.msra.mxu0 %v3984_v5 }
0x1882   :  { %6151 = vmatprep.subr.mxu0 %v6755_v1 }
0x1884   :  { %v4222_v13 = vpop.permute.xlu0 %4221 }
0x1888   :  { %v4300_v20 = vpop.permute.xlu0 %4299 }
0x188b   :  { %v6518_v6 = vpop.eup %6517 }
0x188c   :  { %v3900_v7 = vsel %vm229_vm1, %v6518_v6, 0.0 }
0x188d   :  { %3901 = vadd.xlane.f32.xlu1 %v3900_v7 }
0x189e   :  { %4301 = vrot.lane.b32.xlu1 %v7356_v10, %s6762_s10 }
0x18c2   :  { %3886 = vmax.xlane.f32.xlu1 %v3885_v25 }
0x191a   :  { %v3902_v9 = vpop.xlane.xlu1 %3901 }
0x191b   :  { %6519 = vrcp.f32 %v3902_v9 }
0x191e   :  { %v4302_v15 = vpop.permute.xlu1 %4301 }
0x1925   :  { %v6520_v11 = vpop.eup %6519 }
0x1926   :  { %v3906_v12 = vmul.f32 %v6520_v11, %v6518_v6 }
0x1928   :  { %6139 = vmatmul.mubr.msk.f32.vlgmr.msra.gmra.mrb[36].mxu0 %vm229_vm1, %v3906_v12 }
0x1929   :  { %6152 = vmatpush3.xpose.msk.msra.mxu0 %vm229_vm1, %v4224_v8  ;;  %6153 = vmatprep.mubr.msk.f32.mxu0 %vm6754_vm0, %v6755_v1 }
0x192a   :  { %6156 = vmatprep.subr.mxu0 %v6755_v1 }
0x192c   :  { %6154 = vmatmul.mubr.msk.f32.vlgmr.msra.gmra.mrb[38].mxu0 %vm229_vm1, %v4222_v13 }
0x192d   :  { %6157 = vmatpush3.xpose.msk.msra.mxu0 %vm229_vm1, %v4302_v15  ;;  %6158 = vmatprep.mubr.msk.f32.mxu0 %vm6754_vm0, %v6755_v1 }
0x192e   :  { %6166 = vmatprep.subr.mxu0 %v6755_v1 }
0x1930   :  { %6159 = vmatmul.mubr.msk.f32.vlgmr.msra.gmra.mrb[40].mxu0 %vm229_vm1, %v4300_v20 }
0x1931   :  { %6168 = vmatprep.mubr.msk.f32.mxu0 %vm6754_vm0, %v6755_v1 }
0x194f   :  { %v3887_v19 = vpop.xlane.xlu1 %3886 }
0x1950   :  { %v3891_v28 = vsub.f32 %v3803_v60, %v3887_v19 }
0x1952   :  { %v3893_v22 = vmul.f32 1.442695, %v3891_v28 }
0x1954   :  { %6521 = vpow2.f32 %v3893_v22 }
0x195e   :  { %v6522_v24 = vpop.eup %6521 }
0x195f   :  { %v3897_v30 = vsel %vm229_vm1, %v6522_v24, 0.0 }
0x1960   :  { %3898 = vadd.xlane.f32.xlu0 %v3897_v30  ;;  %v5537_v30 = vld [vmem:[%s7617_s22 + $0x1] ss:$0 sm:$0xff] }
0x1976   :  { %3907 = vrot.lane.b32.xlu0 %v7366_v46, %s6760_s21 }
0x197a   :  { %4475 = vrot.lane.b32.xlu0 %v7364_v14, %s6763_s11 }
0x197e   :  { %4636 = vrot.lane.b32.xlu0 %v7358_v26, %s6764_s15 }
0x1982   :  { %4714 = vrot.lane.b32.xlu0 %v7356_v10, %s6764_s15 }
0x1986   :  { %4634 = vrot.lane.b32.xlu0 %v7370_v16, %s6765_s18 }
0x19ed   :  { %v3899_v18 = vpop.xlane.xlu0 %3898 }
0x19ee   :  { %6523 = vrcp.f32 %v3899_v18  ;;  %v3001_v18 = vadd.f32 %v5537_v30, %v7311_v52  ;;  %v5605_v30 = vld [vmem:[%s7619_s26 + $0x28] sm:$0xff] }
0x19f1   :  { %v3908_v27 = vpop.permute.xlu0 %3907 }
0x19f2   :  { %6132 = vmatpush3.msra.mxu1 %v3908_v27  ;;  %v3094_v27 = vrot.slane %v3001_v18, %v7222_v21 }
0x19f3   :  { %6141 = vmatprep.subr.mxu1 %v5563_v37 }
0x19f5   :  { %v4476_v31 = vpop.permute.xlu0 %4475 }
0x19f6   :  { %6167 = vmatpush3.msra.mxu0 %v4476_v31  ;;  %v3095_v31 = vcombine.high %v3094_v27, %v3094_v27 }
0x19f7   :  { %6176 = vmatprep.subr.mxu0 %v6755_v1 }
0x19f8   :  { %v6524_v32 = vpop.eup %6523 }
0x19f9   :  { %v3905_v33 = vmul.f32 %v6524_v32, %v6522_v24  ;;  %v4637_v59 = vpop.permute.xlu0 %4636 }
0x19fb   :  { %6134 = vmatmul.mubr.msk.f32.vlgmr.msra.gmra.mrb[40].mxu1 %vm229_vm1, %v3905_v33  ;;  %v4055_v26 = vpop.f32.mrb[36].mxu0  ;;  %v3109_v33 = vrot.slane %v3095_v31, %v7222_v21  ;;  %v5607_v31 = vld [vmem:[%s7619_s26 + $0x38] sm:$0xff] }
0x19fc   :  { %v6140_v39 = vpop.f32.mrb[37].mxu0  ;;  %6142 = vmatpush3.msra.mxu1 %v5563_v37 }
0x19fd   :  { %6146 = vmatprep.subr.mxu1 %v5562_v36  ;;  %v4715_v62 = vpop.permute.xlu0 %4714 }
0x19ff   :  { %v4295_v10 = vpop.f32.mrb[38].mxu0 }
0x1a00   :  { %v6155_v34 = vpop.f32.mrb[39].mxu0  ;;  %v4377_v16 = vsel %vm229_vm1, %v4295_v10, -inf }
0x1a01   :  { %4378 = vmax.xlane.f32.xlu1 %v4377_v16  ;;  %v4635_v2 = vpop.permute.xlu0 %4634 }
0x1a03   :  { %v4373_v35 = vpop.f32.mrb[40].mxu0 }
0x1a04   :  { %v6160_v0 = vpop.f32.mrb[41].mxu0  ;;  %v4380_v3 = vsel %vm229_vm1, %v4373_v35, -inf }
0x1a05   :  { %4381 = vmax.xlane.f32.xlu1 %v4380_v3 }
0x1a8e   :  { %v4379_v38 = vpop.xlane.xlu1 %4378 }
0x1a8f   :  { %v4383_v41 = vsub.f32 %v4295_v10, %v4379_v38 }
0x1a91   :  { %v4385_v42 = vmul.f32 1.442695, %v4383_v41 }
0x1a92   :  { %v4382_v43 = vpop.xlane.xlu1 %4381 }
0x1a93   :  { %6525 = vpow2.f32 %v4385_v42  ;;  %v4384_v44 = vsub.f32 %v4373_v35, %v4382_v43  ;;  %v5565_v42 = vld [vmem:[%s7616_s3 + $0x38] sm:$0xff] }
0x1a95   :  { %v4387_v45 = vmul.f32 1.442695, %v4384_v44 }
0x1a97   :  { %6527 = vpow2.f32 %v4387_v45 }
0x1a9d   :  { %v6526_v47 = vpop.eup %6525 }
0x1a9e   :  { %v4389_v48 = vsel %vm229_vm1, %v6526_v47, 0.0 }
0x1a9f   :  { %4390 = vadd.xlane.f32.xlu1 %v4389_v48 }
0x1aa1   :  { %v6528_v49 = vpop.eup %6527 }
0x1aa2   :  { %v4392_v29 = vsel %vm229_vm1, %v6528_v49, 0.0 }
0x1aa3   :  { %4393 = vadd.xlane.f32.xlu1 %v4392_v29 }
0x1ab4   :  { %4399 = vrot.lane.b32.xlu1 %v7366_v46, %s6763_s11 }
0x1ab8   :  { %4712 = vrot.lane.b32.xlu1 %v7379_v40, %s6765_s18 }
0x1ace   :  { %v3979_v51 = vpop.f32.mrb[40].mxu1 }
0x1acf   :  { %v6135_v54 = vpop.f32.mrb[41].mxu1  ;;  %6143 = vmatprep.mubr.msk.f32.mxu1 %vm229_vm1, %v3979_v51 }
0x1ad0   :  { %6144 = vmatmul.mubr.msk.f32.vlgmr.msra.gmra.mrb[42].mxu1 %vm229_vm1, %v4055_v26  ;;  %v3117_v26 = vrot.slane %v3109_v33, %v7226_v50 }
0x1ad1   :  { %6148 = vmatprep.mubr.msk.f32.mxu1 %vm229_vm1, %v7431_v23  ;;  %6147 = vmatpush3.msra.mxu1 %v5562_v36 }
0x1ad2   :  { %6161 = vmatprep.subr.mxu1 %v6755_v1  ;;  %v5058_v51 = vadd.f32 1.0, %v3117_v26 }
0x1ad8   :  { %6149 = vmatmul.mubr.msk.f32.vlgmr.msra.gmra.mrb[42].mxu1 %vm229_vm1, %v7422_v63 }
0x1ad9   :  { %6163 = vmatprep.mubr.msk.f32.mxu1 %vm6754_vm0, %v6755_v1 }
0x1b2c   :  { %v4391_v55 = vpop.xlane.xlu1 %4390 }
0x1b2d   :  { %6529 = vrcp.f32 %v4391_v55 }
0x1b30   :  { %v4394_v40 = vpop.xlane.xlu1 %4393 }
0x1b31   :  { %6531 = vrcp.f32 %v4394_v40 }
0x1b34   :  { %v4400_v57 = vpop.permute.xlu1 %4399 }
0x1b35   :  { %6162 = vmatpush3.msra.mxu1 %v4400_v57 }
0x1b36   :  { %6171 = vmatprep.subr.mxu1 %v5564_v56 }
0x1b37   :  { %v6530_v60 = vpop.eup %6529 }
0x1b38   :  { %v4397_v23 = vmul.f32 %v6530_v60, %v6526_v47  ;;  %v4713_v25 = vpop.permute.xlu1 %4712  ;;  %v5599_v47 = vld [vmem:[%s7618_s23 + $0x1] ss:$0 sm:$0xff] }
0x1b39   :  { %v5544_v60 = vld [vmem:[%s6916_s27 + $0x1] ss:$0 sm:$0xff] }
0x1b3a   :  { %6164 = vmatmul.mubr.msk.f32.vlgmr.msra.gmra.mrb[44].mxu1 %vm229_vm1, %v4397_v23 }
0x1b3b   :  { %v6532_v61 = vpop.eup %6531  ;;  %6172 = vmatpush3.msra.mxu1 %v5564_v56 }
0x1b3c   :  { %v4398_v63 = vmul.f32 %v6532_v61, %v6528_v49  ;;  %6181 = vmatprep.subr.mxu1 %v6755_v1 }
0x1b3e   :  { %6169 = vmatmul.mubr.msk.f32.vlgmr.msra.gmra.mrb[42].mxu0 %vm229_vm1, %v4398_v63 }
0x1b3f   :  { %6177 = vmatpush3.xpose.msk.msra.mxu0 %vm229_vm1, %v4637_v59  ;;  %6178 = vmatprep.mubr.msk.f32.mxu0 %vm6754_vm0, %v6755_v1 }
0x1b40   :  { %6186 = vmatprep.subr.mxu0 %v6755_v1 }
0x1b42   :  { %6179 = vmatmul.mubr.msk.f32.vlgmr.msra.gmra.mrb[44].mxu0 %vm229_vm1, %v4635_v2  ;;  %v3084_v2 = vadd.f32 %v5544_v60, %v7313_v58 }
0x1b43   :  { %6188 = vmatprep.mubr.msk.f32.mxu0 %vm6754_vm0, %v6755_v1 }
0x1c0d   :  { %v4471_v4 = vpop.f32.mrb[44].mxu1 }
0x1c0e   :  { %v6165_v5 = vpop.f32.mrb[45].mxu1  ;;  %6173 = vmatprep.mubr.msk.f32.mxu1 %vm229_vm1, %v4471_v4 }
0x1c11   :  { %v4547_v6 = vpop.f32.mrb[42].mxu0 }
0x1c12   :  { %v6170_v7 = vpop.f32.mrb[43].mxu0  ;;  %6174 = vmatmul.mubr.msk.f32.vlgmr.msra.gmra.mrb[42].mxu1 %vm229_vm1, %v4547_v6 }
0x1c13   :  { %6182 = vmatpush3.xpose.msk.msra.mxu1 %vm229_vm1, %v4715_v62  ;;  %6183 = vmatprep.mubr.msk.f32.mxu1 %vm6754_vm0, %v6755_v1 }
0x1c14   :  { %6191 = vmatprep.subr.mxu1 %v6755_v1 }
0x1c15   :  { %v4708_v8 = vpop.f32.mrb[44].mxu0 }
0x1c16   :  { %v6180_v9 = vpop.f32.mrb[45].mxu0  ;;  %6184 = vmatmul.mubr.msk.f32.vlgmr.msra.gmra.mrb[46].mxu1 %vm229_vm1, %v4713_v25  ;;  %v4790_v11 = vsel %vm229_vm1, %v4708_v8, -inf }
0x1c17   :  { %4791 = vmax.xlane.f32.xlu0 %v4790_v11  ;;  %6193 = vmatprep.mubr.msk.f32.mxu1 %vm6754_vm0, %v6755_v1  ;;  %v3102_v1 = vrot.slane %v3094_v27, %v7222_v21  ;;  %v5606_v27 = vld [vmem:[%s7619_s26 + $0x30] sm:$0xff] }
0x1c19   :  { %v3113_v32 = vrot.slane %v3102_v1, %v7226_v50  ;;  %v6356_v1 = vpack.c.bf16 %v5607_v31, %v5606_v27  ;;  %v5621_v27 = vld [vmem:[%s6906_s30 + $0x1] ss:$0 sm:$0xff] }
0x1c1b   :  { %v5057_v40 = vadd.f32 1.0, %v3113_v32 }
0x1ca4   :  { %v4792_v12 = vpop.xlane.xlu0 %4791 }
0x1ca5   :  { %v4796_v13 = vsub.f32 %v4708_v8, %v4792_v12 }
0x1ca7   :  { %v4798_v15 = vmul.f32 1.442695, %v4796_v13 }
0x1ca9   :  { %6533 = vpow2.f32 %v4798_v15 }
0x1cb3   :  { %v6534_v20 = vpop.eup %6533 }
0x1cb4   :  { %v4802_v19 = vsel %vm229_vm1, %v6534_v20, 0.0 }
0x1cb5   :  { %4803 = vadd.xlane.f32.xlu0 %v4802_v19 }
0x1ce9   :  { %v4786_v28 = vpop.f32.mrb[46].mxu1 }
0x1cea   :  { %v6185_v22 = vpop.f32.mrb[47].mxu1  ;;  %v4793_v24 = vsel %vm229_vm1, %v4786_v28, -inf }
0x1ceb   :  { %4794 = vmax.xlane.f32.xlu1 %v4793_v24  ;;  %v5604_v24 = vld [vmem:[%s7619_s26 + $0x20] sm:$0xff] }
0x1cec   :  { %v6352_v18 = vpack.c.bf16 %v5605_v30, %v5604_v24  ;;  %v5343_v24 = vld [vmem:[%s7624_s6 + $0x10] sm:$0xff]  ;;  %v5344_v30 = vld [vmem:[%s7624_s6 + $0x18] sm:$0xff] }
0x1cfc   :  { %4888 = vrot.lane.b32.xlu1 %v7364_v14, %s6767_s9 }
0x1d00   :  { %5063 = vrot.lane.b32.xlu1 %v3113_v32, %s6756_s29 }
0x1d04   :  { %5065 = vrot.lane.b32.xlu1 %v3117_v26, %s6756_s29 }
0x1d42   :  { %v4804_v35 = vpop.xlane.xlu0 %4803 }
0x1d78   :  { %v4795_v39 = vpop.xlane.xlu1 %4794 }
0x1d79   :  { %v4797_v52 = vsub.f32 %v4786_v28, %v4795_v39 }
0x1d7b   :  { %v4800_v10 = vmul.f32 1.442695, %v4797_v52 }
0x1d7c   :  { %v4889_v34 = vpop.permute.xlu1 %4888 }
0x1d7d   :  { %6535 = vpow2.f32 %v4800_v10  ;;  %6192 = vmatpush3.msra.mxu1 %v4889_v34  ;;  %v5602_v10 = vld [vmem:[%s7620_s28 + $0x1] ss:$0 sm:$0xff] }
0x1d7e   :  { %6537 = vrcp.f32 %v4804_v35  ;;  %6196 = vmatprep.subr.mxu1 %v5565_v42 }
0x1d80   :  { %v5064_v48 = vpop.permute.xlu1 %5063 }
0x1d84   :  { %v5066_v23 = vpop.permute.xlu1 %5065 }
0x1d87   :  { %v6536_v16 = vpop.eup %6535 }
0x1d88   :  { %v4805_v14 = vsel %vm229_vm1, %v6536_v16, 0.0  ;;  %v6538_v3 = vpop.eup %6537 }
0x1d89   :  { %4806 = vadd.xlane.f32.xlu0 %v4805_v14  ;;  %v4810_v37 = vmul.f32 %v6538_v3, %v6534_v20 }
0x1d9f   :  { %4812 = vrot.lane.b32.xlu0 %v7366_v46, %s6767_s9 }
0x1e16   :  { %v4807_v0 = vpop.xlane.xlu0 %4806 }
0x1e17   :  { %6539 = vrcp.f32 %v4807_v0 }
0x1e1a   :  { %v4813_v36 = vpop.permute.xlu0 %4812 }
0x1e1b   :  { %6187 = vmatpush3.msra.mxu0 %v4813_v36 }
0x1e1c   :  { %6189 = vmatmul.mubr.msk.f32.vlgmr.msra.gmra.mrb[46].mxu0 %vm229_vm1, %v4810_v37  ;;  %6353 = vmatprep.subr.bf16.mxu0 %v6352_v18 }
0x1e1d   :  { %6355 = vmatpush3.bf16.msra.mxu0 %v6352_v18  ;;  %v6380_v18 = vpack.c.bf16 %v5344_v30, %v5343_v24 }
0x1e1e   :  { %6357 = vmatprep.subr.bf16.mxu0 %v6356_v1 }
0x1e21   :  { %v6540_v38 = vpop.eup %6539  ;;  %6359 = vmatpush3.bf16.msra.mxu0 %v6356_v1 }
0x1e22   :  { %v4811_v41 = vmul.f32 %v6540_v38, %v6536_v16  ;;  %v5603_v16 = vld [vmem:[%s7621_s1 + $0x1] ss:$0 sm:$0xff] }
0x1e23   :  { %v5612_v38 = vld [vmem:[%s7622_s13 + $0x40] sm:$0xff] }
0x1e24   :  { %6194 = vmatmul.mubr.msk.f32.vlgmr.msra.gmra.mrb[48].mxu1 %vm229_vm1, %v4811_v41  ;;  %v5613_v41 = vld [vmem:[%s7622_s13 + $0x48] sm:$0xff] }
0x1e25   :  { %6197 = vmatpush3.msra.mxu1 %v5565_v42  ;;  %v6360_v42 = vpack.c.bf16 %v5613_v41, %v5612_v38 }
0x1e27   :  { %6361 = vmatprep.subr.bf16.mxu1 %v6360_v42 }
0x1eef   :  { %v4884_v43 = vpop.f32.mrb[46].mxu0 }
0x1ef0   :  { %v6190_v46 = vpop.f32.mrb[47].mxu0  ;;  %6198 = vmatprep.mubr.msk.f32.mxu1 %vm229_vm1, %v4884_v43  ;;  %v5614_v43 = vld [vmem:[%s7622_s13 + $0x50] sm:$0xff] }
0x1ef1   :  { %v5615_v46 = vld [vmem:[%s7622_s13 + $0x58] sm:$0xff] }
0x1ef7   :  { %v4960_v44 = vpop.f32.mrb[48].mxu1 }
0x1ef8   :  { %v6195_v45 = vpop.f32.mrb[49].mxu1  ;;  %6199 = vmatmul.mubr.msk.f32.vlgmr.msra.gmra.mrb[42].mxu1 %vm229_vm1, %v4960_v44  ;;  %v6364_v44 = vpack.c.bf16 %v5615_v46, %v5614_v43 }
0x1ef9   :  { %v5616_v45 = vld [vmem:[%s7622_s13 + $0x60] sm:$0xff]  ;;  %6363 = vmatpush3.bf16.msra.mxu1 %v6360_v42 }
0x1efa   :  { %6365 = vmatprep.subr.bf16.mxu1 %v6364_v44 }
0x1efd   :  { %6367 = vmatpush3.bf16.msra.mxu1 %v6364_v44 }
0x1fcb   :  { %v6200_v49 = vpop.f32.mrb[42].mxu1 }
0x1fcc   :  { %v5056_v29 = vadd.f32 %v6200_v49, %v5599_v47  ;;  %v5036_v54 = vpop.f32.mrb[43].mxu1  ;;  %v5618_v49 = vld [vmem:[%s7622_s13 + $0x70] sm:$0xff] }
0x1fcd   :  { %v5055_v55 = vadd.f32 %v5599_v47, %v5036_v54  ;;  %v5617_v47 = vld [vmem:[%s7622_s13 + $0x68] sm:$0xff]  ;;  %v5609_v54 = vld [vmem:[%s7623_s24 + $0x1] ss:$0 sm:$0xff] }
0x1fce   :  { %v5060_v56 = vmul.f32 %v5058_v51, %v5056_v29  ;;  %v5619_v29 = vld [vmem:[%s7622_s13 + $0x78] sm:$0xff] }
0x1fcf   :  { %v5059_v57 = vmul.f32 %v5057_v40, %v5055_v55  ;;  %v6372_v51 = vpack.c.bf16 %v5619_v29, %v5618_v49 }
0x1fd0   :  { %v5062_v59 = vadd.f32 %v5060_v56, %v7326_v53  ;;  %v3127_v53 = vrot.slane %v3084_v2, %v7222_v21 }
0x1fd1   :  { %v5061_v61 = vadd.f32 %v5059_v57, %v7328_v17 }
0x1fd2   :  { %v7529_v62 = vadd.f32 %v5066_v23, %v5062_v59  ;;  %v3128_v6 = vcombine.high %v3127_v53, %v3127_v53  ;;  %v3135_v28 = vrot.slane %v3127_v53, %v7222_v21 }
0x1fd3   :  { %v7531_v63 = vadd.f32 %v5064_v48, %v5061_v61  ;;  %v6368_v48 = vpack.c.bf16 %v5617_v47, %v5616_v45 }
0x1fd4   :  { %v5078_v4 = vsel %vm323_vm2, %v7529_v62, 0.0  ;;  %v3142_v7 = vrot.slane %v3128_v6, %v7222_v21  ;;  %v7551_v22 = vrot.slane %v3135_v28, %v7226_v50 }
0x1fd5   :  { %5079 = vadd.xlane.f32.xlu1 %v5078_v4  ;;  %v5075_v5 = vsel %vm323_vm2, %v7531_v63, 0.0  ;;  %6369 = vmatprep.subr.bf16.mxu1 %v6368_v48 }
0x1fd6   :  { %5076 = vadd.xlane.f32.xlu0 %v5075_v5  ;;  %v7541_v17 = vrot.slane %v3142_v7, %v7226_v50  ;;  %6371 = vmatpush3.bf16.msra.mxu1 %v6368_v48 }
0x1fd7   :  { %6373 = vmatprep.subr.bf16.mxu1 %v6372_v51 }
0x1fda   :  { %6375 = vmatpush3.bf16.msra.mxu1 %v6372_v51 }
0x1fe6   :  { %5335 = vrot.lane.b32.xlu1 %v7541_v17, %s6756_s29 }
0x2062   :  { %v5080_v58 = vpop.xlane.xlu1 %5079 }
0x2063   :  { %v5082_v25 = vmul.f32 0.03125, %v5080_v58  ;;  %v5077_v8 = vpop.xlane.xlu0 %5076 }
0x2064   :  { %v5081_v9 = vmul.f32 0.03125, %v5077_v8 }
0x2065   :  { %v5084_v11 = vsub.f32 %v7529_v62, %v5082_v25 }
0x2066   :  { %v5083_v12 = vsub.f32 %v7531_v63, %v5081_v9 }
0x2067   :  { %v5086_v20 = vmul.f32 %v5084_v11, %v5084_v11 }
0x2068   :  { %v5085_v13 = vmul.f32 %v5083_v12, %v5083_v12 }
0x2069   :  { %v5090_v19 = vsel %vm323_vm2, %v5086_v20, 0.0  ;;  %v5341_v20 = vld [vmem:[%s7624_s6] sm:$0xff] }
0x206a   :  { %v5087_v15 = vsel %vm323_vm2, %v5085_v13, 0.0 }
0x206b   :  { %5088 = vadd.xlane.f32.xlu0 %v5087_v15 }
0x206f   :  { %5091 = vadd.xlane.f32.xlu0 %v5090_v19  ;;  %v5342_v19 = vld [vmem:[%s7624_s6 + $0x8] sm:$0xff] }
0x2070   :  { %v6376_v28 = vpack.c.bf16 %v5342_v19, %v5341_v20 }
0x2072   :  { %6377 = vmatprep.subr.bf16.mxu0 %v6376_v28 }
0x2085   :  { %5333 = vrot.lane.b32.xlu0 %v7551_v22, %s6756_s29 }
0x20f8   :  { %v5089_v32 = vpop.xlane.xlu0 %5088 }
0x20f9   :  { %v5093_v21 = vmul.f32 0.03125, %v5089_v32  ;;  %v5328_v32 = vadd.f32 1.0, %v7541_v17  ;;  %v5624_v17 = vld [vmem:[%s7625_s12] ss:$0 sm:$0xff] }
0x20fb   :  { %v5095_v33 = vadd.f32 1e-05, %v5093_v21 }
0x20fc   :  { %v5092_v50 = vpop.xlane.xlu0 %5091 }
0x20fd   :  { %6541 = vrsqrt.f32 %v5095_v33  ;;  %v5094_v26 = vmul.f32 0.03125, %v5092_v50  ;;  %v5327_v50 = vadd.f32 1.0, %v7551_v22 }
0x20ff   :  { %v5096_v39 = vadd.f32 1e-05, %v5094_v26 }
0x2101   :  { %6543 = vrsqrt.f32 %v5096_v39 }
0x2107   :  { %v6542_v52 = vpop.eup %6541 }
0x2108   :  { %v5099_v34 = vmul.f32 %v6542_v52, %v5083_v12 }
0x210a   :  { %v5107_v14 = vmul.f32 %v5602_v10, %v5099_v34  ;;  %v5334_v34 = vpop.permute.xlu0 %5333 }
0x210b   :  { %v6544_v35 = vpop.eup %6543 }
0x210c   :  { %v5100_v0 = vmul.f32 %v6544_v35, %v5084_v11  ;;  %v5115_v3 = vadd.f32 %v5603_v16, %v5107_v14 }
0x210e   :  { %v5108_v37 = vmul.f32 %v5602_v10, %v5100_v0  ;;  %6209 = vmatprep.mubr.msk.f32.mxu0 %vm323_vm2, %v5115_v3 }
0x2110   :  { %v5116_v36 = vadd.f32 %v5603_v16, %v5108_v37  ;;  %v5336_v16 = vpop.permute.xlu1 %5335 }
0x2112   :  { %6210 = vmatmul.mubr.msk.f32.vlgmr.msra.gmra.mrb[48].mxu0 %vm323_vm2, %v5116_v36 }
0x2113   :  { %6379 = vmatpush3.bf16.msra.mxu0 %v6376_v28 }
0x2114   :  { %6381 = vmatprep.subr.bf16.mxu0 %v6380_v18 }
0x2117   :  { %6383 = vmatpush3.bf16.msra.mxu0 %v6380_v18 }
0x21e5   :  { %v6211_v55 = vpop.f32.mrb[48].mxu0 }
0x21e6   :  { %v5208_v40 = vadd.f32 %v6211_v55, %v5609_v54  ;;  %v5202_v56 = vpop.f32.mrb[49].mxu0 }
0x21e7   :  { %v5203_v57 = vadd.f32 %v5609_v54, %v5202_v56 }
0x21e8   :  { %v5214_v59 = vmul.f32 0.044715, %v5208_v40  ;;  %v5212_v12 = vmul.f32 0.5, %v5208_v40 }
0x21e9   :  { %v5213_v60 = vmul.f32 0.044715, %v5203_v57  ;;  %v5211_v9 = vmul.f32 0.5, %v5203_v57 }
0x21ea   :  { %v5216_v23 = vmul.f32 %v5214_v59, %v5208_v40 }
0x21eb   :  { %v5215_v61 = vmul.f32 %v5213_v60, %v5203_v57 }
0x21ec   :  { %v5218_v2 = vmul.f32 %v5216_v23, %v5208_v40 }
0x21ed   :  { %v5217_v4 = vmul.f32 %v5215_v61, %v5203_v57 }
0x21ee   :  { %v5220_v5 = vadd.f32 %v5218_v2, %v5208_v40 }
0x21ef   :  { %v5219_v53 = vadd.f32 %v5217_v4, %v5203_v57 }
0x21f0   :  { %v5222_v6 = vmul.f32 0.7978846, %v5220_v5 }
0x21f1   :  { %v5221_v7 = vmul.f32 0.7978846, %v5219_v53 }
0x21f2   :  { %6545 = vtanh.f32 %v5222_v6 }
0x21f3   :  { %6547 = vtanh.f32 %v5221_v7 }
0x21fc   :  { %v6546_v58 = vpop.eup %6545 }
0x21fd   :  { %v6548_v25 = vpop.eup %6547  ;;  %v5226_v8 = vadd.f32 1.0, %v6546_v58 }
0x21fe   :  { %v5225_v11 = vadd.f32 1.0, %v6548_v25 }
0x21ff   :  { %v5228_v15 = vmul.f32 %v5226_v8, %v5212_v12 }
0x2200   :  { %v5227_v13 = vmul.f32 %v5225_v11, %v5211_v9 }
0x2202   :  { %6228 = vmatprep.mubr.msk.f32.mxu1 %vm2825_vm3, %v5227_v13 }
0x2203   :  { %6229 = vmatmul.mubr.msk.f32.vlgmr.msra.gmra.mrb[50].mxu1 %vm2825_vm3, %v5228_v15 }
0x22d6   :  { %v6230_v31 = vpop.f32.mrb[50].mxu1 }
0x22d7   :  { %v5324_v1 = vadd.f32 %v6230_v31, %v5621_v27  ;;  %v5318_v21 = vpop.f32.mrb[51].mxu1 }
0x22d8   :  { %v5319_v33 = vadd.f32 %v5621_v27, %v5318_v21 }
0x22d9   :  { %v5330_v26 = vmul.f32 %v5328_v32, %v5324_v1 }
0x22da   :  { %v5329_v39 = vmul.f32 %v5327_v50, %v5319_v33 }
0x22db   :  { %v5332_v52 = vadd.f32 %v5330_v26, %v7529_v62 }
0x22dc   :  { %v5331_v10 = vadd.f32 %v5329_v39, %v7531_v63 }
0x22dd   :  { %v5340_v35 = vadd.f32 %v5336_v16, %v5332_v52 }
0x22de   :  { %v5339_v14 = vadd.f32 %v5334_v34, %v5331_v10 }
0x22e0   :  { %6239 = vmatprep.mubr.msk.f32.mxu0 %vm323_vm2, %v5339_v14 }
0x22e1   :  { %6240 = vmatmul.mubr.msk.f32.vlgmr.msra.gmra.mrb[50].mxu0 %vm323_vm2, %v5340_v35 }
0x23b4   :  { %v6241_v0 = vpop.f32.mrb[50].mxu0 }
0x23b5   :  { %v5430_v3 = vadd.f32 %v6241_v0, %v5624_v17  ;;  %v5424_v22 = vpop.f32.mrb[51].mxu0 }
0x23b6   :  { %v5425_v37 = vadd.f32 %v5624_v17, %v5424_v22 }
0x23b7   :  { %5434 = vst.msk [vmem:[%s6921_s4 + $0x8] sm:$0xff] %vm229_vm1, %v5430_v3 }
0x23b8   :  { %5433 = vst.msk [vmem:[%s6921_s4] sm:$0xff] %vm229_vm1, %v5425_v37 }
0x23b9   :  { %5439 = vsyncpa [#allocation3], 1 }
0x23ba   :  { %5440 = vsyncpa [#allocation5], 1 }
0x23bb   :  { %5441 = vsyncpa [#allocation8], 1 }
0x23bc   :  { %5442 = vsyncpa [#allocation11], 1 }

</bundles_post_ra>
